<compile_context>
chip_gen: v5e
topology: v5e:2x2
jax: 0.10.0
libtpu: 0.0.40
codegen_flags: <defaults>
</compile_context>

<pallas_src>
import jax
import jax.numpy as jnp
from jax import lax
from jax.experimental import pallas as pl
from jax.experimental.pallas import tpu as pltpu

KSIZE = 7
PAD = 3  # "same" padding for kernel_size=7


def spatial_attention_kernel(w_ref, x_ref, o_ref, pad_ref):
    # w_ref:   (2*K*K,) f32 conv weights in SMEM (scalar reads).
    # x_ref:   (BN, C, H, W) input block in VMEM.
    # o_ref:   (BN, 1, H, W) output block in VMEM.
    # pad_ref: (2, H+2P, W+2P) persistent VMEM scratch (zero-padded 2-ch map).
    BN, C, H, W = x_ref.shape
    Wp = W + 2 * PAD

    # Zero only the PAD-wide border strips, once per grid step.  The interior
    # is fully overwritten for every image below, so this is sufficient, and it
    # stays correct when the "parallel" batch axis is sharded across cores.
    zrow = jnp.zeros((2, PAD, Wp), jnp.float32)
    pad_ref[:, :PAD, :] = zrow
    pad_ref[:, PAD + H:, :] = zrow
    zcol = jnp.zeros((2, H, PAD), jnp.float32)
    pad_ref[:, PAD:PAD + H, :PAD] = zcol
    pad_ref[:, PAD:PAD + H, PAD + W:] = zcol

    for b in range(BN):  # BN is a small compile-time constant
        # ---- fused single-pass channel reduction: mean + max ---------------
        x0 = x_ref[b, 0].astype(jnp.float32)

        def body(c, carry):
            s, m = carry
            xc = x_ref[b, c].astype(jnp.float32)
            return s + xc, jnp.maximum(m, xc)

        s, m = lax.fori_loop(1, C, body, (x0, x0))
        avg = s * (1.0 / C)                      # == torch.mean(x, dim=1)
        # m                                      # == torch.max(x, dim=1).values

        pad_ref[0, pl.ds(PAD, H), pl.ds(PAD, W)] = avg
        pad_ref[1, pl.ds(PAD, H), pl.ds(PAD, W)] = m

        # ---- 7x7, 2->1 channel conv as an unrolled shift-MAC ---------------
        acc = jnp.zeros((H, W), jnp.float32)
        for c in range(2):
            for kh in range(KSIZE):
                band = pad_ref[c, pl.ds(kh, H), :]          # (H, W+2P): 1 load
                for kw in range(KSIZE):
                    wv = w_ref[c * KSIZE * KSIZE + kh * KSIZE + kw]
                    acc = acc + wv * band[:, kw:kw + W]     # lane slice of band

        o_ref[b, 0] = jax.nn.sigmoid(acc).astype(o_ref.dtype)


def _pick_block_n(n, max_bn=8):
    """Largest divisor of n that is <= max_bn (amortizes per-step overhead)."""
    bn = 1
    for d in range(1, min(n, max_bn) + 1):
        if n % d == 0:
            bn = d
    return bn


def spatial_attention(x, w, *, block_n=None):
    """x: (N, C, H, W), w: (1, 2, K, K) -> (N, 1, H, W)."""
    N, C, H, W = x.shape
    assert w.shape == (1, 2, KSIZE, KSIZE)
    bn = _pick_block_n(N) if block_n is None else block_n
    assert N % bn == 0

    w_flat = w.reshape(-1).astype(jnp.float32)  # (2*K*K,) -> SMEM

    # TODO(synk): for production shapes (large C / large H*W) add a channel- or
    # row-band tile grid axis (reduction axis last, "arbitrary") so the double-
    # buffered input block fits v7x's 64 MiB VMEM, and switch to a lane-dense
    # (H*W multiple of 128) output layout / im2col-MXU conv; not worthwhile at
    # these 16x16 test shapes and it needs a tiled-dim reshape.
    return pl.pallas_call(
        spatial_attention_kernel,
        out_shape=jax.ShapeDtypeStruct((N, 1, H, W), x.dtype),
        grid_spec=pltpu.PrefetchScalarGridSpec(
            num_scalar_prefetch=0,
            grid=(N // bn,),
            in_specs=[
                pl.BlockSpec(memory_space=pltpu.MemorySpace.SMEM),    # weights
                pl.BlockSpec((bn, C, H, W), lambda n: (n, 0, 0, 0)),  # x
            ],
            out_specs=pl.BlockSpec((bn, 1, H, W), lambda n: (n, 0, 0, 0)),
            scratch_shapes=[
                pltpu.VMEM((2, H + 2 * PAD, W + 2 * PAD), jnp.float32),
            ],
        ),
        compiler_params=pltpu.CompilerParams(
            # Batches are independent -> let v7x's two TensorCores split the grid.
            dimension_semantics=("parallel",)),
    )(w_flat, x)


def spatial_attention_ref(x, w):
    avg = jnp.mean(x, axis=1, keepdims=True)
    mx = jnp.max(x, axis=1, keepdims=True)
    x2 = jnp.concatenate([avg, mx], axis=1)
    y = lax.conv_general_dilated(
        x2, w, window_strides=(1, 1), padding=[(PAD, PAD), (PAD, PAD)],
        dimension_numbers=("NCHW", "OIHW", "NCHW"))
    return jax.nn.sigmoid(y)


if __name__ == "__main__":
    key = jax.random.PRNGKey(0)
    kx, kw = jax.random.split(key)

    # Small shapes consistent with the module's forward.
    N, C, H, W = 2, 4, 16, 16
    x = jax.random.normal(kx, (N, C, H, W), jnp.float32)

    # Deterministic weight init (mimics Conv2d default uniform bound 1/sqrt(fan_in)).
    fan_in = 2 * KSIZE * KSIZE
    bound = 1.0 / (fan_in ** 0.5)
    w = jax.random.uniform(kw, (1, 2, KSIZE, KSIZE), jnp.float32, -bound, bound)

    out = spatial_attention(x, w)
    jax.block_until_ready(out)

    ref = spatial_attention_ref(x, w)
    assert out.shape == (N, 1, H, W)
    assert jnp.allclose(out, ref, atol=1e-5, rtol=1e-5), "mismatch vs reference"

    print("KERNEL_OK")
</pallas_src>

<mosaic_0001>
module attributes {stable_mosaic.version = 11 : i64} {
  func.func @spatial_attention_kernel(%arg0: i32, %arg1: memref<98xf32, #tpu.memory_space<smem>>, %arg2: memref<2x4x16x16xf32, #tpu.memory_space<vmem>>, %arg3: memref<2x1x16x16xf32, #tpu.memory_space<vmem>>, %arg4: memref<2x22x22xf32, #tpu.memory_space<vmem>>) attributes {dimension_semantics = [#tpu.dimension_semantics<parallel>], iteration_bounds = array<i64: 1>, scalar_prefetch = 0 : i64, scratch_operands = 1 : i64, tpu.core_type = #tpu.core_type<tc>, window_params = [{transform_indices = @transform_0, window_bounds = array<i64: 98>}, {transform_indices = @transform_1, window_bounds = array<i64: 2, 4, 16, 16>}, {transform_indices = @transform_2, window_bounds = array<i64: 2, 1, 16, 16>}]} {
    %cst = arith.constant 0.000000e+00 : f32
    %0 = vector.broadcast %cst : f32 to vector<2x3x22xf32>
    %c0 = arith.constant 0 : index
    %c0_0 = arith.constant 0 : index
    %c0_1 = arith.constant 0 : index
    %1 = vector.load %arg4[%c0, %c0_0, %c0_1] : memref<2x22x22xf32, #tpu.memory_space<vmem>>, vector<2x3x22xf32>
    tpu.vector_store %arg4[%c0, %c0_0, %c0_1], %0 {strides = array<i32>} : memref<2x22x22xf32, #tpu.memory_space<vmem>>, vector<2x3x22xf32>,
    %c0_2 = arith.constant 0 : index
    %c19 = arith.constant 19 : index
    %c0_3 = arith.constant 0 : index
    %2 = vector.load %arg4[%c0_2, %c19, %c0_3] : memref<2x22x22xf32, #tpu.memory_space<vmem>>, vector<2x3x22xf32>
    tpu.vector_store %arg4[%c0_2, %c19, %c0_3], %0 {strides = array<i32>} : memref<2x22x22xf32, #tpu.memory_space<vmem>>, vector<2x3x22xf32>,
    %cst_4 = arith.constant 0.000000e+00 : f32
    %3 = vector.broadcast %cst_4 : f32 to vector<2x16x3xf32>
    %c0_5 = arith.constant 0 : index
    %c3 = arith.constant 3 : index
    %c0_6 = arith.constant 0 : index
    %4 = vector.load %arg4[%c0_5, %c3, %c0_6] : memref<2x22x22xf32, #tpu.memory_space<vmem>>, vector<2x16x3xf32>
    tpu.vector_store %arg4[%c0_5, %c3, %c0_6], %3 {strides = array<i32>} : memref<2x22x22xf32, #tpu.memory_space<vmem>>, vector<2x16x3xf32>,
    %c0_7 = arith.constant 0 : index
    %c3_8 = arith.constant 3 : index
    %c19_9 = arith.constant 19 : index
    %5 = vector.load %arg4[%c0_7, %c3_8, %c19_9] : memref<2x22x22xf32, #tpu.memory_space<vmem>>, vector<2x16x3xf32>
    tpu.vector_store %arg4[%c0_7, %c3_8, %c19_9], %3 {strides = array<i32>} : memref<2x22x22xf32, #tpu.memory_space<vmem>>, vector<2x16x3xf32>,
    %c0_10 = arith.constant 0 : index
    %c0_11 = arith.constant 0 : index
    %c0_12 = arith.constant 0 : index
    %c0_13 = arith.constant 0 : index
    %6 = vector.load %arg2[%c0_10, %c0_11, %c0_12, %c0_13] : memref<2x4x16x16xf32, #tpu.memory_space<vmem>>, vector<1x1x16x16xf32>
    %7 = vector.shape_cast %6 : vector<1x1x16x16xf32> to vector<16x16xf32>
    %c1_i32 = arith.constant 1 : i32
    %c3_i32 = arith.constant 3 : i32
    %8 = arith.addi %c1_i32, %c3_i32 : i32
    %c1_i32_14 = arith.constant 1 : i32
    %9:2 = scf.for %arg5 = %c1_i32 to %8 step %c1_i32_14 iter_args(%arg6 = %7, %arg7 = %7) -> (vector<16x16xf32>, vector<16x16xf32>)  : i32 {
      %c0_235 = arith.constant 0 : index
      %1084 = arith.index_cast %arg5 : i32 to index
      %c0_236 = arith.constant 0 : index
      %c0_237 = arith.constant 0 : index
      %1085 = vector.load %arg2[%c0_235, %1084, %c0_236, %c0_237] : memref<2x4x16x16xf32, #tpu.memory_space<vmem>>, vector<1x1x16x16xf32>
      %1086 = vector.shape_cast %1085 : vector<1x1x16x16xf32> to vector<16x16xf32>
      %1087 = arith.addf %arg6, %1086 : vector<16x16xf32>
      %1088 = arith.maximumf %arg7, %1086 : vector<16x16xf32>
      scf.yield %1087, %1088 : vector<16x16xf32>, vector<16x16xf32>
    }
    %c3_i32_15 = arith.constant 3 : i32
    %cst_16 = arith.constant 2.500000e-01 : f32
    %10 = vector.broadcast %cst_16 : f32 to vector<16x16xf32>
    %11 = arith.mulf %9#0, %10 : vector<16x16xf32>
    %c0_17 = arith.constant 0 : index
    %c3_18 = arith.constant 3 : index
    %c3_19 = arith.constant 3 : index
    %12 = vector.load %arg4[%c0_17, %c3_18, %c3_19] : memref<2x22x22xf32, #tpu.memory_space<vmem>>, vector<1x16x16xf32>
    %13 = vector.shape_cast %12 : vector<1x16x16xf32> to vector<16x16xf32>
    %14 = vector.shape_cast %11 : vector<16x16xf32> to vector<1x16x16xf32>
    tpu.vector_store %arg4[%c0_17, %c3_18, %c3_19], %14 {strides = array<i32>} : memref<2x22x22xf32, #tpu.memory_space<vmem>>, vector<1x16x16xf32>,
    %c1 = arith.constant 1 : index
    %c3_20 = arith.constant 3 : index
    %c3_21 = arith.constant 3 : index
    %15 = vector.load %arg4[%c1, %c3_20, %c3_21] : memref<2x22x22xf32, #tpu.memory_space<vmem>>, vector<1x16x16xf32>
    %16 = vector.shape_cast %15 : vector<1x16x16xf32> to vector<16x16xf32>
    %17 = vector.shape_cast %9#1 : vector<16x16xf32> to vector<1x16x16xf32>
    tpu.vector_store %arg4[%c1, %c3_20, %c3_21], %17 {strides = array<i32>} : memref<2x22x22xf32, #tpu.memory_space<vmem>>, vector<1x16x16xf32>,
    %cst_22 = arith.constant 0.000000e+00 : f32
    %18 = vector.broadcast %cst_22 : f32 to vector<16x16xf32>
    %c0_23 = arith.constant 0 : index
    %c0_24 = arith.constant 0 : index
    %c0_25 = arith.constant 0 : index
    %19 = vector.load %arg4[%c0_23, %c0_24, %c0_25] : memref<2x22x22xf32, #tpu.memory_space<vmem>>, vector<1x16x22xf32>
    %20 = vector.shape_cast %19 : vector<1x16x22xf32> to vector<16x22xf32>
    %c0_26 = arith.constant 0 : index
    %21 = memref.load %arg1[%c0_26] : memref<98xf32, #tpu.memory_space<smem>>
    %22 = vector.extract_strided_slice %20 {offsets = [0, 0], sizes = [16, 16], strides = [1, 1]} : vector<16x22xf32> to vector<16x16xf32>
    %23 = vector.broadcast %21 : f32 to vector<16x16xf32>
    %24 = arith.mulf %23, %22 : vector<16x16xf32>
    %25 = arith.addf %18, %24 : vector<16x16xf32>
    %c1_27 = arith.constant 1 : index
    %26 = memref.load %arg1[%c1_27] : memref<98xf32, #tpu.memory_space<smem>>
    %27 = vector.extract_strided_slice %20 {offsets = [0, 1], sizes = [16, 16], strides = [1, 1]} : vector<16x22xf32> to vector<16x16xf32>
    %28 = vector.broadcast %26 : f32 to vector<16x16xf32>
    %29 = arith.mulf %28, %27 : vector<16x16xf32>
    %30 = arith.addf %25, %29 : vector<16x16xf32>
    %c2 = arith.constant 2 : index
    %31 = memref.load %arg1[%c2] : memref<98xf32, #tpu.memory_space<smem>>
    %32 = vector.extract_strided_slice %20 {offsets = [0, 2], sizes = [16, 16], strides = [1, 1]} : vector<16x22xf32> to vector<16x16xf32>
    %33 = vector.broadcast %31 : f32 to vector<16x16xf32>
    %34 = arith.mulf %33, %32 : vector<16x16xf32>
    %35 = arith.addf %30, %34 : vector<16x16xf32>
    %c3_28 = arith.constant 3 : index
    %36 = memref.load %arg1[%c3_28] : memref<98xf32, #tpu.memory_space<smem>>
    %37 = vector.extract_strided_slice %20 {offsets = [0, 3], sizes = [16, 16], strides = [1, 1]} : vector<16x22xf32> to vector<16x16xf32>
    %38 = vector.broadcast %36 : f32 to vector<16x16xf32>
    %39 = arith.mulf %38, %37 : vector<16x16xf32>
    %40 = arith.addf %35, %39 : vector<16x16xf32>
    %c4 = arith.constant 4 : index
    %41 = memref.load %arg1[%c4] : memref<98xf32, #tpu.memory_space<smem>>
    %42 = vector.extract_strided_slice %20 {offsets = [0, 4], sizes = [16, 16], strides = [1, 1]} : vector<16x22xf32> to vector<16x16xf32>
    %43 = vector.broadcast %41 : f32 to vector<16x16xf32>
    %44 = arith.mulf %43, %42 : vector<16x16xf32>
    %45 = arith.addf %40, %44 : vector<16x16xf32>
    %c5 = arith.constant 5 : index
    %46 = memref.load %arg1[%c5] : memref<98xf32, #tpu.memory_space<smem>>
    %47 = vector.extract_strided_slice %20 {offsets = [0, 5], sizes = [16, 16], strides = [1, 1]} : vector<16x22xf32> to vector<16x16xf32>
    %48 = vector.broadcast %46 : f32 to vector<16x16xf32>
    %49 = arith.mulf %48, %47 : vector<16x16xf32>
    %50 = arith.addf %45, %49 : vector<16x16xf32>
    %c6 = arith.constant 6 : index
    %51 = memref.load %arg1[%c6] : memref<98xf32, #tpu.memory_space<smem>>
    %52 = vector.extract_strided_slice %20 {offsets = [0, 6], sizes = [16, 16], strides = [1, 1]} : vector<16x22xf32> to vector<16x16xf32>
    %53 = vector.broadcast %51 : f32 to vector<16x16xf32>
    %54 = arith.mulf %53, %52 : vector<16x16xf32>
    %55 = arith.addf %50, %54 : vector<16x16xf32>
    %c0_29 = arith.constant 0 : index
    %c1_30 = arith.constant 1 : index
    %c0_31 = arith.constant 0 : index
    %56 = vector.load %arg4[%c0_29, %c1_30, %c0_31] : memref<2x22x22xf32, #tpu.memory_space<vmem>>, vector<1x16x22xf32>
    %57 = vector.shape_cast %56 : vector<1x16x22xf32> to vector<16x22xf32>
    %c7 = arith.constant 7 : index
    %58 = memref.load %arg1[%c7] : memref<98xf32, #tpu.memory_space<smem>>
    %59 = vector.extract_strided_slice %57 {offsets = [0, 0], sizes = [16, 16], strides = [1, 1]} : vector<16x22xf32> to vector<16x16xf32>
    %60 = vector.broadcast %58 : f32 to vector<16x16xf32>
    %61 = arith.mulf %60, %59 : vector<16x16xf32>
    %62 = arith.addf %55, %61 : vector<16x16xf32>
    %c8 = arith.constant 8 : index
    %63 = memref.load %arg1[%c8] : memref<98xf32, #tpu.memory_space<smem>>
    %64 = vector.extract_strided_slice %57 {offsets = [0, 1], sizes = [16, 16], strides = [1, 1]} : vector<16x22xf32> to vector<16x16xf32>
    %65 = vector.broadcast %63 : f32 to vector<16x16xf32>
    %66 = arith.mulf %65, %64 : vector<16x16xf32>
    %67 = arith.addf %62, %66 : vector<16x16xf32>
    %c9 = arith.constant 9 : index
    %68 = memref.load %arg1[%c9] : memref<98xf32, #tpu.memory_space<smem>>
    %69 = vector.extract_strided_slice %57 {offsets = [0, 2], sizes = [16, 16], strides = [1, 1]} : vector<16x22xf32> to vector<16x16xf32>
    %70 = vector.broadcast %68 : f32 to vector<16x16xf32>
    %71 = arith.mulf %70, %69 : vector<16x16xf32>
    %72 = arith.addf %67, %71 : vector<16x16xf32>
    %c10 = arith.constant 10 : index
    %73 = memref.load %arg1[%c10] : memref<98xf32, #tpu.memory_space<smem>>
    %74 = vector.extract_strided_slice %57 {offsets = [0, 3], sizes = [16, 16], strides = [1, 1]} : vector<16x22xf32> to vector<16x16xf32>
    %75 = vector.broadcast %73 : f32 to vector<16x16xf32>
    %76 = arith.mulf %75, %74 : vector<16x16xf32>
    %77 = arith.addf %72, %76 : vector<16x16xf32>
    %c11 = arith.constant 11 : index
    %78 = memref.load %arg1[%c11] : memref<98xf32, #tpu.memory_space<smem>>
    %79 = vector.extract_strided_slice %57 {offsets = [0, 4], sizes = [16, 16], strides = [1, 1]} : vector<16x22xf32> to vector<16x16xf32>
    %80 = vector.broadcast %78 : f32 to vector<16x16xf32>
    %81 = arith.mulf %80, %79 : vector<16x16xf32>
    %82 = arith.addf %77, %81 : vector<16x16xf32>
    %c12 = arith.constant 12 : index
    %83 = memref.load %arg1[%c12] : memref<98xf32, #tpu.memory_space<smem>>
    %84 = vector.extract_strided_slice %57 {offsets = [0, 5], sizes = [16, 16], strides = [1, 1]} : vector<16x22xf32> to vector<16x16xf32>
    %85 = vector.broadcast %83 : f32 to vector<16x16xf32>
    %86 = arith.mulf %85, %84 : vector<16x16xf32>
    %87 = arith.addf %82, %86 : vector<16x16xf32>
    %c13 = arith.constant 13 : index
    %88 = memref.load %arg1[%c13] : memref<98xf32, #tpu.memory_space<smem>>
    %89 = vector.extract_strided_slice %57 {offsets = [0, 6], sizes = [16, 16], strides = [1, 1]} : vector<16x22xf32> to vector<16x16xf32>
    %90 = vector.broadcast %88 : f32 to vector<16x16xf32>
    %91 = arith.mulf %90, %89 : vector<16x16xf32>
    %92 = arith.addf %87, %91 : vector<16x16xf32>
    %c0_32 = arith.constant 0 : index
    %c2_33 = arith.constant 2 : index
    %c0_34 = arith.constant 0 : index
    %93 = vector.load %arg4[%c0_32, %c2_33, %c0_34] : memref<2x22x22xf32, #tpu.memory_space<vmem>>, vector<1x16x22xf32>
    %94 = vector.shape_cast %93 : vector<1x16x22xf32> to vector<16x22xf32>
    %c14 = arith.constant 14 : index
    %95 = memref.load %arg1[%c14] : memref<98xf32, #tpu.memory_space<smem>>
    %96 = vector.extract_strided_slice %94 {offsets = [0, 0], sizes = [16, 16], strides = [1, 1]} : vector<16x22xf32> to vector<16x16xf32>
    %97 = vector.broadcast %95 : f32 to vector<16x16xf32>
    %98 = arith.mulf %97, %96 : vector<16x16xf32>
    %99 = arith.addf %92, %98 : vector<16x16xf32>
    %c15 = arith.constant 15 : index
    %100 = memref.load %arg1[%c15] : memref<98xf32, #tpu.memory_space<smem>>
    %101 = vector.extract_strided_slice %94 {offsets = [0, 1], sizes = [16, 16], strides = [1, 1]} : vector<16x22xf32> to vector<16x16xf32>
    %102 = vector.broadcast %100 : f32 to vector<16x16xf32>
    %103 = arith.mulf %102, %101 : vector<16x16xf32>
    %104 = arith.addf %99, %103 : vector<16x16xf32>
    %c16 = arith.constant 16 : index
    %105 = memref.load %arg1[%c16] : memref<98xf32, #tpu.memory_space<smem>>
    %106 = vector.extract_strided_slice %94 {offsets = [0, 2], sizes = [16, 16], strides = [1, 1]} : vector<16x22xf32> to vector<16x16xf32>
    %107 = vector.broadcast %105 : f32 to vector<16x16xf32>
    %108 = arith.mulf %107, %106 : vector<16x16xf32>
    %109 = arith.addf %104, %108 : vector<16x16xf32>
    %c17 = arith.constant 17 : index
    %110 = memref.load %arg1[%c17] : memref<98xf32, #tpu.memory_space<smem>>
    %111 = vector.extract_strided_slice %94 {offsets = [0, 3], sizes = [16, 16], strides = [1, 1]} : vector<16x22xf32> to vector<16x16xf32>
    %112 = vector.broadcast %110 : f32 to vector<16x16xf32>
    %113 = arith.mulf %112, %111 : vector<16x16xf32>
    %114 = arith.addf %109, %113 : vector<16x16xf32>
    %c18 = arith.constant 18 : index
    %115 = memref.load %arg1[%c18] : memref<98xf32, #tpu.memory_space<smem>>
    %116 = vector.extract_strided_slice %94 {offsets = [0, 4], sizes = [16, 16], strides = [1, 1]} : vector<16x22xf32> to vector<16x16xf32>
    %117 = vector.broadcast %115 : f32 to vector<16x16xf32>
    %118 = arith.mulf %117, %116 : vector<16x16xf32>
    %119 = arith.addf %114, %118 : vector<16x16xf32>
    %c19_35 = arith.constant 19 : index
    %120 = memref.load %arg1[%c19_35] : memref<98xf32, #tpu.memory_space<smem>>
    %121 = vector.extract_strided_slice %94 {offsets = [0, 5], sizes = [16, 16], strides = [1, 1]} : vector<16x22xf32> to vector<16x16xf32>
    %122 = vector.broadcast %120 : f32 to vector<16x16xf32>
    %123 = arith.mulf %122, %121 : vector<16x16xf32>
    %124 = arith.addf %119, %123 : vector<16x16xf32>
    %c20 = arith.constant 20 : index
    %125 = memref.load %arg1[%c20] : memref<98xf32, #tpu.memory_space<smem>>
    %126 = vector.extract_strided_slice %94 {offsets = [0, 6], sizes = [16, 16], strides = [1, 1]} : vector<16x22xf32> to vector<16x16xf32>
    %127 = vector.broadcast %125 : f32 to vector<16x16xf32>
    %128 = arith.mulf %127, %126 : vector<16x16xf32>
    %129 = arith.addf %124, %128 : vector<16x16xf32>
    %c0_36 = arith.constant 0 : index
    %c3_37 = arith.constant 3 : index
    %c0_38 = arith.constant 0 : index
    %130 = vector.load %arg4[%c0_36, %c3_37, %c0_38] : memref<2x22x22xf32, #tpu.memory_space<vmem>>, vector<1x16x22xf32>
    %131 = vector.shape_cast %130 : vector<1x16x22xf32> to vector<16x22xf32>
    %c21 = arith.constant 21 : index
    %132 = memref.load %arg1[%c21] : memref<98xf32, #tpu.memory_space<smem>>
    %133 = vector.extract_strided_slice %131 {offsets = [0, 0], sizes = [16, 16], strides = [1, 1]} : vector<16x22xf32> to vector<16x16xf32>
    %134 = vector.broadcast %132 : f32 to vector<16x16xf32>
    %135 = arith.mulf %134, %133 : vector<16x16xf32>
    %136 = arith.addf %129, %135 : vector<16x16xf32>
    %c22 = arith.constant 22 : index
    %137 = memref.load %arg1[%c22] : memref<98xf32, #tpu.memory_space<smem>>
    %138 = vector.extract_strided_slice %131 {offsets = [0, 1], sizes = [16, 16], strides = [1, 1]} : vector<16x22xf32> to vector<16x16xf32>
    %139 = vector.broadcast %137 : f32 to vector<16x16xf32>
    %140 = arith.mulf %139, %138 : vector<16x16xf32>
    %141 = arith.addf %136, %140 : vector<16x16xf32>
    %c23 = arith.constant 23 : index
    %142 = memref.load %arg1[%c23] : memref<98xf32, #tpu.memory_space<smem>>
    %143 = vector.extract_strided_slice %131 {offsets = [0, 2], sizes = [16, 16], strides = [1, 1]} : vector<16x22xf32> to vector<16x16xf32>
    %144 = vector.broadcast %142 : f32 to vector<16x16xf32>
    %145 = arith.mulf %144, %143 : vector<16x16xf32>
    %146 = arith.addf %141, %145 : vector<16x16xf32>
    %c24 = arith.constant 24 : index
    %147 = memref.load %arg1[%c24] : memref<98xf32, #tpu.memory_space<smem>>
    %148 = vector.extract_strided_slice %131 {offsets = [0, 3], sizes = [16, 16], strides = [1, 1]} : vector<16x22xf32> to vector<16x16xf32>
    %149 = vector.broadcast %147 : f32 to vector<16x16xf32>
    %150 = arith.mulf %149, %148 : vector<16x16xf32>
    %151 = arith.addf %146, %150 : vector<16x16xf32>
    %c25 = arith.constant 25 : index
    %152 = memref.load %arg1[%c25] : memref<98xf32, #tpu.memory_space<smem>>
    %153 = vector.extract_strided_slice %131 {offsets = [0, 4], sizes = [16, 16], strides = [1, 1]} : vector<16x22xf32> to vector<16x16xf32>
    %154 = vector.broadcast %152 : f32 to vector<16x16xf32>
    %155 = arith.mulf %154, %153 : vector<16x16xf32>
    %156 = arith.addf %151, %155 : vector<16x16xf32>
    %c26 = arith.constant 26 : index
    %157 = memref.load %arg1[%c26] : memref<98xf32, #tpu.memory_space<smem>>
    %158 = vector.extract_strided_slice %131 {offsets = [0, 5], sizes = [16, 16], strides = [1, 1]} : vector<16x22xf32> to vector<16x16xf32>
    %159 = vector.broadcast %157 : f32 to vector<16x16xf32>
    %160 = arith.mulf %159, %158 : vector<16x16xf32>
    %161 = arith.addf %156, %160 : vector<16x16xf32>
    %c27 = arith.constant 27 : index
    %162 = memref.load %arg1[%c27] : memref<98xf32, #tpu.memory_space<smem>>
    %163 = vector.extract_strided_slice %131 {offsets = [0, 6], sizes = [16, 16], strides = [1, 1]} : vector<16x22xf32> to vector<16x16xf32>
    %164 = vector.broadcast %162 : f32 to vector<16x16xf32>
    %165 = arith.mulf %164, %163 : vector<16x16xf32>
    %166 = arith.addf %161, %165 : vector<16x16xf32>
    %c0_39 = arith.constant 0 : index
    %c4_40 = arith.constant 4 : index
    %c0_41 = arith.constant 0 : index
    %167 = vector.load %arg4[%c0_39, %c4_40, %c0_41] : memref<2x22x22xf32, #tpu.memory_space<vmem>>, vector<1x16x22xf32>
    %168 = vector.shape_cast %167 : vector<1x16x22xf32> to vector<16x22xf32>
    %c28 = arith.constant 28 : index
    %169 = memref.load %arg1[%c28] : memref<98xf32, #tpu.memory_space<smem>>
    %170 = vector.extract_strided_slice %168 {offsets = [0, 0], sizes = [16, 16], strides = [1, 1]} : vector<16x22xf32> to vector<16x16xf32>
    %171 = vector.broadcast %169 : f32 to vector<16x16xf32>
    %172 = arith.mulf %171, %170 : vector<16x16xf32>
    %173 = arith.addf %166, %172 : vector<16x16xf32>
    %c29 = arith.constant 29 : index
    %174 = memref.load %arg1[%c29] : memref<98xf32, #tpu.memory_space<smem>>
    %175 = vector.extract_strided_slice %168 {offsets = [0, 1], sizes = [16, 16], strides = [1, 1]} : vector<16x22xf32> to vector<16x16xf32>
    %176 = vector.broadcast %174 : f32 to vector<16x16xf32>
    %177 = arith.mulf %176, %175 : vector<16x16xf32>
    %178 = arith.addf %173, %177 : vector<16x16xf32>
    %c30 = arith.constant 30 : index
    %179 = memref.load %arg1[%c30] : memref<98xf32, #tpu.memory_space<smem>>
    %180 = vector.extract_strided_slice %168 {offsets = [0, 2], sizes = [16, 16], strides = [1, 1]} : vector<16x22xf32> to vector<16x16xf32>
    %181 = vector.broadcast %179 : f32 to vector<16x16xf32>
    %182 = arith.mulf %181, %180 : vector<16x16xf32>
    %183 = arith.addf %178, %182 : vector<16x16xf32>
    %c31 = arith.constant 31 : index
    %184 = memref.load %arg1[%c31] : memref<98xf32, #tpu.memory_space<smem>>
    %185 = vector.extract_strided_slice %168 {offsets = [0, 3], sizes = [16, 16], strides = [1, 1]} : vector<16x22xf32> to vector<16x16xf32>
    %186 = vector.broadcast %184 : f32 to vector<16x16xf32>
    %187 = arith.mulf %186, %185 : vector<16x16xf32>
    %188 = arith.addf %183, %187 : vector<16x16xf32>
    %c32 = arith.constant 32 : index
    %189 = memref.load %arg1[%c32] : memref<98xf32, #tpu.memory_space<smem>>
    %190 = vector.extract_strided_slice %168 {offsets = [0, 4], sizes = [16, 16], strides = [1, 1]} : vector<16x22xf32> to vector<16x16xf32>
    %191 = vector.broadcast %189 : f32 to vector<16x16xf32>
    %192 = arith.mulf %191, %190 : vector<16x16xf32>
    %193 = arith.addf %188, %192 : vector<16x16xf32>
    %c33 = arith.constant 33 : index
    %194 = memref.load %arg1[%c33] : memref<98xf32, #tpu.memory_space<smem>>
    %195 = vector.extract_strided_slice %168 {offsets = [0, 5], sizes = [16, 16], strides = [1, 1]} : vector<16x22xf32> to vector<16x16xf32>
    %196 = vector.broadcast %194 : f32 to vector<16x16xf32>
    %197 = arith.mulf %196, %195 : vector<16x16xf32>
    %198 = arith.addf %193, %197 : vector<16x16xf32>
    %c34 = arith.constant 34 : index
    %199 = memref.load %arg1[%c34] : memref<98xf32, #tpu.memory_space<smem>>
    %200 = vector.extract_strided_slice %168 {offsets = [0, 6], sizes = [16, 16], strides = [1, 1]} : vector<16x22xf32> to vector<16x16xf32>
    %201 = vector.broadcast %199 : f32 to vector<16x16xf32>
    %202 = arith.mulf %201, %200 : vector<16x16xf32>
    %203 = arith.addf %198, %202 : vector<16x16xf32>
    %c0_42 = arith.constant 0 : index
    %c5_43 = arith.constant 5 : index
    %c0_44 = arith.constant 0 : index
    %204 = vector.load %arg4[%c0_42, %c5_43, %c0_44] : memref<2x22x22xf32, #tpu.memory_space<vmem>>, vector<1x16x22xf32>
    %205 = vector.shape_cast %204 : vector<1x16x22xf32> to vector<16x22xf32>
    %c35 = arith.constant 35 : index
    %206 = memref.load %arg1[%c35] : memref<98xf32, #tpu.memory_space<smem>>
    %207 = vector.extract_strided_slice %205 {offsets = [0, 0], sizes = [16, 16], strides = [1, 1]} : vector<16x22xf32> to vector<16x16xf32>
    %208 = vector.broadcast %206 : f32 to vector<16x16xf32>
    %209 = arith.mulf %208, %207 : vector<16x16xf32>
    %210 = arith.addf %203, %209 : vector<16x16xf32>
    %c36 = arith.constant 36 : index
    %211 = memref.load %arg1[%c36] : memref<98xf32, #tpu.memory_space<smem>>
    %212 = vector.extract_strided_slice %205 {offsets = [0, 1], sizes = [16, 16], strides = [1, 1]} : vector<16x22xf32> to vector<16x16xf32>
    %213 = vector.broadcast %211 : f32 to vector<16x16xf32>
    %214 = arith.mulf %213, %212 : vector<16x16xf32>
    %215 = arith.addf %210, %214 : vector<16x16xf32>
    %c37 = arith.constant 37 : index
    %216 = memref.load %arg1[%c37] : memref<98xf32, #tpu.memory_space<smem>>
    %217 = vector.extract_strided_slice %205 {offsets = [0, 2], sizes = [16, 16], strides = [1, 1]} : vector<16x22xf32> to vector<16x16xf32>
    %218 = vector.broadcast %216 : f32 to vector<16x16xf32>
    %219 = arith.mulf %218, %217 : vector<16x16xf32>
    %220 = arith.addf %215, %219 : vector<16x16xf32>
    %c38 = arith.constant 38 : index
    %221 = memref.load %arg1[%c38] : memref<98xf32, #tpu.memory_space<smem>>
    %222 = vector.extract_strided_slice %205 {offsets = [0, 3], sizes = [16, 16], strides = [1, 1]} : vector<16x22xf32> to vector<16x16xf32>
    %223 = vector.broadcast %221 : f32 to vector<16x16xf32>
    %224 = arith.mulf %223, %222 : vector<16x16xf32>
    %225 = arith.addf %220, %224 : vector<16x16xf32>
    %c39 = arith.constant 39 : index
    %226 = memref.load %arg1[%c39] : memref<98xf32, #tpu.memory_space<smem>>
    %227 = vector.extract_strided_slice %205 {offsets = [0, 4], sizes = [16, 16], strides = [1, 1]} : vector<16x22xf32> to vector<16x16xf32>
    %228 = vector.broadcast %226 : f32 to vector<16x16xf32>
    %229 = arith.mulf %228, %227 : vector<16x16xf32>
    %230 = arith.addf %225, %229 : vector<16x16xf32>
    %c40 = arith.constant 40 : index
    %231 = memref.load %arg1[%c40] : memref<98xf32, #tpu.memory_space<smem>>
    %232 = vector.extract_strided_slice %205 {offsets = [0, 5], sizes = [16, 16], strides = [1, 1]} : vector<16x22xf32> to vector<16x16xf32>
    %233 = vector.broadcast %231 : f32 to vector<16x16xf32>
    %234 = arith.mulf %233, %232 : vector<16x16xf32>
    %235 = arith.addf %230, %234 : vector<16x16xf32>
    %c41 = arith.constant 41 : index
    %236 = memref.load %arg1[%c41] : memref<98xf32, #tpu.memory_space<smem>>
    %237 = vector.extract_strided_slice %205 {offsets = [0, 6], sizes = [16, 16], strides = [1, 1]} : vector<16x22xf32> to vector<16x16xf32>
    %238 = vector.broadcast %236 : f32 to vector<16x16xf32>
    %239 = arith.mulf %238, %237 : vector<16x16xf32>
    %240 = arith.addf %235, %239 : vector<16x16xf32>
    %c0_45 = arith.constant 0 : index
    %c6_46 = arith.constant 6 : index
    %c0_47 = arith.constant 0 : index
    %241 = vector.load %arg4[%c0_45, %c6_46, %c0_47] : memref<2x22x22xf32, #tpu.memory_space<vmem>>, vector<1x16x22xf32>
    %242 = vector.shape_cast %241 : vector<1x16x22xf32> to vector<16x22xf32>
    %c42 = arith.constant 42 : index
    %243 = memref.load %arg1[%c42] : memref<98xf32, #tpu.memory_space<smem>>
    %244 = vector.extract_strided_slice %242 {offsets = [0, 0], sizes = [16, 16], strides = [1, 1]} : vector<16x22xf32> to vector<16x16xf32>
    %245 = vector.broadcast %243 : f32 to vector<16x16xf32>
    %246 = arith.mulf %245, %244 : vector<16x16xf32>
    %247 = arith.addf %240, %246 : vector<16x16xf32>
    %c43 = arith.constant 43 : index
    %248 = memref.load %arg1[%c43] : memref<98xf32, #tpu.memory_space<smem>>
    %249 = vector.extract_strided_slice %242 {offsets = [0, 1], sizes = [16, 16], strides = [1, 1]} : vector<16x22xf32> to vector<16x16xf32>
    %250 = vector.broadcast %248 : f32 to vector<16x16xf32>
    %251 = arith.mulf %250, %249 : vector<16x16xf32>
    %252 = arith.addf %247, %251 : vector<16x16xf32>
    %c44 = arith.constant 44 : index
    %253 = memref.load %arg1[%c44] : memref<98xf32, #tpu.memory_space<smem>>
    %254 = vector.extract_strided_slice %242 {offsets = [0, 2], sizes = [16, 16], strides = [1, 1]} : vector<16x22xf32> to vector<16x16xf32>
    %255 = vector.broadcast %253 : f32 to vector<16x16xf32>
    %256 = arith.mulf %255, %254 : vector<16x16xf32>
    %257 = arith.addf %252, %256 : vector<16x16xf32>
    %c45 = arith.constant 45 : index
    %258 = memref.load %arg1[%c45] : memref<98xf32, #tpu.memory_space<smem>>
    %259 = vector.extract_strided_slice %242 {offsets = [0, 3], sizes = [16, 16], strides = [1, 1]} : vector<16x22xf32> to vector<16x16xf32>
    %260 = vector.broadcast %258 : f32 to vector<16x16xf32>
    %261 = arith.mulf %260, %259 : vector<16x16xf32>
    %262 = arith.addf %257, %261 : vector<16x16xf32>
    %c46 = arith.constant 46 : index
    %263 = memref.load %arg1[%c46] : memref<98xf32, #tpu.memory_space<smem>>
    %264 = vector.extract_strided_slice %242 {offsets = [0, 4], sizes = [16, 16], strides = [1, 1]} : vector<16x22xf32> to vector<16x16xf32>
    %265 = vector.broadcast %263 : f32 to vector<16x16xf32>
    %266 = arith.mulf %265, %264 : vector<16x16xf32>
    %267 = arith.addf %262, %266 : vector<16x16xf32>
    %c47 = arith.constant 47 : index
    %268 = memref.load %arg1[%c47] : memref<98xf32, #tpu.memory_space<smem>>
    %269 = vector.extract_strided_slice %242 {offsets = [0, 5], sizes = [16, 16], strides = [1, 1]} : vector<16x22xf32> to vector<16x16xf32>
    %270 = vector.broadcast %268 : f32 to vector<16x16xf32>
    %271 = arith.mulf %270, %269 : vector<16x16xf32>
    %272 = arith.addf %267, %271 : vector<16x16xf32>
    %c48 = arith.constant 48 : index
    %273 = memref.load %arg1[%c48] : memref<98xf32, #tpu.memory_space<smem>>
    %274 = vector.extract_strided_slice %242 {offsets = [0, 6], sizes = [16, 16], strides = [1, 1]} : vector<16x22xf32> to vector<16x16xf32>
    %275 = vector.broadcast %273 : f32 to vector<16x16xf32>
    %276 = arith.mulf %275, %274 : vector<16x16xf32>
    %277 = arith.addf %272, %276 : vector<16x16xf32>
    %c1_48 = arith.constant 1 : index
    %c0_49 = arith.constant 0 : index
    %c0_50 = arith.constant 0 : index
    %278 = vector.load %arg4[%c1_48, %c0_49, %c0_50] : memref<2x22x22xf32, #tpu.memory_space<vmem>>, vector<1x16x22xf32>
    %279 = vector.shape_cast %278 : vector<1x16x22xf32> to vector<16x22xf32>
    %c49 = arith.constant 49 : index
    %280 = memref.load %arg1[%c49] : memref<98xf32, #tpu.memory_space<smem>>
    %281 = vector.extract_strided_slice %279 {offsets = [0, 0], sizes = [16, 16], strides = [1, 1]} : vector<16x22xf32> to vector<16x16xf32>
    %282 = vector.broadcast %280 : f32 to vector<16x16xf32>
    %283 = arith.mulf %282, %281 : vector<16x16xf32>
    %284 = arith.addf %277, %283 : vector<16x16xf32>
    %c50 = arith.constant 50 : index
    %285 = memref.load %arg1[%c50] : memref<98xf32, #tpu.memory_space<smem>>
    %286 = vector.extract_strided_slice %279 {offsets = [0, 1], sizes = [16, 16], strides = [1, 1]} : vector<16x22xf32> to vector<16x16xf32>
    %287 = vector.broadcast %285 : f32 to vector<16x16xf32>
    %288 = arith.mulf %287, %286 : vector<16x16xf32>
    %289 = arith.addf %284, %288 : vector<16x16xf32>
    %c51 = arith.constant 51 : index
    %290 = memref.load %arg1[%c51] : memref<98xf32, #tpu.memory_space<smem>>
    %291 = vector.extract_strided_slice %279 {offsets = [0, 2], sizes = [16, 16], strides = [1, 1]} : vector<16x22xf32> to vector<16x16xf32>
    %292 = vector.broadcast %290 : f32 to vector<16x16xf32>
    %293 = arith.mulf %292, %291 : vector<16x16xf32>
    %294 = arith.addf %289, %293 : vector<16x16xf32>
    %c52 = arith.constant 52 : index
    %295 = memref.load %arg1[%c52] : memref<98xf32, #tpu.memory_space<smem>>
    %296 = vector.extract_strided_slice %279 {offsets = [0, 3], sizes = [16, 16], strides = [1, 1]} : vector<16x22xf32> to vector<16x16xf32>
    %297 = vector.broadcast %295 : f32 to vector<16x16xf32>
    %298 = arith.mulf %297, %296 : vector<16x16xf32>
    %299 = arith.addf %294, %298 : vector<16x16xf32>
    %c53 = arith.constant 53 : index
    %300 = memref.load %arg1[%c53] : memref<98xf32, #tpu.memory_space<smem>>
    %301 = vector.extract_strided_slice %279 {offsets = [0, 4], sizes = [16, 16], strides = [1, 1]} : vector<16x22xf32> to vector<16x16xf32>
    %302 = vector.broadcast %300 : f32 to vector<16x16xf32>
    %303 = arith.mulf %302, %301 : vector<16x16xf32>
    %304 = arith.addf %299, %303 : vector<16x16xf32>
    %c54 = arith.constant 54 : index
    %305 = memref.load %arg1[%c54] : memref<98xf32, #tpu.memory_space<smem>>
    %306 = vector.extract_strided_slice %279 {offsets = [0, 5], sizes = [16, 16], strides = [1, 1]} : vector<16x22xf32> to vector<16x16xf32>
    %307 = vector.broadcast %305 : f32 to vector<16x16xf32>
    %308 = arith.mulf %307, %306 : vector<16x16xf32>
    %309 = arith.addf %304, %308 : vector<16x16xf32>
    %c55 = arith.constant 55 : index
    %310 = memref.load %arg1[%c55] : memref<98xf32, #tpu.memory_space<smem>>
    %311 = vector.extract_strided_slice %279 {offsets = [0, 6], sizes = [16, 16], strides = [1, 1]} : vector<16x22xf32> to vector<16x16xf32>
    %312 = vector.broadcast %310 : f32 to vector<16x16xf32>
    %313 = arith.mulf %312, %311 : vector<16x16xf32>
    %314 = arith.addf %309, %313 : vector<16x16xf32>
    %c1_51 = arith.constant 1 : index
    %c1_52 = arith.constant 1 : index
    %c0_53 = arith.constant 0 : index
    %315 = vector.load %arg4[%c1_51, %c1_52, %c0_53] : memref<2x22x22xf32, #tpu.memory_space<vmem>>, vector<1x16x22xf32>
    %316 = vector.shape_cast %315 : vector<1x16x22xf32> to vector<16x22xf32>
    %c56 = arith.constant 56 : index
    %317 = memref.load %arg1[%c56] : memref<98xf32, #tpu.memory_space<smem>>
    %318 = vector.extract_strided_slice %316 {offsets = [0, 0], sizes = [16, 16], strides = [1, 1]} : vector<16x22xf32> to vector<16x16xf32>
    %319 = vector.broadcast %317 : f32 to vector<16x16xf32>
    %320 = arith.mulf %319, %318 : vector<16x16xf32>
    %321 = arith.addf %314, %320 : vector<16x16xf32>
    %c57 = arith.constant 57 : index
    %322 = memref.load %arg1[%c57] : memref<98xf32, #tpu.memory_space<smem>>
    %323 = vector.extract_strided_slice %316 {offsets = [0, 1], sizes = [16, 16], strides = [1, 1]} : vector<16x22xf32> to vector<16x16xf32>
    %324 = vector.broadcast %322 : f32 to vector<16x16xf32>
    %325 = arith.mulf %324, %323 : vector<16x16xf32>
    %326 = arith.addf %321, %325 : vector<16x16xf32>
    %c58 = arith.constant 58 : index
    %327 = memref.load %arg1[%c58] : memref<98xf32, #tpu.memory_space<smem>>
    %328 = vector.extract_strided_slice %316 {offsets = [0, 2], sizes = [16, 16], strides = [1, 1]} : vector<16x22xf32> to vector<16x16xf32>
    %329 = vector.broadcast %327 : f32 to vector<16x16xf32>
    %330 = arith.mulf %329, %328 : vector<16x16xf32>
    %331 = arith.addf %326, %330 : vector<16x16xf32>
    %c59 = arith.constant 59 : index
    %332 = memref.load %arg1[%c59] : memref<98xf32, #tpu.memory_space<smem>>
    %333 = vector.extract_strided_slice %316 {offsets = [0, 3], sizes = [16, 16], strides = [1, 1]} : vector<16x22xf32> to vector<16x16xf32>
    %334 = vector.broadcast %332 : f32 to vector<16x16xf32>
    %335 = arith.mulf %334, %333 : vector<16x16xf32>
    %336 = arith.addf %331, %335 : vector<16x16xf32>
    %c60 = arith.constant 60 : index
    %337 = memref.load %arg1[%c60] : memref<98xf32, #tpu.memory_space<smem>>
    %338 = vector.extract_strided_slice %316 {offsets = [0, 4], sizes = [16, 16], strides = [1, 1]} : vector<16x22xf32> to vector<16x16xf32>
    %339 = vector.broadcast %337 : f32 to vector<16x16xf32>
    %340 = arith.mulf %339, %338 : vector<16x16xf32>
    %341 = arith.addf %336, %340 : vector<16x16xf32>
    %c61 = arith.constant 61 : index
    %342 = memref.load %arg1[%c61] : memref<98xf32, #tpu.memory_space<smem>>
    %343 = vector.extract_strided_slice %316 {offsets = [0, 5], sizes = [16, 16], strides = [1, 1]} : vector<16x22xf32> to vector<16x16xf32>
    %344 = vector.broadcast %342 : f32 to vector<16x16xf32>
    %345 = arith.mulf %344, %343 : vector<16x16xf32>
    %346 = arith.addf %341, %345 : vector<16x16xf32>
    %c62 = arith.constant 62 : index
    %347 = memref.load %arg1[%c62] : memref<98xf32, #tpu.memory_space<smem>>
    %348 = vector.extract_strided_slice %316 {offsets = [0, 6], sizes = [16, 16], strides = [1, 1]} : vector<16x22xf32> to vector<16x16xf32>
    %349 = vector.broadcast %347 : f32 to vector<16x16xf32>
    %350 = arith.mulf %349, %348 : vector<16x16xf32>
    %351 = arith.addf %346, %350 : vector<16x16xf32>
    %c1_54 = arith.constant 1 : index
    %c2_55 = arith.constant 2 : index
    %c0_56 = arith.constant 0 : index
    %352 = vector.load %arg4[%c1_54, %c2_55, %c0_56] : memref<2x22x22xf32, #tpu.memory_space<vmem>>, vector<1x16x22xf32>
    %353 = vector.shape_cast %352 : vector<1x16x22xf32> to vector<16x22xf32>
    %c63 = arith.constant 63 : index
    %354 = memref.load %arg1[%c63] : memref<98xf32, #tpu.memory_space<smem>>
    %355 = vector.extract_strided_slice %353 {offsets = [0, 0], sizes = [16, 16], strides = [1, 1]} : vector<16x22xf32> to vector<16x16xf32>
    %356 = vector.broadcast %354 : f32 to vector<16x16xf32>
    %357 = arith.mulf %356, %355 : vector<16x16xf32>
    %358 = arith.addf %351, %357 : vector<16x16xf32>
    %c64 = arith.constant 64 : index
    %359 = memref.load %arg1[%c64] : memref<98xf32, #tpu.memory_space<smem>>
    %360 = vector.extract_strided_slice %353 {offsets = [0, 1], sizes = [16, 16], strides = [1, 1]} : vector<16x22xf32> to vector<16x16xf32>
    %361 = vector.broadcast %359 : f32 to vector<16x16xf32>
    %362 = arith.mulf %361, %360 : vector<16x16xf32>
    %363 = arith.addf %358, %362 : vector<16x16xf32>
    %c65 = arith.constant 65 : index
    %364 = memref.load %arg1[%c65] : memref<98xf32, #tpu.memory_space<smem>>
    %365 = vector.extract_strided_slice %353 {offsets = [0, 2], sizes = [16, 16], strides = [1, 1]} : vector<16x22xf32> to vector<16x16xf32>
    %366 = vector.broadcast %364 : f32 to vector<16x16xf32>
    %367 = arith.mulf %366, %365 : vector<16x16xf32>
    %368 = arith.addf %363, %367 : vector<16x16xf32>
    %c66 = arith.constant 66 : index
    %369 = memref.load %arg1[%c66] : memref<98xf32, #tpu.memory_space<smem>>
    %370 = vector.extract_strided_slice %353 {offsets = [0, 3], sizes = [16, 16], strides = [1, 1]} : vector<16x22xf32> to vector<16x16xf32>
    %371 = vector.broadcast %369 : f32 to vector<16x16xf32>
    %372 = arith.mulf %371, %370 : vector<16x16xf32>
    %373 = arith.addf %368, %372 : vector<16x16xf32>
    %c67 = arith.constant 67 : index
    %374 = memref.load %arg1[%c67] : memref<98xf32, #tpu.memory_space<smem>>
    %375 = vector.extract_strided_slice %353 {offsets = [0, 4], sizes = [16, 16], strides = [1, 1]} : vector<16x22xf32> to vector<16x16xf32>
    %376 = vector.broadcast %374 : f32 to vector<16x16xf32>
    %377 = arith.mulf %376, %375 : vector<16x16xf32>
    %378 = arith.addf %373, %377 : vector<16x16xf32>
    %c68 = arith.constant 68 : index
    %379 = memref.load %arg1[%c68] : memref<98xf32, #tpu.memory_space<smem>>
    %380 = vector.extract_strided_slice %353 {offsets = [0, 5], sizes = [16, 16], strides = [1, 1]} : vector<16x22xf32> to vector<16x16xf32>
    %381 = vector.broadcast %379 : f32 to vector<16x16xf32>
    %382 = arith.mulf %381, %380 : vector<16x16xf32>
    %383 = arith.addf %378, %382 : vector<16x16xf32>
    %c69 = arith.constant 69 : index
    %384 = memref.load %arg1[%c69] : memref<98xf32, #tpu.memory_space<smem>>
    %385 = vector.extract_strided_slice %353 {offsets = [0, 6], sizes = [16, 16], strides = [1, 1]} : vector<16x22xf32> to vector<16x16xf32>
    %386 = vector.broadcast %384 : f32 to vector<16x16xf32>
    %387 = arith.mulf %386, %385 : vector<16x16xf32>
    %388 = arith.addf %383, %387 : vector<16x16xf32>
    %c1_57 = arith.constant 1 : index
    %c3_58 = arith.constant 3 : index
    %c0_59 = arith.constant 0 : index
    %389 = vector.load %arg4[%c1_57, %c3_58, %c0_59] : memref<2x22x22xf32, #tpu.memory_space<vmem>>, vector<1x16x22xf32>
    %390 = vector.shape_cast %389 : vector<1x16x22xf32> to vector<16x22xf32>
    %c70 = arith.constant 70 : index
    %391 = memref.load %arg1[%c70] : memref<98xf32, #tpu.memory_space<smem>>
    %392 = vector.extract_strided_slice %390 {offsets = [0, 0], sizes = [16, 16], strides = [1, 1]} : vector<16x22xf32> to vector<16x16xf32>
    %393 = vector.broadcast %391 : f32 to vector<16x16xf32>
    %394 = arith.mulf %393, %392 : vector<16x16xf32>
    %395 = arith.addf %388, %394 : vector<16x16xf32>
    %c71 = arith.constant 71 : index
    %396 = memref.load %arg1[%c71] : memref<98xf32, #tpu.memory_space<smem>>
    %397 = vector.extract_strided_slice %390 {offsets = [0, 1], sizes = [16, 16], strides = [1, 1]} : vector<16x22xf32> to vector<16x16xf32>
    %398 = vector.broadcast %396 : f32 to vector<16x16xf32>
    %399 = arith.mulf %398, %397 : vector<16x16xf32>
    %400 = arith.addf %395, %399 : vector<16x16xf32>
    %c72 = arith.constant 72 : index
    %401 = memref.load %arg1[%c72] : memref<98xf32, #tpu.memory_space<smem>>
    %402 = vector.extract_strided_slice %390 {offsets = [0, 2], sizes = [16, 16], strides = [1, 1]} : vector<16x22xf32> to vector<16x16xf32>
    %403 = vector.broadcast %401 : f32 to vector<16x16xf32>
    %404 = arith.mulf %403, %402 : vector<16x16xf32>
    %405 = arith.addf %400, %404 : vector<16x16xf32>
    %c73 = arith.constant 73 : index
    %406 = memref.load %arg1[%c73] : memref<98xf32, #tpu.memory_space<smem>>
    %407 = vector.extract_strided_slice %390 {offsets = [0, 3], sizes = [16, 16], strides = [1, 1]} : vector<16x22xf32> to vector<16x16xf32>
    %408 = vector.broadcast %406 : f32 to vector<16x16xf32>
    %409 = arith.mulf %408, %407 : vector<16x16xf32>
    %410 = arith.addf %405, %409 : vector<16x16xf32>
    %c74 = arith.constant 74 : index
    %411 = memref.load %arg1[%c74] : memref<98xf32, #tpu.memory_space<smem>>
    %412 = vector.extract_strided_slice %390 {offsets = [0, 4], sizes = [16, 16], strides = [1, 1]} : vector<16x22xf32> to vector<16x16xf32>
    %413 = vector.broadcast %411 : f32 to vector<16x16xf32>
    %414 = arith.mulf %413, %412 : vector<16x16xf32>
    %415 = arith.addf %410, %414 : vector<16x16xf32>
    %c75 = arith.constant 75 : index
    %416 = memref.load %arg1[%c75] : memref<98xf32, #tpu.memory_space<smem>>
    %417 = vector.extract_strided_slice %390 {offsets = [0, 5], sizes = [16, 16], strides = [1, 1]} : vector<16x22xf32> to vector<16x16xf32>
    %418 = vector.broadcast %416 : f32 to vector<16x16xf32>
    %419 = arith.mulf %418, %417 : vector<16x16xf32>
    %420 = arith.addf %415, %419 : vector<16x16xf32>
    %c76 = arith.constant 76 : index
    %421 = memref.load %arg1[%c76] : memref<98xf32, #tpu.memory_space<smem>>
    %422 = vector.extract_strided_slice %390 {offsets = [0, 6], sizes = [16, 16], strides = [1, 1]} : vector<16x22xf32> to vector<16x16xf32>
    %423 = vector.broadcast %421 : f32 to vector<16x16xf32>
    %424 = arith.mulf %423, %422 : vector<16x16xf32>
    %425 = arith.addf %420, %424 : vector<16x16xf32>
    %c1_60 = arith.constant 1 : index
    %c4_61 = arith.constant 4 : index
    %c0_62 = arith.constant 0 : index
    %426 = vector.load %arg4[%c1_60, %c4_61, %c0_62] : memref<2x22x22xf32, #tpu.memory_space<vmem>>, vector<1x16x22xf32>
    %427 = vector.shape_cast %426 : vector<1x16x22xf32> to vector<16x22xf32>
    %c77 = arith.constant 77 : index
    %428 = memref.load %arg1[%c77] : memref<98xf32, #tpu.memory_space<smem>>
    %429 = vector.extract_strided_slice %427 {offsets = [0, 0], sizes = [16, 16], strides = [1, 1]} : vector<16x22xf32> to vector<16x16xf32>
    %430 = vector.broadcast %428 : f32 to vector<16x16xf32>
    %431 = arith.mulf %430, %429 : vector<16x16xf32>
    %432 = arith.addf %425, %431 : vector<16x16xf32>
    %c78 = arith.constant 78 : index
    %433 = memref.load %arg1[%c78] : memref<98xf32, #tpu.memory_space<smem>>
    %434 = vector.extract_strided_slice %427 {offsets = [0, 1], sizes = [16, 16], strides = [1, 1]} : vector<16x22xf32> to vector<16x16xf32>
    %435 = vector.broadcast %433 : f32 to vector<16x16xf32>
    %436 = arith.mulf %435, %434 : vector<16x16xf32>
    %437 = arith.addf %432, %436 : vector<16x16xf32>
    %c79 = arith.constant 79 : index
    %438 = memref.load %arg1[%c79] : memref<98xf32, #tpu.memory_space<smem>>
    %439 = vector.extract_strided_slice %427 {offsets = [0, 2], sizes = [16, 16], strides = [1, 1]} : vector<16x22xf32> to vector<16x16xf32>
    %440 = vector.broadcast %438 : f32 to vector<16x16xf32>
    %441 = arith.mulf %440, %439 : vector<16x16xf32>
    %442 = arith.addf %437, %441 : vector<16x16xf32>
    %c80 = arith.constant 80 : index
    %443 = memref.load %arg1[%c80] : memref<98xf32, #tpu.memory_space<smem>>
    %444 = vector.extract_strided_slice %427 {offsets = [0, 3], sizes = [16, 16], strides = [1, 1]} : vector<16x22xf32> to vector<16x16xf32>
    %445 = vector.broadcast %443 : f32 to vector<16x16xf32>
    %446 = arith.mulf %445, %444 : vector<16x16xf32>
    %447 = arith.addf %442, %446 : vector<16x16xf32>
    %c81 = arith.constant 81 : index
    %448 = memref.load %arg1[%c81] : memref<98xf32, #tpu.memory_space<smem>>
    %449 = vector.extract_strided_slice %427 {offsets = [0, 4], sizes = [16, 16], strides = [1, 1]} : vector<16x22xf32> to vector<16x16xf32>
    %450 = vector.broadcast %448 : f32 to vector<16x16xf32>
    %451 = arith.mulf %450, %449 : vector<16x16xf32>
    %452 = arith.addf %447, %451 : vector<16x16xf32>
    %c82 = arith.constant 82 : index
    %453 = memref.load %arg1[%c82] : memref<98xf32, #tpu.memory_space<smem>>
    %454 = vector.extract_strided_slice %427 {offsets = [0, 5], sizes = [16, 16], strides = [1, 1]} : vector<16x22xf32> to vector<16x16xf32>
    %455 = vector.broadcast %453 : f32 to vector<16x16xf32>
    %456 = arith.mulf %455, %454 : vector<16x16xf32>
    %457 = arith.addf %452, %456 : vector<16x16xf32>
    %c83 = arith.constant 83 : index
    %458 = memref.load %arg1[%c83] : memref<98xf32, #tpu.memory_space<smem>>
    %459 = vector.extract_strided_slice %427 {offsets = [0, 6], sizes = [16, 16], strides = [1, 1]} : vector<16x22xf32> to vector<16x16xf32>
    %460 = vector.broadcast %458 : f32 to vector<16x16xf32>
    %461 = arith.mulf %460, %459 : vector<16x16xf32>
    %462 = arith.addf %457, %461 : vector<16x16xf32>
    %c1_63 = arith.constant 1 : index
    %c5_64 = arith.constant 5 : index
    %c0_65 = arith.constant 0 : index
    %463 = vector.load %arg4[%c1_63, %c5_64, %c0_65] : memref<2x22x22xf32, #tpu.memory_space<vmem>>, vector<1x16x22xf32>
    %464 = vector.shape_cast %463 : vector<1x16x22xf32> to vector<16x22xf32>
    %c84 = arith.constant 84 : index
    %465 = memref.load %arg1[%c84] : memref<98xf32, #tpu.memory_space<smem>>
    %466 = vector.extract_strided_slice %464 {offsets = [0, 0], sizes = [16, 16], strides = [1, 1]} : vector<16x22xf32> to vector<16x16xf32>
    %467 = vector.broadcast %465 : f32 to vector<16x16xf32>
    %468 = arith.mulf %467, %466 : vector<16x16xf32>
    %469 = arith.addf %462, %468 : vector<16x16xf32>
    %c85 = arith.constant 85 : index
    %470 = memref.load %arg1[%c85] : memref<98xf32, #tpu.memory_space<smem>>
    %471 = vector.extract_strided_slice %464 {offsets = [0, 1], sizes = [16, 16], strides = [1, 1]} : vector<16x22xf32> to vector<16x16xf32>
    %472 = vector.broadcast %470 : f32 to vector<16x16xf32>
    %473 = arith.mulf %472, %471 : vector<16x16xf32>
    %474 = arith.addf %469, %473 : vector<16x16xf32>
    %c86 = arith.constant 86 : index
    %475 = memref.load %arg1[%c86] : memref<98xf32, #tpu.memory_space<smem>>
    %476 = vector.extract_strided_slice %464 {offsets = [0, 2], sizes = [16, 16], strides = [1, 1]} : vector<16x22xf32> to vector<16x16xf32>
    %477 = vector.broadcast %475 : f32 to vector<16x16xf32>
    %478 = arith.mulf %477, %476 : vector<16x16xf32>
    %479 = arith.addf %474, %478 : vector<16x16xf32>
    %c87 = arith.constant 87 : index
    %480 = memref.load %arg1[%c87] : memref<98xf32, #tpu.memory_space<smem>>
    %481 = vector.extract_strided_slice %464 {offsets = [0, 3], sizes = [16, 16], strides = [1, 1]} : vector<16x22xf32> to vector<16x16xf32>
    %482 = vector.broadcast %480 : f32 to vector<16x16xf32>
    %483 = arith.mulf %482, %481 : vector<16x16xf32>
    %484 = arith.addf %479, %483 : vector<16x16xf32>
    %c88 = arith.constant 88 : index
    %485 = memref.load %arg1[%c88] : memref<98xf32, #tpu.memory_space<smem>>
    %486 = vector.extract_strided_slice %464 {offsets = [0, 4], sizes = [16, 16], strides = [1, 1]} : vector<16x22xf32> to vector<16x16xf32>
    %487 = vector.broadcast %485 : f32 to vector<16x16xf32>
    %488 = arith.mulf %487, %486 : vector<16x16xf32>
    %489 = arith.addf %484, %488 : vector<16x16xf32>
    %c89 = arith.constant 89 : index
    %490 = memref.load %arg1[%c89] : memref<98xf32, #tpu.memory_space<smem>>
    %491 = vector.extract_strided_slice %464 {offsets = [0, 5], sizes = [16, 16], strides = [1, 1]} : vector<16x22xf32> to vector<16x16xf32>
    %492 = vector.broadcast %490 : f32 to vector<16x16xf32>
    %493 = arith.mulf %492, %491 : vector<16x16xf32>
    %494 = arith.addf %489, %493 : vector<16x16xf32>
    %c90 = arith.constant 90 : index
    %495 = memref.load %arg1[%c90] : memref<98xf32, #tpu.memory_space<smem>>
    %496 = vector.extract_strided_slice %464 {offsets = [0, 6], sizes = [16, 16], strides = [1, 1]} : vector<16x22xf32> to vector<16x16xf32>
    %497 = vector.broadcast %495 : f32 to vector<16x16xf32>
    %498 = arith.mulf %497, %496 : vector<16x16xf32>
    %499 = arith.addf %494, %498 : vector<16x16xf32>
    %c1_66 = arith.constant 1 : index
    %c6_67 = arith.constant 6 : index
    %c0_68 = arith.constant 0 : index
    %500 = vector.load %arg4[%c1_66, %c6_67, %c0_68] : memref<2x22x22xf32, #tpu.memory_space<vmem>>, vector<1x16x22xf32>
    %501 = vector.shape_cast %500 : vector<1x16x22xf32> to vector<16x22xf32>
    %c91 = arith.constant 91 : index
    %502 = memref.load %arg1[%c91] : memref<98xf32, #tpu.memory_space<smem>>
    %503 = vector.extract_strided_slice %501 {offsets = [0, 0], sizes = [16, 16], strides = [1, 1]} : vector<16x22xf32> to vector<16x16xf32>
    %504 = vector.broadcast %502 : f32 to vector<16x16xf32>
    %505 = arith.mulf %504, %503 : vector<16x16xf32>
    %506 = arith.addf %499, %505 : vector<16x16xf32>
    %c92 = arith.constant 92 : index
    %507 = memref.load %arg1[%c92] : memref<98xf32, #tpu.memory_space<smem>>
    %508 = vector.extract_strided_slice %501 {offsets = [0, 1], sizes = [16, 16], strides = [1, 1]} : vector<16x22xf32> to vector<16x16xf32>
    %509 = vector.broadcast %507 : f32 to vector<16x16xf32>
    %510 = arith.mulf %509, %508 : vector<16x16xf32>
    %511 = arith.addf %506, %510 : vector<16x16xf32>
    %c93 = arith.constant 93 : index
    %512 = memref.load %arg1[%c93] : memref<98xf32, #tpu.memory_space<smem>>
    %513 = vector.extract_strided_slice %501 {offsets = [0, 2], sizes = [16, 16], strides = [1, 1]} : vector<16x22xf32> to vector<16x16xf32>
    %514 = vector.broadcast %512 : f32 to vector<16x16xf32>
    %515 = arith.mulf %514, %513 : vector<16x16xf32>
    %516 = arith.addf %511, %515 : vector<16x16xf32>
    %c94 = arith.constant 94 : index
    %517 = memref.load %arg1[%c94] : memref<98xf32, #tpu.memory_space<smem>>
    %518 = vector.extract_strided_slice %501 {offsets = [0, 3], sizes = [16, 16], strides = [1, 1]} : vector<16x22xf32> to vector<16x16xf32>
    %519 = vector.broadcast %517 : f32 to vector<16x16xf32>
    %520 = arith.mulf %519, %518 : vector<16x16xf32>
    %521 = arith.addf %516, %520 : vector<16x16xf32>
    %c95 = arith.constant 95 : index
    %522 = memref.load %arg1[%c95] : memref<98xf32, #tpu.memory_space<smem>>
    %523 = vector.extract_strided_slice %501 {offsets = [0, 4], sizes = [16, 16], strides = [1, 1]} : vector<16x22xf32> to vector<16x16xf32>
    %524 = vector.broadcast %522 : f32 to vector<16x16xf32>
    %525 = arith.mulf %524, %523 : vector<16x16xf32>
    %526 = arith.addf %521, %525 : vector<16x16xf32>
    %c96 = arith.constant 96 : index
    %527 = memref.load %arg1[%c96] : memref<98xf32, #tpu.memory_space<smem>>
    %528 = vector.extract_strided_slice %501 {offsets = [0, 5], sizes = [16, 16], strides = [1, 1]} : vector<16x22xf32> to vector<16x16xf32>
    %529 = vector.broadcast %527 : f32 to vector<16x16xf32>
    %530 = arith.mulf %529, %528 : vector<16x16xf32>
    %531 = arith.addf %526, %530 : vector<16x16xf32>
    %c97 = arith.constant 97 : index
    %532 = memref.load %arg1[%c97] : memref<98xf32, #tpu.memory_space<smem>>
    %533 = vector.extract_strided_slice %501 {offsets = [0, 6], sizes = [16, 16], strides = [1, 1]} : vector<16x22xf32> to vector<16x16xf32>
    %534 = vector.broadcast %532 : f32 to vector<16x16xf32>
    %535 = arith.mulf %534, %533 : vector<16x16xf32>
    %536 = arith.addf %531, %535 : vector<16x16xf32>
    %537 = arith.negf %536 : vector<16x16xf32>
    %538 = math.exp %537 : vector<16x16xf32>
    %cst_69 = arith.constant 1.000000e+00 : f32
    %539 = vector.broadcast %cst_69 : f32 to vector<16x16xf32>
    %540 = arith.addf %539, %538 : vector<16x16xf32>
    %541 = arith.divf %539, %540 : vector<16x16xf32>
    %c0_70 = arith.constant 0 : index
    %c0_71 = arith.constant 0 : index
    %c0_72 = arith.constant 0 : index
    %c0_73 = arith.constant 0 : index
    %542 = vector.load %arg3[%c0_70, %c0_71, %c0_72, %c0_73] : memref<2x1x16x16xf32, #tpu.memory_space<vmem>>, vector<1x1x16x16xf32>
    %543 = vector.shape_cast %542 : vector<1x1x16x16xf32> to vector<16x16xf32>
    %544 = vector.shape_cast %541 : vector<16x16xf32> to vector<1x1x16x16xf32>
    tpu.vector_store %arg3[%c0_70, %c0_71, %c0_72, %c0_73], %544 {strides = array<i32>} : memref<2x1x16x16xf32, #tpu.memory_space<vmem>>, vector<1x1x16x16xf32>,
    %c1_74 = arith.constant 1 : index
    %c0_75 = arith.constant 0 : index
    %c0_76 = arith.constant 0 : index
    %c0_77 = arith.constant 0 : index
    %545 = vector.load %arg2[%c1_74, %c0_75, %c0_76, %c0_77] : memref<2x4x16x16xf32, #tpu.memory_space<vmem>>, vector<1x1x16x16xf32>
    %546 = vector.shape_cast %545 : vector<1x1x16x16xf32> to vector<16x16xf32>
    %c1_i32_78 = arith.constant 1 : i32
    %c3_i32_79 = arith.constant 3 : i32
    %547 = arith.addi %c1_i32_78, %c3_i32_79 : i32
    %c1_i32_80 = arith.constant 1 : i32
    %548:2 = scf.for %arg5 = %c1_i32_78 to %547 step %c1_i32_80 iter_args(%arg6 = %546, %arg7 = %546) -> (vector<16x16xf32>, vector<16x16xf32>)  : i32 {
      %c1_235 = arith.constant 1 : index
      %1084 = arith.index_cast %arg5 : i32 to index
      %c0_236 = arith.constant 0 : index
      %c0_237 = arith.constant 0 : index
      %1085 = vector.load %arg2[%c1_235, %1084, %c0_236, %c0_237] : memref<2x4x16x16xf32, #tpu.memory_space<vmem>>, vector<1x1x16x16xf32>
      %1086 = vector.shape_cast %1085 : vector<1x1x16x16xf32> to vector<16x16xf32>
      %1087 = arith.addf %arg6, %1086 : vector<16x16xf32>
      %1088 = arith.maximumf %arg7, %1086 : vector<16x16xf32>
      scf.yield %1087, %1088 : vector<16x16xf32>, vector<16x16xf32>
    }
    %c3_i32_81 = arith.constant 3 : i32
    %cst_82 = arith.constant 2.500000e-01 : f32
    %549 = vector.broadcast %cst_82 : f32 to vector<16x16xf32>
    %550 = arith.mulf %548#0, %549 : vector<16x16xf32>
    %c0_83 = arith.constant 0 : index
    %c3_84 = arith.constant 3 : index
    %c3_85 = arith.constant 3 : index
    %551 = vector.load %arg4[%c0_83, %c3_84, %c3_85] : memref<2x22x22xf32, #tpu.memory_space<vmem>>, vector<1x16x16xf32>
    %552 = vector.shape_cast %551 : vector<1x16x16xf32> to vector<16x16xf32>
    %553 = vector.shape_cast %550 : vector<16x16xf32> to vector<1x16x16xf32>
    tpu.vector_store %arg4[%c0_83, %c3_84, %c3_85], %553 {strides = array<i32>} : memref<2x22x22xf32, #tpu.memory_space<vmem>>, vector<1x16x16xf32>,
    %c1_86 = arith.constant 1 : index
    %c3_87 = arith.constant 3 : index
    %c3_88 = arith.constant 3 : index
    %554 = vector.load %arg4[%c1_86, %c3_87, %c3_88] : memref<2x22x22xf32, #tpu.memory_space<vmem>>, vector<1x16x16xf32>
    %555 = vector.shape_cast %554 : vector<1x16x16xf32> to vector<16x16xf32>
    %556 = vector.shape_cast %548#1 : vector<16x16xf32> to vector<1x16x16xf32>
    tpu.vector_store %arg4[%c1_86, %c3_87, %c3_88], %556 {strides = array<i32>} : memref<2x22x22xf32, #tpu.memory_space<vmem>>, vector<1x16x16xf32>,
    %cst_89 = arith.constant 0.000000e+00 : f32
    %557 = vector.broadcast %cst_89 : f32 to vector<16x16xf32>
    %c0_90 = arith.constant 0 : index
    %c0_91 = arith.constant 0 : index
    %c0_92 = arith.constant 0 : index
    %558 = vector.load %arg4[%c0_90, %c0_91, %c0_92] : memref<2x22x22xf32, #tpu.memory_space<vmem>>, vector<1x16x22xf32>
    %559 = vector.shape_cast %558 : vector<1x16x22xf32> to vector<16x22xf32>
    %c0_93 = arith.constant 0 : index
    %560 = memref.load %arg1[%c0_93] : memref<98xf32, #tpu.memory_space<smem>>
    %561 = vector.extract_strided_slice %559 {offsets = [0, 0], sizes = [16, 16], strides = [1, 1]} : vector<16x22xf32> to vector<16x16xf32>
    %562 = vector.broadcast %560 : f32 to vector<16x16xf32>
    %563 = arith.mulf %562, %561 : vector<16x16xf32>
    %564 = arith.addf %557, %563 : vector<16x16xf32>
    %c1_94 = arith.constant 1 : index
    %565 = memref.load %arg1[%c1_94] : memref<98xf32, #tpu.memory_space<smem>>
    %566 = vector.extract_strided_slice %559 {offsets = [0, 1], sizes = [16, 16], strides = [1, 1]} : vector<16x22xf32> to vector<16x16xf32>
    %567 = vector.broadcast %565 : f32 to vector<16x16xf32>
    %568 = arith.mulf %567, %566 : vector<16x16xf32>
    %569 = arith.addf %564, %568 : vector<16x16xf32>
    %c2_95 = arith.constant 2 : index
    %570 = memref.load %arg1[%c2_95] : memref<98xf32, #tpu.memory_space<smem>>
    %571 = vector.extract_strided_slice %559 {offsets = [0, 2], sizes = [16, 16], strides = [1, 1]} : vector<16x22xf32> to vector<16x16xf32>
    %572 = vector.broadcast %570 : f32 to vector<16x16xf32>
    %573 = arith.mulf %572, %571 : vector<16x16xf32>
    %574 = arith.addf %569, %573 : vector<16x16xf32>
    %c3_96 = arith.constant 3 : index
    %575 = memref.load %arg1[%c3_96] : memref<98xf32, #tpu.memory_space<smem>>
    %576 = vector.extract_strided_slice %559 {offsets = [0, 3], sizes = [16, 16], strides = [1, 1]} : vector<16x22xf32> to vector<16x16xf32>
    %577 = vector.broadcast %575 : f32 to vector<16x16xf32>
    %578 = arith.mulf %577, %576 : vector<16x16xf32>
    %579 = arith.addf %574, %578 : vector<16x16xf32>
    %c4_97 = arith.constant 4 : index
    %580 = memref.load %arg1[%c4_97] : memref<98xf32, #tpu.memory_space<smem>>
    %581 = vector.extract_strided_slice %559 {offsets = [0, 4], sizes = [16, 16], strides = [1, 1]} : vector<16x22xf32> to vector<16x16xf32>
    %582 = vector.broadcast %580 : f32 to vector<16x16xf32>
    %583 = arith.mulf %582, %581 : vector<16x16xf32>
    %584 = arith.addf %579, %583 : vector<16x16xf32>
    %c5_98 = arith.constant 5 : index
    %585 = memref.load %arg1[%c5_98] : memref<98xf32, #tpu.memory_space<smem>>
    %586 = vector.extract_strided_slice %559 {offsets = [0, 5], sizes = [16, 16], strides = [1, 1]} : vector<16x22xf32> to vector<16x16xf32>
    %587 = vector.broadcast %585 : f32 to vector<16x16xf32>
    %588 = arith.mulf %587, %586 : vector<16x16xf32>
    %589 = arith.addf %584, %588 : vector<16x16xf32>
    %c6_99 = arith.constant 6 : index
    %590 = memref.load %arg1[%c6_99] : memref<98xf32, #tpu.memory_space<smem>>
    %591 = vector.extract_strided_slice %559 {offsets = [0, 6], sizes = [16, 16], strides = [1, 1]} : vector<16x22xf32> to vector<16x16xf32>
    %592 = vector.broadcast %590 : f32 to vector<16x16xf32>
    %593 = arith.mulf %592, %591 : vector<16x16xf32>
    %594 = arith.addf %589, %593 : vector<16x16xf32>
    %c0_100 = arith.constant 0 : index
    %c1_101 = arith.constant 1 : index
    %c0_102 = arith.constant 0 : index
    %595 = vector.load %arg4[%c0_100, %c1_101, %c0_102] : memref<2x22x22xf32, #tpu.memory_space<vmem>>, vector<1x16x22xf32>
    %596 = vector.shape_cast %595 : vector<1x16x22xf32> to vector<16x22xf32>
    %c7_103 = arith.constant 7 : index
    %597 = memref.load %arg1[%c7_103] : memref<98xf32, #tpu.memory_space<smem>>
    %598 = vector.extract_strided_slice %596 {offsets = [0, 0], sizes = [16, 16], strides = [1, 1]} : vector<16x22xf32> to vector<16x16xf32>
    %599 = vector.broadcast %597 : f32 to vector<16x16xf32>
    %600 = arith.mulf %599, %598 : vector<16x16xf32>
    %601 = arith.addf %594, %600 : vector<16x16xf32>
    %c8_104 = arith.constant 8 : index
    %602 = memref.load %arg1[%c8_104] : memref<98xf32, #tpu.memory_space<smem>>
    %603 = vector.extract_strided_slice %596 {offsets = [0, 1], sizes = [16, 16], strides = [1, 1]} : vector<16x22xf32> to vector<16x16xf32>
    %604 = vector.broadcast %602 : f32 to vector<16x16xf32>
    %605 = arith.mulf %604, %603 : vector<16x16xf32>
    %606 = arith.addf %601, %605 : vector<16x16xf32>
    %c9_105 = arith.constant 9 : index
    %607 = memref.load %arg1[%c9_105] : memref<98xf32, #tpu.memory_space<smem>>
    %608 = vector.extract_strided_slice %596 {offsets = [0, 2], sizes = [16, 16], strides = [1, 1]} : vector<16x22xf32> to vector<16x16xf32>
    %609 = vector.broadcast %607 : f32 to vector<16x16xf32>
    %610 = arith.mulf %609, %608 : vector<16x16xf32>
    %611 = arith.addf %606, %610 : vector<16x16xf32>
    %c10_106 = arith.constant 10 : index
    %612 = memref.load %arg1[%c10_106] : memref<98xf32, #tpu.memory_space<smem>>
    %613 = vector.extract_strided_slice %596 {offsets = [0, 3], sizes = [16, 16], strides = [1, 1]} : vector<16x22xf32> to vector<16x16xf32>
    %614 = vector.broadcast %612 : f32 to vector<16x16xf32>
    %615 = arith.mulf %614, %613 : vector<16x16xf32>
    %616 = arith.addf %611, %615 : vector<16x16xf32>
    %c11_107 = arith.constant 11 : index
    %617 = memref.load %arg1[%c11_107] : memref<98xf32, #tpu.memory_space<smem>>
    %618 = vector.extract_strided_slice %596 {offsets = [0, 4], sizes = [16, 16], strides = [1, 1]} : vector<16x22xf32> to vector<16x16xf32>
    %619 = vector.broadcast %617 : f32 to vector<16x16xf32>
    %620 = arith.mulf %619, %618 : vector<16x16xf32>
    %621 = arith.addf %616, %620 : vector<16x16xf32>
    %c12_108 = arith.constant 12 : index
    %622 = memref.load %arg1[%c12_108] : memref<98xf32, #tpu.memory_space<smem>>
    %623 = vector.extract_strided_slice %596 {offsets = [0, 5], sizes = [16, 16], strides = [1, 1]} : vector<16x22xf32> to vector<16x16xf32>
    %624 = vector.broadcast %622 : f32 to vector<16x16xf32>
    %625 = arith.mulf %624, %623 : vector<16x16xf32>
    %626 = arith.addf %621, %625 : vector<16x16xf32>
    %c13_109 = arith.constant 13 : index
    %627 = memref.load %arg1[%c13_109] : memref<98xf32, #tpu.memory_space<smem>>
    %628 = vector.extract_strided_slice %596 {offsets = [0, 6], sizes = [16, 16], strides = [1, 1]} : vector<16x22xf32> to vector<16x16xf32>
    %629 = vector.broadcast %627 : f32 to vector<16x16xf32>
    %630 = arith.mulf %629, %628 : vector<16x16xf32>
    %631 = arith.addf %626, %630 : vector<16x16xf32>
    %c0_110 = arith.constant 0 : index
    %c2_111 = arith.constant 2 : index
    %c0_112 = arith.constant 0 : index
    %632 = vector.load %arg4[%c0_110, %c2_111, %c0_112] : memref<2x22x22xf32, #tpu.memory_space<vmem>>, vector<1x16x22xf32>
    %633 = vector.shape_cast %632 : vector<1x16x22xf32> to vector<16x22xf32>
    %c14_113 = arith.constant 14 : index
    %634 = memref.load %arg1[%c14_113] : memref<98xf32, #tpu.memory_space<smem>>
    %635 = vector.extract_strided_slice %633 {offsets = [0, 0], sizes = [16, 16], strides = [1, 1]} : vector<16x22xf32> to vector<16x16xf32>
    %636 = vector.broadcast %634 : f32 to vector<16x16xf32>
    %637 = arith.mulf %636, %635 : vector<16x16xf32>
    %638 = arith.addf %631, %637 : vector<16x16xf32>
    %c15_114 = arith.constant 15 : index
    %639 = memref.load %arg1[%c15_114] : memref<98xf32, #tpu.memory_space<smem>>
    %640 = vector.extract_strided_slice %633 {offsets = [0, 1], sizes = [16, 16], strides = [1, 1]} : vector<16x22xf32> to vector<16x16xf32>
    %641 = vector.broadcast %639 : f32 to vector<16x16xf32>
    %642 = arith.mulf %641, %640 : vector<16x16xf32>
    %643 = arith.addf %638, %642 : vector<16x16xf32>
    %c16_115 = arith.constant 16 : index
    %644 = memref.load %arg1[%c16_115] : memref<98xf32, #tpu.memory_space<smem>>
    %645 = vector.extract_strided_slice %633 {offsets = [0, 2], sizes = [16, 16], strides = [1, 1]} : vector<16x22xf32> to vector<16x16xf32>
    %646 = vector.broadcast %644 : f32 to vector<16x16xf32>
    %647 = arith.mulf %646, %645 : vector<16x16xf32>
    %648 = arith.addf %643, %647 : vector<16x16xf32>
    %c17_116 = arith.constant 17 : index
    %649 = memref.load %arg1[%c17_116] : memref<98xf32, #tpu.memory_space<smem>>
    %650 = vector.extract_strided_slice %633 {offsets = [0, 3], sizes = [16, 16], strides = [1, 1]} : vector<16x22xf32> to vector<16x16xf32>
    %651 = vector.broadcast %649 : f32 to vector<16x16xf32>
    %652 = arith.mulf %651, %650 : vector<16x16xf32>
    %653 = arith.addf %648, %652 : vector<16x16xf32>
    %c18_117 = arith.constant 18 : index
    %654 = memref.load %arg1[%c18_117] : memref<98xf32, #tpu.memory_space<smem>>
    %655 = vector.extract_strided_slice %633 {offsets = [0, 4], sizes = [16, 16], strides = [1, 1]} : vector<16x22xf32> to vector<16x16xf32>
    %656 = vector.broadcast %654 : f32 to vector<16x16xf32>
    %657 = arith.mulf %656, %655 : vector<16x16xf32>
    %658 = arith.addf %653, %657 : vector<16x16xf32>
    %c19_118 = arith.constant 19 : index
    %659 = memref.load %arg1[%c19_118] : memref<98xf32, #tpu.memory_space<smem>>
    %660 = vector.extract_strided_slice %633 {offsets = [0, 5], sizes = [16, 16], strides = [1, 1]} : vector<16x22xf32> to vector<16x16xf32>
    %661 = vector.broadcast %659 : f32 to vector<16x16xf32>
    %662 = arith.mulf %661, %660 : vector<16x16xf32>
    %663 = arith.addf %658, %662 : vector<16x16xf32>
    %c20_119 = arith.constant 20 : index
    %664 = memref.load %arg1[%c20_119] : memref<98xf32, #tpu.memory_space<smem>>
    %665 = vector.extract_strided_slice %633 {offsets = [0, 6], sizes = [16, 16], strides = [1, 1]} : vector<16x22xf32> to vector<16x16xf32>
    %666 = vector.broadcast %664 : f32 to vector<16x16xf32>
    %667 = arith.mulf %666, %665 : vector<16x16xf32>
    %668 = arith.addf %663, %667 : vector<16x16xf32>
    %c0_120 = arith.constant 0 : index
    %c3_121 = arith.constant 3 : index
    %c0_122 = arith.constant 0 : index
    %669 = vector.load %arg4[%c0_120, %c3_121, %c0_122] : memref<2x22x22xf32, #tpu.memory_space<vmem>>, vector<1x16x22xf32>
    %670 = vector.shape_cast %669 : vector<1x16x22xf32> to vector<16x22xf32>
    %c21_123 = arith.constant 21 : index
    %671 = memref.load %arg1[%c21_123] : memref<98xf32, #tpu.memory_space<smem>>
    %672 = vector.extract_strided_slice %670 {offsets = [0, 0], sizes = [16, 16], strides = [1, 1]} : vector<16x22xf32> to vector<16x16xf32>
    %673 = vector.broadcast %671 : f32 to vector<16x16xf32>
    %674 = arith.mulf %673, %672 : vector<16x16xf32>
    %675 = arith.addf %668, %674 : vector<16x16xf32>
    %c22_124 = arith.constant 22 : index
    %676 = memref.load %arg1[%c22_124] : memref<98xf32, #tpu.memory_space<smem>>
    %677 = vector.extract_strided_slice %670 {offsets = [0, 1], sizes = [16, 16], strides = [1, 1]} : vector<16x22xf32> to vector<16x16xf32>
    %678 = vector.broadcast %676 : f32 to vector<16x16xf32>
    %679 = arith.mulf %678, %677 : vector<16x16xf32>
    %680 = arith.addf %675, %679 : vector<16x16xf32>
    %c23_125 = arith.constant 23 : index
    %681 = memref.load %arg1[%c23_125] : memref<98xf32, #tpu.memory_space<smem>>
    %682 = vector.extract_strided_slice %670 {offsets = [0, 2], sizes = [16, 16], strides = [1, 1]} : vector<16x22xf32> to vector<16x16xf32>
    %683 = vector.broadcast %681 : f32 to vector<16x16xf32>
    %684 = arith.mulf %683, %682 : vector<16x16xf32>
    %685 = arith.addf %680, %684 : vector<16x16xf32>
    %c24_126 = arith.constant 24 : index
    %686 = memref.load %arg1[%c24_126] : memref<98xf32, #tpu.memory_space<smem>>
    %687 = vector.extract_strided_slice %670 {offsets = [0, 3], sizes = [16, 16], strides = [1, 1]} : vector<16x22xf32> to vector<16x16xf32>
    %688 = vector.broadcast %686 : f32 to vector<16x16xf32>
    %689 = arith.mulf %688, %687 : vector<16x16xf32>
    %690 = arith.addf %685, %689 : vector<16x16xf32>
    %c25_127 = arith.constant 25 : index
    %691 = memref.load %arg1[%c25_127] : memref<98xf32, #tpu.memory_space<smem>>
    %692 = vector.extract_strided_slice %670 {offsets = [0, 4], sizes = [16, 16], strides = [1, 1]} : vector<16x22xf32> to vector<16x16xf32>
    %693 = vector.broadcast %691 : f32 to vector<16x16xf32>
    %694 = arith.mulf %693, %692 : vector<16x16xf32>
    %695 = arith.addf %690, %694 : vector<16x16xf32>
    %c26_128 = arith.constant 26 : index
    %696 = memref.load %arg1[%c26_128] : memref<98xf32, #tpu.memory_space<smem>>
    %697 = vector.extract_strided_slice %670 {offsets = [0, 5], sizes = [16, 16], strides = [1, 1]} : vector<16x22xf32> to vector<16x16xf32>
    %698 = vector.broadcast %696 : f32 to vector<16x16xf32>
    %699 = arith.mulf %698, %697 : vector<16x16xf32>
    %700 = arith.addf %695, %699 : vector<16x16xf32>
    %c27_129 = arith.constant 27 : index
    %701 = memref.load %arg1[%c27_129] : memref<98xf32, #tpu.memory_space<smem>>
    %702 = vector.extract_strided_slice %670 {offsets = [0, 6], sizes = [16, 16], strides = [1, 1]} : vector<16x22xf32> to vector<16x16xf32>
    %703 = vector.broadcast %701 : f32 to vector<16x16xf32>
    %704 = arith.mulf %703, %702 : vector<16x16xf32>
    %705 = arith.addf %700, %704 : vector<16x16xf32>
    %c0_130 = arith.constant 0 : index
    %c4_131 = arith.constant 4 : index
    %c0_132 = arith.constant 0 : index
    %706 = vector.load %arg4[%c0_130, %c4_131, %c0_132] : memref<2x22x22xf32, #tpu.memory_space<vmem>>, vector<1x16x22xf32>
    %707 = vector.shape_cast %706 : vector<1x16x22xf32> to vector<16x22xf32>
    %c28_133 = arith.constant 28 : index
    %708 = memref.load %arg1[%c28_133] : memref<98xf32, #tpu.memory_space<smem>>
    %709 = vector.extract_strided_slice %707 {offsets = [0, 0], sizes = [16, 16], strides = [1, 1]} : vector<16x22xf32> to vector<16x16xf32>
    %710 = vector.broadcast %708 : f32 to vector<16x16xf32>
    %711 = arith.mulf %710, %709 : vector<16x16xf32>
    %712 = arith.addf %705, %711 : vector<16x16xf32>
    %c29_134 = arith.constant 29 : index
    %713 = memref.load %arg1[%c29_134] : memref<98xf32, #tpu.memory_space<smem>>
    %714 = vector.extract_strided_slice %707 {offsets = [0, 1], sizes = [16, 16], strides = [1, 1]} : vector<16x22xf32> to vector<16x16xf32>
    %715 = vector.broadcast %713 : f32 to vector<16x16xf32>
    %716 = arith.mulf %715, %714 : vector<16x16xf32>
    %717 = arith.addf %712, %716 : vector<16x16xf32>
    %c30_135 = arith.constant 30 : index
    %718 = memref.load %arg1[%c30_135] : memref<98xf32, #tpu.memory_space<smem>>
    %719 = vector.extract_strided_slice %707 {offsets = [0, 2], sizes = [16, 16], strides = [1, 1]} : vector<16x22xf32> to vector<16x16xf32>
    %720 = vector.broadcast %718 : f32 to vector<16x16xf32>
    %721 = arith.mulf %720, %719 : vector<16x16xf32>
    %722 = arith.addf %717, %721 : vector<16x16xf32>
    %c31_136 = arith.constant 31 : index
    %723 = memref.load %arg1[%c31_136] : memref<98xf32, #tpu.memory_space<smem>>
    %724 = vector.extract_strided_slice %707 {offsets = [0, 3], sizes = [16, 16], strides = [1, 1]} : vector<16x22xf32> to vector<16x16xf32>
    %725 = vector.broadcast %723 : f32 to vector<16x16xf32>
    %726 = arith.mulf %725, %724 : vector<16x16xf32>
    %727 = arith.addf %722, %726 : vector<16x16xf32>
    %c32_137 = arith.constant 32 : index
    %728 = memref.load %arg1[%c32_137] : memref<98xf32, #tpu.memory_space<smem>>
    %729 = vector.extract_strided_slice %707 {offsets = [0, 4], sizes = [16, 16], strides = [1, 1]} : vector<16x22xf32> to vector<16x16xf32>
    %730 = vector.broadcast %728 : f32 to vector<16x16xf32>
    %731 = arith.mulf %730, %729 : vector<16x16xf32>
    %732 = arith.addf %727, %731 : vector<16x16xf32>
    %c33_138 = arith.constant 33 : index
    %733 = memref.load %arg1[%c33_138] : memref<98xf32, #tpu.memory_space<smem>>
    %734 = vector.extract_strided_slice %707 {offsets = [0, 5], sizes = [16, 16], strides = [1, 1]} : vector<16x22xf32> to vector<16x16xf32>
    %735 = vector.broadcast %733 : f32 to vector<16x16xf32>
    %736 = arith.mulf %735, %734 : vector<16x16xf32>
    %737 = arith.addf %732, %736 : vector<16x16xf32>
    %c34_139 = arith.constant 34 : index
    %738 = memref.load %arg1[%c34_139] : memref<98xf32, #tpu.memory_space<smem>>
    %739 = vector.extract_strided_slice %707 {offsets = [0, 6], sizes = [16, 16], strides = [1, 1]} : vector<16x22xf32> to vector<16x16xf32>
    %740 = vector.broadcast %738 : f32 to vector<16x16xf32>
    %741 = arith.mulf %740, %739 : vector<16x16xf32>
    %742 = arith.addf %737, %741 : vector<16x16xf32>
    %c0_140 = arith.constant 0 : index
    %c5_141 = arith.constant 5 : index
    %c0_142 = arith.constant 0 : index
    %743 = vector.load %arg4[%c0_140, %c5_141, %c0_142] : memref<2x22x22xf32, #tpu.memory_space<vmem>>, vector<1x16x22xf32>
    %744 = vector.shape_cast %743 : vector<1x16x22xf32> to vector<16x22xf32>
    %c35_143 = arith.constant 35 : index
    %745 = memref.load %arg1[%c35_143] : memref<98xf32, #tpu.memory_space<smem>>
    %746 = vector.extract_strided_slice %744 {offsets = [0, 0], sizes = [16, 16], strides = [1, 1]} : vector<16x22xf32> to vector<16x16xf32>
    %747 = vector.broadcast %745 : f32 to vector<16x16xf32>
    %748 = arith.mulf %747, %746 : vector<16x16xf32>
    %749 = arith.addf %742, %748 : vector<16x16xf32>
    %c36_144 = arith.constant 36 : index
    %750 = memref.load %arg1[%c36_144] : memref<98xf32, #tpu.memory_space<smem>>
    %751 = vector.extract_strided_slice %744 {offsets = [0, 1], sizes = [16, 16], strides = [1, 1]} : vector<16x22xf32> to vector<16x16xf32>
    %752 = vector.broadcast %750 : f32 to vector<16x16xf32>
    %753 = arith.mulf %752, %751 : vector<16x16xf32>
    %754 = arith.addf %749, %753 : vector<16x16xf32>
    %c37_145 = arith.constant 37 : index
    %755 = memref.load %arg1[%c37_145] : memref<98xf32, #tpu.memory_space<smem>>
    %756 = vector.extract_strided_slice %744 {offsets = [0, 2], sizes = [16, 16], strides = [1, 1]} : vector<16x22xf32> to vector<16x16xf32>
    %757 = vector.broadcast %755 : f32 to vector<16x16xf32>
    %758 = arith.mulf %757, %756 : vector<16x16xf32>
    %759 = arith.addf %754, %758 : vector<16x16xf32>
    %c38_146 = arith.constant 38 : index
    %760 = memref.load %arg1[%c38_146] : memref<98xf32, #tpu.memory_space<smem>>
    %761 = vector.extract_strided_slice %744 {offsets = [0, 3], sizes = [16, 16], strides = [1, 1]} : vector<16x22xf32> to vector<16x16xf32>
    %762 = vector.broadcast %760 : f32 to vector<16x16xf32>
    %763 = arith.mulf %762, %761 : vector<16x16xf32>
    %764 = arith.addf %759, %763 : vector<16x16xf32>
    %c39_147 = arith.constant 39 : index
    %765 = memref.load %arg1[%c39_147] : memref<98xf32, #tpu.memory_space<smem>>
    %766 = vector.extract_strided_slice %744 {offsets = [0, 4], sizes = [16, 16], strides = [1, 1]} : vector<16x22xf32> to vector<16x16xf32>
    %767 = vector.broadcast %765 : f32 to vector<16x16xf32>
    %768 = arith.mulf %767, %766 : vector<16x16xf32>
    %769 = arith.addf %764, %768 : vector<16x16xf32>
    %c40_148 = arith.constant 40 : index
    %770 = memref.load %arg1[%c40_148] : memref<98xf32, #tpu.memory_space<smem>>
    %771 = vector.extract_strided_slice %744 {offsets = [0, 5], sizes = [16, 16], strides = [1, 1]} : vector<16x22xf32> to vector<16x16xf32>
    %772 = vector.broadcast %770 : f32 to vector<16x16xf32>
    %773 = arith.mulf %772, %771 : vector<16x16xf32>
    %774 = arith.addf %769, %773 : vector<16x16xf32>
    %c41_149 = arith.constant 41 : index
    %775 = memref.load %arg1[%c41_149] : memref<98xf32, #tpu.memory_space<smem>>
    %776 = vector.extract_strided_slice %744 {offsets = [0, 6], sizes = [16, 16], strides = [1, 1]} : vector<16x22xf32> to vector<16x16xf32>
    %777 = vector.broadcast %775 : f32 to vector<16x16xf32>
    %778 = arith.mulf %777, %776 : vector<16x16xf32>
    %779 = arith.addf %774, %778 : vector<16x16xf32>
    %c0_150 = arith.constant 0 : index
    %c6_151 = arith.constant 6 : index
    %c0_152 = arith.constant 0 : index
    %780 = vector.load %arg4[%c0_150, %c6_151, %c0_152] : memref<2x22x22xf32, #tpu.memory_space<vmem>>, vector<1x16x22xf32>
    %781 = vector.shape_cast %780 : vector<1x16x22xf32> to vector<16x22xf32>
    %c42_153 = arith.constant 42 : index
    %782 = memref.load %arg1[%c42_153] : memref<98xf32, #tpu.memory_space<smem>>
    %783 = vector.extract_strided_slice %781 {offsets = [0, 0], sizes = [16, 16], strides = [1, 1]} : vector<16x22xf32> to vector<16x16xf32>
    %784 = vector.broadcast %782 : f32 to vector<16x16xf32>
    %785 = arith.mulf %784, %783 : vector<16x16xf32>
    %786 = arith.addf %779, %785 : vector<16x16xf32>
    %c43_154 = arith.constant 43 : index
    %787 = memref.load %arg1[%c43_154] : memref<98xf32, #tpu.memory_space<smem>>
    %788 = vector.extract_strided_slice %781 {offsets = [0, 1], sizes = [16, 16], strides = [1, 1]} : vector<16x22xf32> to vector<16x16xf32>
    %789 = vector.broadcast %787 : f32 to vector<16x16xf32>
    %790 = arith.mulf %789, %788 : vector<16x16xf32>
    %791 = arith.addf %786, %790 : vector<16x16xf32>
    %c44_155 = arith.constant 44 : index
    %792 = memref.load %arg1[%c44_155] : memref<98xf32, #tpu.memory_space<smem>>
    %793 = vector.extract_strided_slice %781 {offsets = [0, 2], sizes = [16, 16], strides = [1, 1]} : vector<16x22xf32> to vector<16x16xf32>
    %794 = vector.broadcast %792 : f32 to vector<16x16xf32>
    %795 = arith.mulf %794, %793 : vector<16x16xf32>
    %796 = arith.addf %791, %795 : vector<16x16xf32>
    %c45_156 = arith.constant 45 : index
    %797 = memref.load %arg1[%c45_156] : memref<98xf32, #tpu.memory_space<smem>>
    %798 = vector.extract_strided_slice %781 {offsets = [0, 3], sizes = [16, 16], strides = [1, 1]} : vector<16x22xf32> to vector<16x16xf32>
    %799 = vector.broadcast %797 : f32 to vector<16x16xf32>
    %800 = arith.mulf %799, %798 : vector<16x16xf32>
    %801 = arith.addf %796, %800 : vector<16x16xf32>
    %c46_157 = arith.constant 46 : index
    %802 = memref.load %arg1[%c46_157] : memref<98xf32, #tpu.memory_space<smem>>
    %803 = vector.extract_strided_slice %781 {offsets = [0, 4], sizes = [16, 16], strides = [1, 1]} : vector<16x22xf32> to vector<16x16xf32>
    %804 = vector.broadcast %802 : f32 to vector<16x16xf32>
    %805 = arith.mulf %804, %803 : vector<16x16xf32>
    %806 = arith.addf %801, %805 : vector<16x16xf32>
    %c47_158 = arith.constant 47 : index
    %807 = memref.load %arg1[%c47_158] : memref<98xf32, #tpu.memory_space<smem>>
    %808 = vector.extract_strided_slice %781 {offsets = [0, 5], sizes = [16, 16], strides = [1, 1]} : vector<16x22xf32> to vector<16x16xf32>
    %809 = vector.broadcast %807 : f32 to vector<16x16xf32>
    %810 = arith.mulf %809, %808 : vector<16x16xf32>
    %811 = arith.addf %806, %810 : vector<16x16xf32>
    %c48_159 = arith.constant 48 : index
    %812 = memref.load %arg1[%c48_159] : memref<98xf32, #tpu.memory_space<smem>>
    %813 = vector.extract_strided_slice %781 {offsets = [0, 6], sizes = [16, 16], strides = [1, 1]} : vector<16x22xf32> to vector<16x16xf32>
    %814 = vector.broadcast %812 : f32 to vector<16x16xf32>
    %815 = arith.mulf %814, %813 : vector<16x16xf32>
    %816 = arith.addf %811, %815 : vector<16x16xf32>
    %c1_160 = arith.constant 1 : index
    %c0_161 = arith.constant 0 : index
    %c0_162 = arith.constant 0 : index
    %817 = vector.load %arg4[%c1_160, %c0_161, %c0_162] : memref<2x22x22xf32, #tpu.memory_space<vmem>>, vector<1x16x22xf32>
    %818 = vector.shape_cast %817 : vector<1x16x22xf32> to vector<16x22xf32>
    %c49_163 = arith.constant 49 : index
    %819 = memref.load %arg1[%c49_163] : memref<98xf32, #tpu.memory_space<smem>>
    %820 = vector.extract_strided_slice %818 {offsets = [0, 0], sizes = [16, 16], strides = [1, 1]} : vector<16x22xf32> to vector<16x16xf32>
    %821 = vector.broadcast %819 : f32 to vector<16x16xf32>
    %822 = arith.mulf %821, %820 : vector<16x16xf32>
    %823 = arith.addf %816, %822 : vector<16x16xf32>
    %c50_164 = arith.constant 50 : index
    %824 = memref.load %arg1[%c50_164] : memref<98xf32, #tpu.memory_space<smem>>
    %825 = vector.extract_strided_slice %818 {offsets = [0, 1], sizes = [16, 16], strides = [1, 1]} : vector<16x22xf32> to vector<16x16xf32>
    %826 = vector.broadcast %824 : f32 to vector<16x16xf32>
    %827 = arith.mulf %826, %825 : vector<16x16xf32>
    %828 = arith.addf %823, %827 : vector<16x16xf32>
    %c51_165 = arith.constant 51 : index
    %829 = memref.load %arg1[%c51_165] : memref<98xf32, #tpu.memory_space<smem>>
    %830 = vector.extract_strided_slice %818 {offsets = [0, 2], sizes = [16, 16], strides = [1, 1]} : vector<16x22xf32> to vector<16x16xf32>
    %831 = vector.broadcast %829 : f32 to vector<16x16xf32>
    %832 = arith.mulf %831, %830 : vector<16x16xf32>
    %833 = arith.addf %828, %832 : vector<16x16xf32>
    %c52_166 = arith.constant 52 : index
    %834 = memref.load %arg1[%c52_166] : memref<98xf32, #tpu.memory_space<smem>>
    %835 = vector.extract_strided_slice %818 {offsets = [0, 3], sizes = [16, 16], strides = [1, 1]} : vector<16x22xf32> to vector<16x16xf32>
    %836 = vector.broadcast %834 : f32 to vector<16x16xf32>
    %837 = arith.mulf %836, %835 : vector<16x16xf32>
    %838 = arith.addf %833, %837 : vector<16x16xf32>
    %c53_167 = arith.constant 53 : index
    %839 = memref.load %arg1[%c53_167] : memref<98xf32, #tpu.memory_space<smem>>
    %840 = vector.extract_strided_slice %818 {offsets = [0, 4], sizes = [16, 16], strides = [1, 1]} : vector<16x22xf32> to vector<16x16xf32>
    %841 = vector.broadcast %839 : f32 to vector<16x16xf32>
    %842 = arith.mulf %841, %840 : vector<16x16xf32>
    %843 = arith.addf %838, %842 : vector<16x16xf32>
    %c54_168 = arith.constant 54 : index
    %844 = memref.load %arg1[%c54_168] : memref<98xf32, #tpu.memory_space<smem>>
    %845 = vector.extract_strided_slice %818 {offsets = [0, 5], sizes = [16, 16], strides = [1, 1]} : vector<16x22xf32> to vector<16x16xf32>
    %846 = vector.broadcast %844 : f32 to vector<16x16xf32>
    %847 = arith.mulf %846, %845 : vector<16x16xf32>
    %848 = arith.addf %843, %847 : vector<16x16xf32>
    %c55_169 = arith.constant 55 : index
    %849 = memref.load %arg1[%c55_169] : memref<98xf32, #tpu.memory_space<smem>>
    %850 = vector.extract_strided_slice %818 {offsets = [0, 6], sizes = [16, 16], strides = [1, 1]} : vector<16x22xf32> to vector<16x16xf32>
    %851 = vector.broadcast %849 : f32 to vector<16x16xf32>
    %852 = arith.mulf %851, %850 : vector<16x16xf32>
    %853 = arith.addf %848, %852 : vector<16x16xf32>
    %c1_170 = arith.constant 1 : index
    %c1_171 = arith.constant 1 : index
    %c0_172 = arith.constant 0 : index
    %854 = vector.load %arg4[%c1_170, %c1_171, %c0_172] : memref<2x22x22xf32, #tpu.memory_space<vmem>>, vector<1x16x22xf32>
    %855 = vector.shape_cast %854 : vector<1x16x22xf32> to vector<16x22xf32>
    %c56_173 = arith.constant 56 : index
    %856 = memref.load %arg1[%c56_173] : memref<98xf32, #tpu.memory_space<smem>>
    %857 = vector.extract_strided_slice %855 {offsets = [0, 0], sizes = [16, 16], strides = [1, 1]} : vector<16x22xf32> to vector<16x16xf32>
    %858 = vector.broadcast %856 : f32 to vector<16x16xf32>
    %859 = arith.mulf %858, %857 : vector<16x16xf32>
    %860 = arith.addf %853, %859 : vector<16x16xf32>
    %c57_174 = arith.constant 57 : index
    %861 = memref.load %arg1[%c57_174] : memref<98xf32, #tpu.memory_space<smem>>
    %862 = vector.extract_strided_slice %855 {offsets = [0, 1], sizes = [16, 16], strides = [1, 1]} : vector<16x22xf32> to vector<16x16xf32>
    %863 = vector.broadcast %861 : f32 to vector<16x16xf32>
    %864 = arith.mulf %863, %862 : vector<16x16xf32>
    %865 = arith.addf %860, %864 : vector<16x16xf32>
    %c58_175 = arith.constant 58 : index
    %866 = memref.load %arg1[%c58_175] : memref<98xf32, #tpu.memory_space<smem>>
    %867 = vector.extract_strided_slice %855 {offsets = [0, 2], sizes = [16, 16], strides = [1, 1]} : vector<16x22xf32> to vector<16x16xf32>
    %868 = vector.broadcast %866 : f32 to vector<16x16xf32>
    %869 = arith.mulf %868, %867 : vector<16x16xf32>
    %870 = arith.addf %865, %869 : vector<16x16xf32>
    %c59_176 = arith.constant 59 : index
    %871 = memref.load %arg1[%c59_176] : memref<98xf32, #tpu.memory_space<smem>>
    %872 = vector.extract_strided_slice %855 {offsets = [0, 3], sizes = [16, 16], strides = [1, 1]} : vector<16x22xf32> to vector<16x16xf32>
    %873 = vector.broadcast %871 : f32 to vector<16x16xf32>
    %874 = arith.mulf %873, %872 : vector<16x16xf32>
    %875 = arith.addf %870, %874 : vector<16x16xf32>
    %c60_177 = arith.constant 60 : index
    %876 = memref.load %arg1[%c60_177] : memref<98xf32, #tpu.memory_space<smem>>
    %877 = vector.extract_strided_slice %855 {offsets = [0, 4], sizes = [16, 16], strides = [1, 1]} : vector<16x22xf32> to vector<16x16xf32>
    %878 = vector.broadcast %876 : f32 to vector<16x16xf32>
    %879 = arith.mulf %878, %877 : vector<16x16xf32>
    %880 = arith.addf %875, %879 : vector<16x16xf32>
    %c61_178 = arith.constant 61 : index
    %881 = memref.load %arg1[%c61_178] : memref<98xf32, #tpu.memory_space<smem>>
    %882 = vector.extract_strided_slice %855 {offsets = [0, 5], sizes = [16, 16], strides = [1, 1]} : vector<16x22xf32> to vector<16x16xf32>
    %883 = vector.broadcast %881 : f32 to vector<16x16xf32>
    %884 = arith.mulf %883, %882 : vector<16x16xf32>
    %885 = arith.addf %880, %884 : vector<16x16xf32>
    %c62_179 = arith.constant 62 : index
    %886 = memref.load %arg1[%c62_179] : memref<98xf32, #tpu.memory_space<smem>>
    %887 = vector.extract_strided_slice %855 {offsets = [0, 6], sizes = [16, 16], strides = [1, 1]} : vector<16x22xf32> to vector<16x16xf32>
    %888 = vector.broadcast %886 : f32 to vector<16x16xf32>
    %889 = arith.mulf %888, %887 : vector<16x16xf32>
    %890 = arith.addf %885, %889 : vector<16x16xf32>
    %c1_180 = arith.constant 1 : index
    %c2_181 = arith.constant 2 : index
    %c0_182 = arith.constant 0 : index
    %891 = vector.load %arg4[%c1_180, %c2_181, %c0_182] : memref<2x22x22xf32, #tpu.memory_space<vmem>>, vector<1x16x22xf32>
    %892 = vector.shape_cast %891 : vector<1x16x22xf32> to vector<16x22xf32>
    %c63_183 = arith.constant 63 : index
    %893 = memref.load %arg1[%c63_183] : memref<98xf32, #tpu.memory_space<smem>>
    %894 = vector.extract_strided_slice %892 {offsets = [0, 0], sizes = [16, 16], strides = [1, 1]} : vector<16x22xf32> to vector<16x16xf32>
    %895 = vector.broadcast %893 : f32 to vector<16x16xf32>
    %896 = arith.mulf %895, %894 : vector<16x16xf32>
    %897 = arith.addf %890, %896 : vector<16x16xf32>
    %c64_184 = arith.constant 64 : index
    %898 = memref.load %arg1[%c64_184] : memref<98xf32, #tpu.memory_space<smem>>
    %899 = vector.extract_strided_slice %892 {offsets = [0, 1], sizes = [16, 16], strides = [1, 1]} : vector<16x22xf32> to vector<16x16xf32>
    %900 = vector.broadcast %898 : f32 to vector<16x16xf32>
    %901 = arith.mulf %900, %899 : vector<16x16xf32>
    %902 = arith.addf %897, %901 : vector<16x16xf32>
    %c65_185 = arith.constant 65 : index
    %903 = memref.load %arg1[%c65_185] : memref<98xf32, #tpu.memory_space<smem>>
    %904 = vector.extract_strided_slice %892 {offsets = [0, 2], sizes = [16, 16], strides = [1, 1]} : vector<16x22xf32> to vector<16x16xf32>
    %905 = vector.broadcast %903 : f32 to vector<16x16xf32>
    %906 = arith.mulf %905, %904 : vector<16x16xf32>
    %907 = arith.addf %902, %906 : vector<16x16xf32>
    %c66_186 = arith.constant 66 : index
    %908 = memref.load %arg1[%c66_186] : memref<98xf32, #tpu.memory_space<smem>>
    %909 = vector.extract_strided_slice %892 {offsets = [0, 3], sizes = [16, 16], strides = [1, 1]} : vector<16x22xf32> to vector<16x16xf32>
    %910 = vector.broadcast %908 : f32 to vector<16x16xf32>
    %911 = arith.mulf %910, %909 : vector<16x16xf32>
    %912 = arith.addf %907, %911 : vector<16x16xf32>
    %c67_187 = arith.constant 67 : index
    %913 = memref.load %arg1[%c67_187] : memref<98xf32, #tpu.memory_space<smem>>
    %914 = vector.extract_strided_slice %892 {offsets = [0, 4], sizes = [16, 16], strides = [1, 1]} : vector<16x22xf32> to vector<16x16xf32>
    %915 = vector.broadcast %913 : f32 to vector<16x16xf32>
    %916 = arith.mulf %915, %914 : vector<16x16xf32>
    %917 = arith.addf %912, %916 : vector<16x16xf32>
    %c68_188 = arith.constant 68 : index
    %918 = memref.load %arg1[%c68_188] : memref<98xf32, #tpu.memory_space<smem>>
    %919 = vector.extract_strided_slice %892 {offsets = [0, 5], sizes = [16, 16], strides = [1, 1]} : vector<16x22xf32> to vector<16x16xf32>
    %920 = vector.broadcast %918 : f32 to vector<16x16xf32>
    %921 = arith.mulf %920, %919 : vector<16x16xf32>
    %922 = arith.addf %917, %921 : vector<16x16xf32>
    %c69_189 = arith.constant 69 : index
    %923 = memref.load %arg1[%c69_189] : memref<98xf32, #tpu.memory_space<smem>>
    %924 = vector.extract_strided_slice %892 {offsets = [0, 6], sizes = [16, 16], strides = [1, 1]} : vector<16x22xf32> to vector<16x16xf32>
    %925 = vector.broadcast %923 : f32 to vector<16x16xf32>
    %926 = arith.mulf %925, %924 : vector<16x16xf32>
    %927 = arith.addf %922, %926 : vector<16x16xf32>
    %c1_190 = arith.constant 1 : index
    %c3_191 = arith.constant 3 : index
    %c0_192 = arith.constant 0 : index
    %928 = vector.load %arg4[%c1_190, %c3_191, %c0_192] : memref<2x22x22xf32, #tpu.memory_space<vmem>>, vector<1x16x22xf32>
    %929 = vector.shape_cast %928 : vector<1x16x22xf32> to vector<16x22xf32>
    %c70_193 = arith.constant 70 : index
    %930 = memref.load %arg1[%c70_193] : memref<98xf32, #tpu.memory_space<smem>>
    %931 = vector.extract_strided_slice %929 {offsets = [0, 0], sizes = [16, 16], strides = [1, 1]} : vector<16x22xf32> to vector<16x16xf32>
    %932 = vector.broadcast %930 : f32 to vector<16x16xf32>
    %933 = arith.mulf %932, %931 : vector<16x16xf32>
    %934 = arith.addf %927, %933 : vector<16x16xf32>
    %c71_194 = arith.constant 71 : index
    %935 = memref.load %arg1[%c71_194] : memref<98xf32, #tpu.memory_space<smem>>
    %936 = vector.extract_strided_slice %929 {offsets = [0, 1], sizes = [16, 16], strides = [1, 1]} : vector<16x22xf32> to vector<16x16xf32>
    %937 = vector.broadcast %935 : f32 to vector<16x16xf32>
    %938 = arith.mulf %937, %936 : vector<16x16xf32>
    %939 = arith.addf %934, %938 : vector<16x16xf32>
    %c72_195 = arith.constant 72 : index
    %940 = memref.load %arg1[%c72_195] : memref<98xf32, #tpu.memory_space<smem>>
    %941 = vector.extract_strided_slice %929 {offsets = [0, 2], sizes = [16, 16], strides = [1, 1]} : vector<16x22xf32> to vector<16x16xf32>
    %942 = vector.broadcast %940 : f32 to vector<16x16xf32>
    %943 = arith.mulf %942, %941 : vector<16x16xf32>
    %944 = arith.addf %939, %943 : vector<16x16xf32>
    %c73_196 = arith.constant 73 : index
    %945 = memref.load %arg1[%c73_196] : memref<98xf32, #tpu.memory_space<smem>>
    %946 = vector.extract_strided_slice %929 {offsets = [0, 3], sizes = [16, 16], strides = [1, 1]} : vector<16x22xf32> to vector<16x16xf32>
    %947 = vector.broadcast %945 : f32 to vector<16x16xf32>
    %948 = arith.mulf %947, %946 : vector<16x16xf32>
    %949 = arith.addf %944, %948 : vector<16x16xf32>
    %c74_197 = arith.constant 74 : index
    %950 = memref.load %arg1[%c74_197] : memref<98xf32, #tpu.memory_space<smem>>
    %951 = vector.extract_strided_slice %929 {offsets = [0, 4], sizes = [16, 16], strides = [1, 1]} : vector<16x22xf32> to vector<16x16xf32>
    %952 = vector.broadcast %950 : f32 to vector<16x16xf32>
    %953 = arith.mulf %952, %951 : vector<16x16xf32>
    %954 = arith.addf %949, %953 : vector<16x16xf32>
    %c75_198 = arith.constant 75 : index
    %955 = memref.load %arg1[%c75_198] : memref<98xf32, #tpu.memory_space<smem>>
    %956 = vector.extract_strided_slice %929 {offsets = [0, 5], sizes = [16, 16], strides = [1, 1]} : vector<16x22xf32> to vector<16x16xf32>
    %957 = vector.broadcast %955 : f32 to vector<16x16xf32>
    %958 = arith.mulf %957, %956 : vector<16x16xf32>
    %959 = arith.addf %954, %958 : vector<16x16xf32>
    %c76_199 = arith.constant 76 : index
    %960 = memref.load %arg1[%c76_199] : memref<98xf32, #tpu.memory_space<smem>>
    %961 = vector.extract_strided_slice %929 {offsets = [0, 6], sizes = [16, 16], strides = [1, 1]} : vector<16x22xf32> to vector<16x16xf32>
    %962 = vector.broadcast %960 : f32 to vector<16x16xf32>
    %963 = arith.mulf %962, %961 : vector<16x16xf32>
    %964 = arith.addf %959, %963 : vector<16x16xf32>
    %c1_200 = arith.constant 1 : index
    %c4_201 = arith.constant 4 : index
    %c0_202 = arith.constant 0 : index
    %965 = vector.load %arg4[%c1_200, %c4_201, %c0_202] : memref<2x22x22xf32, #tpu.memory_space<vmem>>, vector<1x16x22xf32>
    %966 = vector.shape_cast %965 : vector<1x16x22xf32> to vector<16x22xf32>
    %c77_203 = arith.constant 77 : index
    %967 = memref.load %arg1[%c77_203] : memref<98xf32, #tpu.memory_space<smem>>
    %968 = vector.extract_strided_slice %966 {offsets = [0, 0], sizes = [16, 16], strides = [1, 1]} : vector<16x22xf32> to vector<16x16xf32>
    %969 = vector.broadcast %967 : f32 to vector<16x16xf32>
    %970 = arith.mulf %969, %968 : vector<16x16xf32>
    %971 = arith.addf %964, %970 : vector<16x16xf32>
    %c78_204 = arith.constant 78 : index
    %972 = memref.load %arg1[%c78_204] : memref<98xf32, #tpu.memory_space<smem>>
    %973 = vector.extract_strided_slice %966 {offsets = [0, 1], sizes = [16, 16], strides = [1, 1]} : vector<16x22xf32> to vector<16x16xf32>
    %974 = vector.broadcast %972 : f32 to vector<16x16xf32>
    %975 = arith.mulf %974, %973 : vector<16x16xf32>
    %976 = arith.addf %971, %975 : vector<16x16xf32>
    %c79_205 = arith.constant 79 : index
    %977 = memref.load %arg1[%c79_205] : memref<98xf32, #tpu.memory_space<smem>>
    %978 = vector.extract_strided_slice %966 {offsets = [0, 2], sizes = [16, 16], strides = [1, 1]} : vector<16x22xf32> to vector<16x16xf32>
    %979 = vector.broadcast %977 : f32 to vector<16x16xf32>
    %980 = arith.mulf %979, %978 : vector<16x16xf32>
    %981 = arith.addf %976, %980 : vector<16x16xf32>
    %c80_206 = arith.constant 80 : index
    %982 = memref.load %arg1[%c80_206] : memref<98xf32, #tpu.memory_space<smem>>
    %983 = vector.extract_strided_slice %966 {offsets = [0, 3], sizes = [16, 16], strides = [1, 1]} : vector<16x22xf32> to vector<16x16xf32>
    %984 = vector.broadcast %982 : f32 to vector<16x16xf32>
    %985 = arith.mulf %984, %983 : vector<16x16xf32>
    %986 = arith.addf %981, %985 : vector<16x16xf32>
    %c81_207 = arith.constant 81 : index
    %987 = memref.load %arg1[%c81_207] : memref<98xf32, #tpu.memory_space<smem>>
    %988 = vector.extract_strided_slice %966 {offsets = [0, 4], sizes = [16, 16], strides = [1, 1]} : vector<16x22xf32> to vector<16x16xf32>
    %989 = vector.broadcast %987 : f32 to vector<16x16xf32>
    %990 = arith.mulf %989, %988 : vector<16x16xf32>
    %991 = arith.addf %986, %990 : vector<16x16xf32>
    %c82_208 = arith.constant 82 : index
    %992 = memref.load %arg1[%c82_208] : memref<98xf32, #tpu.memory_space<smem>>
    %993 = vector.extract_strided_slice %966 {offsets = [0, 5], sizes = [16, 16], strides = [1, 1]} : vector<16x22xf32> to vector<16x16xf32>
    %994 = vector.broadcast %992 : f32 to vector<16x16xf32>
    %995 = arith.mulf %994, %993 : vector<16x16xf32>
    %996 = arith.addf %991, %995 : vector<16x16xf32>
    %c83_209 = arith.constant 83 : index
    %997 = memref.load %arg1[%c83_209] : memref<98xf32, #tpu.memory_space<smem>>
    %998 = vector.extract_strided_slice %966 {offsets = [0, 6], sizes = [16, 16], strides = [1, 1]} : vector<16x22xf32> to vector<16x16xf32>
    %999 = vector.broadcast %997 : f32 to vector<16x16xf32>
    %1000 = arith.mulf %999, %998 : vector<16x16xf32>
    %1001 = arith.addf %996, %1000 : vector<16x16xf32>
    %c1_210 = arith.constant 1 : index
    %c5_211 = arith.constant 5 : index
    %c0_212 = arith.constant 0 : index
    %1002 = vector.load %arg4[%c1_210, %c5_211, %c0_212] : memref<2x22x22xf32, #tpu.memory_space<vmem>>, vector<1x16x22xf32>
    %1003 = vector.shape_cast %1002 : vector<1x16x22xf32> to vector<16x22xf32>
    %c84_213 = arith.constant 84 : index
    %1004 = memref.load %arg1[%c84_213] : memref<98xf32, #tpu.memory_space<smem>>
    %1005 = vector.extract_strided_slice %1003 {offsets = [0, 0], sizes = [16, 16], strides = [1, 1]} : vector<16x22xf32> to vector<16x16xf32>
    %1006 = vector.broadcast %1004 : f32 to vector<16x16xf32>
    %1007 = arith.mulf %1006, %1005 : vector<16x16xf32>
    %1008 = arith.addf %1001, %1007 : vector<16x16xf32>
    %c85_214 = arith.constant 85 : index
    %1009 = memref.load %arg1[%c85_214] : memref<98xf32, #tpu.memory_space<smem>>
    %1010 = vector.extract_strided_slice %1003 {offsets = [0, 1], sizes = [16, 16], strides = [1, 1]} : vector<16x22xf32> to vector<16x16xf32>
    %1011 = vector.broadcast %1009 : f32 to vector<16x16xf32>
    %1012 = arith.mulf %1011, %1010 : vector<16x16xf32>
    %1013 = arith.addf %1008, %1012 : vector<16x16xf32>
    %c86_215 = arith.constant 86 : index
    %1014 = memref.load %arg1[%c86_215] : memref<98xf32, #tpu.memory_space<smem>>
    %1015 = vector.extract_strided_slice %1003 {offsets = [0, 2], sizes = [16, 16], strides = [1, 1]} : vector<16x22xf32> to vector<16x16xf32>
    %1016 = vector.broadcast %1014 : f32 to vector<16x16xf32>
    %1017 = arith.mulf %1016, %1015 : vector<16x16xf32>
    %1018 = arith.addf %1013, %1017 : vector<16x16xf32>
    %c87_216 = arith.constant 87 : index
    %1019 = memref.load %arg1[%c87_216] : memref<98xf32, #tpu.memory_space<smem>>
    %1020 = vector.extract_strided_slice %1003 {offsets = [0, 3], sizes = [16, 16], strides = [1, 1]} : vector<16x22xf32> to vector<16x16xf32>
    %1021 = vector.broadcast %1019 : f32 to vector<16x16xf32>
    %1022 = arith.mulf %1021, %1020 : vector<16x16xf32>
    %1023 = arith.addf %1018, %1022 : vector<16x16xf32>
    %c88_217 = arith.constant 88 : index
    %1024 = memref.load %arg1[%c88_217] : memref<98xf32, #tpu.memory_space<smem>>
    %1025 = vector.extract_strided_slice %1003 {offsets = [0, 4], sizes = [16, 16], strides = [1, 1]} : vector<16x22xf32> to vector<16x16xf32>
    %1026 = vector.broadcast %1024 : f32 to vector<16x16xf32>
    %1027 = arith.mulf %1026, %1025 : vector<16x16xf32>
    %1028 = arith.addf %1023, %1027 : vector<16x16xf32>
    %c89_218 = arith.constant 89 : index
    %1029 = memref.load %arg1[%c89_218] : memref<98xf32, #tpu.memory_space<smem>>
    %1030 = vector.extract_strided_slice %1003 {offsets = [0, 5], sizes = [16, 16], strides = [1, 1]} : vector<16x22xf32> to vector<16x16xf32>
    %1031 = vector.broadcast %1029 : f32 to vector<16x16xf32>
    %1032 = arith.mulf %1031, %1030 : vector<16x16xf32>
    %1033 = arith.addf %1028, %1032 : vector<16x16xf32>
    %c90_219 = arith.constant 90 : index
    %1034 = memref.load %arg1[%c90_219] : memref<98xf32, #tpu.memory_space<smem>>
    %1035 = vector.extract_strided_slice %1003 {offsets = [0, 6], sizes = [16, 16], strides = [1, 1]} : vector<16x22xf32> to vector<16x16xf32>
    %1036 = vector.broadcast %1034 : f32 to vector<16x16xf32>
    %1037 = arith.mulf %1036, %1035 : vector<16x16xf32>
    %1038 = arith.addf %1033, %1037 : vector<16x16xf32>
    %c1_220 = arith.constant 1 : index
    %c6_221 = arith.constant 6 : index
    %c0_222 = arith.constant 0 : index
    %1039 = vector.load %arg4[%c1_220, %c6_221, %c0_222] : memref<2x22x22xf32, #tpu.memory_space<vmem>>, vector<1x16x22xf32>
    %1040 = vector.shape_cast %1039 : vector<1x16x22xf32> to vector<16x22xf32>
    %c91_223 = arith.constant 91 : index
    %1041 = memref.load %arg1[%c91_223] : memref<98xf32, #tpu.memory_space<smem>>
    %1042 = vector.extract_strided_slice %1040 {offsets = [0, 0], sizes = [16, 16], strides = [1, 1]} : vector<16x22xf32> to vector<16x16xf32>
    %1043 = vector.broadcast %1041 : f32 to vector<16x16xf32>
    %1044 = arith.mulf %1043, %1042 : vector<16x16xf32>
    %1045 = arith.addf %1038, %1044 : vector<16x16xf32>
    %c92_224 = arith.constant 92 : index
    %1046 = memref.load %arg1[%c92_224] : memref<98xf32, #tpu.memory_space<smem>>
    %1047 = vector.extract_strided_slice %1040 {offsets = [0, 1], sizes = [16, 16], strides = [1, 1]} : vector<16x22xf32> to vector<16x16xf32>
    %1048 = vector.broadcast %1046 : f32 to vector<16x16xf32>
    %1049 = arith.mulf %1048, %1047 : vector<16x16xf32>
    %1050 = arith.addf %1045, %1049 : vector<16x16xf32>
    %c93_225 = arith.constant 93 : index
    %1051 = memref.load %arg1[%c93_225] : memref<98xf32, #tpu.memory_space<smem>>
    %1052 = vector.extract_strided_slice %1040 {offsets = [0, 2], sizes = [16, 16], strides = [1, 1]} : vector<16x22xf32> to vector<16x16xf32>
    %1053 = vector.broadcast %1051 : f32 to vector<16x16xf32>
    %1054 = arith.mulf %1053, %1052 : vector<16x16xf32>
    %1055 = arith.addf %1050, %1054 : vector<16x16xf32>
    %c94_226 = arith.constant 94 : index
    %1056 = memref.load %arg1[%c94_226] : memref<98xf32, #tpu.memory_space<smem>>
    %1057 = vector.extract_strided_slice %1040 {offsets = [0, 3], sizes = [16, 16], strides = [1, 1]} : vector<16x22xf32> to vector<16x16xf32>
    %1058 = vector.broadcast %1056 : f32 to vector<16x16xf32>
    %1059 = arith.mulf %1058, %1057 : vector<16x16xf32>
    %1060 = arith.addf %1055, %1059 : vector<16x16xf32>
    %c95_227 = arith.constant 95 : index
    %1061 = memref.load %arg1[%c95_227] : memref<98xf32, #tpu.memory_space<smem>>
    %1062 = vector.extract_strided_slice %1040 {offsets = [0, 4], sizes = [16, 16], strides = [1, 1]} : vector<16x22xf32> to vector<16x16xf32>
    %1063 = vector.broadcast %1061 : f32 to vector<16x16xf32>
    %1064 = arith.mulf %1063, %1062 : vector<16x16xf32>
    %1065 = arith.addf %1060, %1064 : vector<16x16xf32>
    %c96_228 = arith.constant 96 : index
    %1066 = memref.load %arg1[%c96_228] : memref<98xf32, #tpu.memory_space<smem>>
    %1067 = vector.extract_strided_slice %1040 {offsets = [0, 5], sizes = [16, 16], strides = [1, 1]} : vector<16x22xf32> to vector<16x16xf32>
    %1068 = vector.broadcast %1066 : f32 to vector<16x16xf32>
    %1069 = arith.mulf %1068, %1067 : vector<16x16xf32>
    %1070 = arith.addf %1065, %1069 : vector<16x16xf32>
    %c97_229 = arith.constant 97 : index
    %1071 = memref.load %arg1[%c97_229] : memref<98xf32, #tpu.memory_space<smem>>
    %1072 = vector.extract_strided_slice %1040 {offsets = [0, 6], sizes = [16, 16], strides = [1, 1]} : vector<16x22xf32> to vector<16x16xf32>
    %1073 = vector.broadcast %1071 : f32 to vector<16x16xf32>
    %1074 = arith.mulf %1073, %1072 : vector<16x16xf32>
    %1075 = arith.addf %1070, %1074 : vector<16x16xf32>
    %1076 = arith.negf %1075 : vector<16x16xf32>
    %1077 = math.exp %1076 : vector<16x16xf32>
    %cst_230 = arith.constant 1.000000e+00 : f32
    %1078 = vector.broadcast %cst_230 : f32 to vector<16x16xf32>
    %1079 = arith.addf %1078, %1077 : vector<16x16xf32>
    %1080 = arith.divf %1078, %1079 : vector<16x16xf32>
    %c1_231 = arith.constant 1 : index
    %c0_232 = arith.constant 0 : index
    %c0_233 = arith.constant 0 : index
    %c0_234 = arith.constant 0 : index
    %1081 = vector.load %arg3[%c1_231, %c0_232, %c0_233, %c0_234] : memref<2x1x16x16xf32, #tpu.memory_space<vmem>>, vector<1x1x16x16xf32>
    %1082 = vector.shape_cast %1081 : vector<1x1x16x16xf32> to vector<16x16xf32>
    %1083 = vector.shape_cast %1080 : vector<16x16xf32> to vector<1x1x16x16xf32>
    tpu.vector_store %arg3[%c1_231, %c0_232, %c0_233, %c0_234], %1083 {strides = array<i32>} : memref<2x1x16x16xf32, #tpu.memory_space<vmem>>, vector<1x1x16x16xf32>,
    return
  }
  func.func @transform_0(%arg0: i32) -> i32 {
    %c0_i32 = arith.constant 0 : i32
    %c0_i32_0 = arith.constant 0 : i32
    return %c0_i32 : i32
  }
  func.func @transform_1(%arg0: i32) -> (i32, i32, i32, i32) {
    %c0_i32 = arith.constant 0 : i32
    %c0_i32_0 = arith.constant 0 : i32
    %c0_i32_1 = arith.constant 0 : i32
    %c0_i32_2 = arith.constant 0 : i32
    return %arg0, %c0_i32, %c0_i32_0, %c0_i32_1 : i32, i32, i32, i32
  }
  func.func @transform_2(%arg0: i32) -> (i32, i32, i32, i32) {
    %c0_i32 = arith.constant 0 : i32
    %c0_i32_0 = arith.constant 0 : i32
    %c0_i32_1 = arith.constant 0 : i32
    %c0_i32_2 = arith.constant 0 : i32
    return %arg0, %c0_i32, %c0_i32_0, %c0_i32_1 : i32, i32, i32, i32
  }
}

</mosaic_0001>

<bundles_post_ra>
// kernel: tpu_custom_call.1
= control target key start
LH: loop header
LB: loop body
LE: loop exit
PB: predicated region body
PF: predicated region fallthrough
CT: control target
= control target key end

     0   :  { %7 = vsyncpa [#allocation6], 0  ;;  %s4641_s0 = inlined_call_operand.hbm [shape: f32[98], index: 0, kind: input, shape index: {}]   ;;  %s4642_s1 = inlined_call_operand.hbm [shape: f32[2,4,16,16], index: 1, kind: input, shape index: {}]   ;;  %s4643_s2 = inlined_call_operand.hbm [shape: f32[2,1,16,16], index: 2, kind: output, shape index: {}]  }
   0x1   :  { %8 = vsyncpa [#allocation4], 0 }
   0x2   :  { %9 = vsyncpa [#allocation5], 0  ;;  %s15_s11 = sshll.u32 %s4641_s0, 4  ;;  %s23_s14 = sshll.u32 %s4642_s1, 4  ;;  %s16_s11 = int_to_ptr.hbm [resolvable:$true] %s15_s11  ;;  %s24_s14 = int_to_ptr.hbm [resolvable:$true] %s23_s14 }
   0x3   :  { %s3318_s15 = smov [#allocation3]   ;;  %s3319_s16 = smov [#allocation7]  }
   0x4   :  { %18 = dma.hbm_to_smem %s16_s11, 16, %s3318_s15, [#allocation6]  }
   0x5   :  { %s25_s17 = sshll.u32 %s3319_s16, 4  ;;  %s3320_s18 = smov 128   ;;  %s26_s17 = int_to_ptr.vmem [resolvable:$true] %s25_s17 }
   0x6   :  { %s3321_s19 = smov 8  }
   0x7   :  { %31 = dma.hbm_to_vmem [thread:$0]  %s24_s14, 2048, %s26_s17, [#allocation4], %s3320_s18, %s3320_s18, %s3321_s19  }
   0x8   :  { %3272 = dma.done.wait [#allocation6], 16  }
   0x9   :  { %3273 = vsyncadd [#allocation6], 4294967280 }
   0xa   :  { %3274 = dma.done.wait [#allocation4], 2048  }
   0xb   :  { %3275 = vsyncadd [#allocation4], 4294965248 }
   0xc   :  { %40 = sfence }
   0xd   :  { %vm46_vm0 = vcmask 23552   ;;  %v56_v0 = vld [vmem:[#allocation7] sm:$0xff]   ;;  %v57_v1 = vld [vmem:[#allocation7 + $0x8] sm:$0xff]   ;;  %v3322_v2 = vmov 0.0   ;;  %vm41_vm1 = vcmask 174080   ;;  %vm51_vm2 = vcmask 179352  }
   0xe   :  { %47 = vst.msk [vmem:[#allocation2 + $0x3] sm:$0xff] %vm46_vm0, %v3322_v2  ;;  %v3278_v3 = vmov %v57_v1   ;;  %v3282_v4 = vmov %v56_v0   ;;  %v3286_v5 = vmov %v57_v1   ;;  %v3290_v6 = vmov %v56_v0   ;;  %s3294_s0 = smov 1  }
   0xf   :  { %48 = vst.msk [vmem:[#allocation2 + $0xb] sm:$0xff] %vm46_vm0, %v3322_v2 }
  0x10   :  { %49 = vst.msk [vmem:[#allocation2 + $0x1b] sm:$0xff] %vm46_vm0, %v3322_v2 }
  0x11   :  { %50 = vst.msk [vmem:[#allocation2 + $0x23] sm:$0xff] %vm46_vm0, %v3322_v2 }
  0x12   :  { %42 = vst.msk [vmem:[#allocation2] sm:$0x7] %vm41_vm1, %v3322_v2 }
  0x13   :  { %43 = vst.msk [vmem:[#allocation2 + $0x18] sm:$0x7] %vm41_vm1, %v3322_v2 }
  0x14   :  { %44 = vst.msk [vmem:[#allocation2 + $0x13] sm:$0x7] %vm41_vm1, %v3322_v2 }
  0x15   :  { %45 = vst.msk [vmem:[#allocation2 + $0x2b] sm:$0x7] %vm41_vm1, %v3322_v2 }
  0x16   :  { %52 = vst.msk [vmem:[#allocation2 + $0x3] sm:$0xff] %vm51_vm2, %v3322_v2 }
  0x17   :  { %53 = vst.msk [vmem:[#allocation2 + $0xb] sm:$0xff] %vm51_vm2, %v3322_v2 }
  0x18   :  { %54 = vst.msk [vmem:[#allocation2 + $0x1b] sm:$0xff] %vm51_vm2, %v3322_v2 }
  0x19   :  { %55 = vst.msk [vmem:[#allocation2 + $0x23] sm:$0xff] %vm51_vm2, %v3322_v2 }
  0x1a LB: > { %s2861_s1 = sshll.u32 %s3296_s0, 4  ;;  %s63_s0 = sadd.s32 1, %s3296_s0   ;;  %s3296_s0 = sphi %s3294_s0, %s63_s0   ;;  %v3292_v6 = vphi %v3290_v6, %v3291_v6   ;;  %v3288_v5 = vphi %v3286_v5, %v3287_v5   ;;  %v3284_v4 = vphi %v3282_v4, %v3283_v4   ;;  %v3280_v3 = vphi %v3278_v3, %v3279_v3  }
  0x1b   : > { %s69_s20 = scalar_lea.vmem [#allocation7], %s2861_s1  ;;  %p60_p0 = scmp.ge.s32.totalorder %s63_s0, 4  }
  0x1c   : > { %v70_v7 = vld [vmem:[%s69_s20] sm:$0xff]  ;;  %v71_v8 = vld [vmem:[%s69_s20 + $0x8] sm:$0xff]  ;;  %s3323_s21 = smov (%p60_p0), 3   ;;  %vm86_vm3 = vcmask (%p60_p0), 154648   ;;  %s2863_s22 = sld [smem:[#allocation3 + $0x2]] (%p60_p0)  ;;  %vm1426_vm7 = vcmask (%p60_p0), 130048  }
  0x1d   : > { %v72_v9 = vadd.f32 %v3292_v6, %v70_v7   ;;  %v73_v10 = vadd.f32 %v3288_v5, %v71_v8   ;;  %v74_v11 = vmax.f32 %v3284_v4, %v70_v7   ;;  %v75_v12 = vmax.f32 %v3280_v3, %v71_v8   ;;  %62 = sbr.rel (!%p60_p0) target bundleno = 26 (0x1a), region = 55  ;;  %s2862_s23 = sld [smem:[#allocation3 + $0x1]] (%p60_p0) }
  0x1e   :  { %s2864_s24 = sld [smem:[#allocation3 + $0x3]] (%p60_p0)  ;;  %s3324_s25 = smov (%p60_p0), 126  }
  0x1f   : > { %v3279_v3 = vmov %v75_v12   ;;  %v3283_v4 = vmov %v74_v11   ;;  %v3287_v5 = vmov %v73_v10   ;;  %v3291_v6 = vmov %v72_v9   ;;  %91 = vrot.lane.b32.xlu1 (%p60_p0), %v74_v11, %s3323_s21  ;;  %s3325_s26 = smov (%p60_p0), 127   ;;  %s2866_s27 = sld [smem:[#allocation3 + $0x5]] (%p60_p0) }
  0x20   :  { %v76_v13 = vmul.f32 (%p60_p0), 0.25, %v72_v9  ;;  %v77_v14 = vmul.f32 (%p60_p0), 0.25, %v73_v10  ;;  %s2865_s28 = sld [smem:[#allocation3 + $0x4]] (%p60_p0)  ;;  %s3326_s29 = smov (%p60_p0), 125  }
  0x21   :  { %s2867_s30 = sld [smem:[#allocation3 + $0x6]] (%p60_p0)  ;;  %s3327_s3 = smov (%p60_p0), 123  }
  0x22   :  { %80 = vrot.lane.b32.xlu0 %v76_v13, %s3323_s21  ;;  %v123_v16 = vstv %s2863_s22  ;;  %s3328_s4 = smov 124   ;;  %s2870_s5 = sld [smem:[#allocation3 + $0x9]] }
  0x23   :  { %v109_v17 = vstv %s2862_s23  ;;  %s2869_s6 = sld [smem:[#allocation3 + $0x8]]  ;;  %s3329_s7 = smov 122  }
  0x24   :  { %v137_v24 = vstv %s2864_s24  ;;  %s2871_s8 = sld [smem:[#allocation3 + $0xa]] }
  0x25   :  { %v165_v27 = vstv %s2866_s27  ;;  %s2873_s9 = sld [smem:[#allocation3 + $0xc]] }
  0x26   :  { %v151_v28 = vstv %s2865_s28  ;;  %s2872_s10 = sld [smem:[#allocation3 + $0xb]] }
  0x27   :  { %93 = vrot.lane.b32.xlu1 %v75_v12, %s3323_s21  ;;  %v179_v32 = vstv %s2867_s30  ;;  %s2874_s11 = sld [smem:[#allocation3 + $0xd]] }
  0x28   :  { %v215_v37 = vstv %s2870_s5  ;;  %s2877_s12 = sld [smem:[#allocation3 + $0x10]] }
  0x29   :  { %v201_v38 = vstv %s2869_s6  ;;  %s2876_s13 = sld [smem:[#allocation3 + $0xf]] }
  0x2a   :  { %82 = vrot.lane.b32.xlu0 %v77_v14, %s3323_s21  ;;  %v229_v43 = vstv %s2871_s8  ;;  %s2878_s14 = sld [smem:[#allocation3 + $0x11]] }
  0x2b   :  { %v257_v47 = vstv %s2873_s9  ;;  %s2880_s15 = sld [smem:[#allocation3 + $0x13]] }
  0x2c   :  { %v243_v48 = vstv %s2872_s10  ;;  %s2879_s16 = sld [smem:[#allocation3 + $0x12]] }
  0x2d   :  { %v271_v52 = vstv %s2874_s11  ;;  %s2881_s17 = sld [smem:[#allocation3 + $0x14]] }
  0x2e   :  { %v307_v57 = vstv %s2877_s12  ;;  %s2884_s0 = sld [smem:[#allocation3 + $0x17]] }
  0x2f   :  { %v293_v58 = vstv %s2876_s13  ;;  %s2883_s1 = sld [smem:[#allocation3 + $0x16]] }
  0x30   :  { %v321_v0 = vstv %s2878_s14  ;;  %s2885_s20 = sld [smem:[#allocation3 + $0x18]] }
  0x31   :  { %v349_v5 = vstv %s2880_s15  ;;  %s2887_s22 = sld [smem:[#allocation3 + $0x1a]] }
  0x32   :  { %v335_v6 = vstv %s2879_s16  ;;  %s2886_s23 = sld [smem:[#allocation3 + $0x19]] }
  0x33   :  { %v363_v10 = vstv %s2881_s17  ;;  %s3461_s24 = sld [smem:[#allocation3 + $0x1b]] }
  0x34   :  { %s102_s27 = sld [smem:[#allocation3]] }
  0x35   :  { %s3469_s28 = sld [smem:[#allocation3 + $0x1e]] }
  0x36   :  { %s3471_s30 = sld [smem:[#allocation3 + $0x1d]] }
  0x37   :  { %s3485_s5 = sld [smem:[#allocation3 + $0x1f]] }
  0x38   :  { %s3487_s6 = sld [smem:[#allocation3 + $0x7]] }
  0x39   :  { %s3496_s8 = sld [smem:[#allocation3 + $0x21]] }
  0x3a   :  { %s3501_s9 = sld [smem:[#allocation3 + $0x20]] }
  0x3b   :  { %s3513_s10 = sld [smem:[#allocation3 + $0x22]] }
  0x3c   :  { %s3522_s11 = sld [smem:[#allocation3 + $0x25]] }
  0x3d   :  { %s3525_s12 = sld [smem:[#allocation3 + $0x24]] }
  0x3e   :  { %s3537_s13 = sld [smem:[#allocation3 + $0x26]] }
  0x3f   :  { %s3539_s14 = sld [smem:[#allocation3 + $0xe]] }
  0x40   :  { %s3547_s15 = sld [smem:[#allocation3 + $0x28]] }
  0x41   :  { %s3552_s16 = sld [smem:[#allocation3 + $0x27]] }
  0x42   :  { %s3564_s17 = sld [smem:[#allocation3 + $0x29]] }
  0x91   :  { %v92_v62 = vpop.permute.xlu1 %91 }
  0x92   :  { %98 = vst.msk [vmem:[#allocation2 + $0x1b] sm:$0xff] %vm86_vm3, %v92_v62 }
  0x94   :  { %v81_v15 = vpop.permute.xlu0 %80 }
  0x95   :  { %87 = vst.msk [vmem:[#allocation2 + $0x3] sm:$0xff] %vm86_vm3, %v81_v15 }
  0x99   :  { %v94_v4 = vpop.permute.xlu1 %93 }
  0x9a   :  { %99 = vst.msk [vmem:[#allocation2 + $0x23] sm:$0xff] %vm86_vm3, %v94_v4 }
  0x9c   :  { %v3360_v18 = vld [vmem:[#allocation2] sm:$0xff]  ;;  %v83_v19 = vpop.permute.xlu0 %82 }
  0x9d   :  { %88 = vst.msk [vmem:[#allocation2 + $0xb] sm:$0xff] %vm86_vm3, %v83_v19  ;;  %v124_v20 = vmul.f32 %v123_v16, %v3360_v18  ;;  %v110_v21 = vmul.f32 %v109_v17, %v3360_v18  ;;  %v166_v29 = vmul.f32 %v165_v27, %v3360_v18  ;;  %v152_v30 = vmul.f32 %v151_v28, %v3360_v18  ;;  %v3387_v36 = vld [vmem:[#allocation2 + $0x1] sm:$0xff] }
  0x9e   :  { %v138_v31 = vmul.f32 %v137_v24, %v3360_v18  ;;  %v216_v39 = vmul.f32 %v215_v37, %v3387_v36  ;;  %v202_v40 = vmul.f32 %v201_v38, %v3387_v36  ;;  %v180_v41 = vmul.f32 %v179_v32, %v3360_v18  ;;  %v3415_v56 = vld [vmem:[#allocation2 + $0x2] sm:$0xff] }
  0x9f   :  { %128 = vrot.lane.b32.xlu0 %v124_v20, %s3324_s25  ;;  %114 = vrot.lane.b32.xlu2 %v110_v21, %s3325_s26  ;;  %v258_v49 = vmul.f32 %v257_v47, %v3387_v36  ;;  %v244_v50 = vmul.f32 %v243_v48, %v3387_v36  ;;  %v230_v51 = vmul.f32 %v229_v43, %v3387_v36  ;;  %v3445_v15 = vld [vmem:[#allocation2 + $0x3] sm:$0xff] }
  0xa0   :  { %v308_v59 = vmul.f32 %v307_v57, %v3415_v56  ;;  %v294_v60 = vmul.f32 %v293_v58, %v3415_v56  ;;  %v272_v61 = vmul.f32 %v271_v52, %v3387_v36  ;;  %v350_v7 = vmul.f32 %v349_v5, %v3415_v56 }
  0xa1   :  { %v336_v8 = vmul.f32 %v335_v6, %v3415_v56  ;;  %v322_v9 = vmul.f32 %v321_v0, %v3415_v56  ;;  %v364_v21 = vmul.f32 %v363_v10, %v3415_v56 }
  0xa4   :  { %v3367_v22 = vld [vmem:[#allocation2 + $0x8] sm:$0xff] }
  0xa5   :  { %v111_v23 = vmul.f32 %v109_v17, %v3367_v22  ;;  %v139_v25 = vmul.f32 %v137_v24, %v3367_v22  ;;  %v125_v26 = vmul.f32 %v123_v16, %v3367_v22  ;;  %v181_v33 = vmul.f32 %v179_v32, %v3367_v22  ;;  %v3395_v42 = vld [vmem:[#allocation2 + $0x9] sm:$0xff] }
  0xa6   :  { %v167_v34 = vmul.f32 %v165_v27, %v3367_v22  ;;  %v153_v35 = vmul.f32 %v151_v28, %v3367_v22  ;;  %v231_v44 = vmul.f32 %v229_v43, %v3395_v42  ;;  %v217_v45 = vmul.f32 %v215_v37, %v3395_v42  ;;  %v3424_v63 = vld [vmem:[#allocation2 + $0xa] sm:$0xff] }
  0xa7   :  { %144 = vrot.lane.b32.xlu0 %v139_v25, %s3326_s29  ;;  %130 = vrot.lane.b32.xlu1 %v125_v26, %s3324_s25  ;;  %v203_v46 = vmul.f32 %v201_v38, %v3395_v42  ;;  %v273_v53 = vmul.f32 %v271_v52, %v3395_v42  ;;  %v259_v54 = vmul.f32 %v257_v47, %v3395_v42  ;;  %v399_v16 = vstv %s2884_s0  ;;  %s3573_s0 = sld [smem:[#allocation3 + $0x2c]] }
  0xa8   :  { %116 = vrot.lane.b32.xlu2 %v111_v23, %s3325_s26  ;;  %v245_v55 = vmul.f32 %v243_v48, %v3395_v42  ;;  %v323_v1 = vmul.f32 %v321_v0, %v3424_v63  ;;  %v309_v2 = vmul.f32 %v307_v57, %v3424_v63  ;;  %v295_v3 = vmul.f32 %v293_v58, %v3424_v63  ;;  %v3453_v23 = vld [vmem:[#allocation2 + $0xb] sm:$0xff] }
  0xa9   :  { %v365_v11 = vmul.f32 %v363_v10, %v3424_v63  ;;  %v351_v12 = vmul.f32 %v349_v5, %v3424_v63  ;;  %v337_v13 = vmul.f32 %v335_v6, %v3424_v63  ;;  %v385_v17 = vstv %s2883_s1  ;;  %v3498_v0 = vld [vmem:[#allocation2 + $0xc] sm:$0xff]  ;;  %s3576_s1 = sld [smem:[#allocation3 + $0x2b]] }
  0xaa   :  { %v400_v19 = vmul.f32 %v399_v16, %v3445_v15  ;;  %v386_v20 = vmul.f32 %v385_v17, %v3445_v15  ;;  %v413_v25 = vstv %s2885_s20  ;;  %v401_v27 = vmul.f32 %v399_v16, %v3453_v23  ;;  %s3588_s20 = sld [smem:[#allocation3 + $0x2d]] }
  0xab   :  { %v415_v26 = vmul.f32 %v413_v25, %v3453_v23  ;;  %v387_v28 = vmul.f32 %v385_v17, %v3453_v23  ;;  %v455_v38 = vstv %s3461_s24  ;;  %v533_v17 = vstv %s3496_s8  ;;  %s3603_s24 = sld [smem:[#allocation3 + $0x2e]] }
  0xac   :  { %v456_v57 = vmul.f32 %v455_v38, %v3445_v15  ;;  %s3649_s8 = sld [smem:[#allocation3 + $0x36]] }
  0xaf   :  { %170 = vrot.lane.b32.xlu0 %v166_v29, %s3327_s3  ;;  %156 = vrot.lane.b32.xlu1 %v152_v30, %s3328_s4  ;;  %v441_v30 = vstv %s2887_s22  ;;  %s3590_s22 = sld [smem:[#allocation3 + $0x15]] }
  0xb0   :  { %142 = vrot.lane.b32.xlu2 %v138_v31, %s3326_s29  ;;  %v427_v31 = vstv %s2886_s23  ;;  %v442_v32 = vmul.f32 %v441_v30, %v3445_v15  ;;  %s3598_s23 = sld [smem:[#allocation3 + $0x2f]] }
  0xb1   :  { %v429_v43 = vmul.f32 %v427_v31, %v3453_v23 }
  0xb7   :  { %186 = vrot.lane.b32.xlu0 %v181_v33, %s3329_s7  ;;  %172 = vrot.lane.b32.xlu1 %v167_v34, %s3327_s3  ;;  %v428_v33 = vmul.f32 %v427_v31, %v3445_v15  ;;  %v414_v34 = vmul.f32 %v413_v25, %v3445_v15  ;;  %v535_v31 = vmul.f32 %v533_v17, %v3498_v0 }
  0xb8   :  { %158 = vrot.lane.b32.xlu2 %v153_v35, %s3328_s4 }
  0xbf   :  { %220 = vrot.lane.b32.xlu0 %v216_v39, %s3324_s25  ;;  %206 = vrot.lane.b32.xlu1 %v202_v40, %s3325_s26  ;;  %v103_v39 = vstv %s102_s27  ;;  %v457_v40 = vmul.f32 %v455_v38, %v3453_v23  ;;  %v3533_v38 = vld [vmem:[#allocation2 + $0x5] sm:$0xff]  ;;  %s3615_s27 = sld [smem:[#allocation3 + $0x30]] }
  0xc0   :  { %184 = vrot.lane.b32.xlu2 %v180_v41, %s3329_s7  ;;  %v443_v41 = vmul.f32 %v441_v30, %v3453_v23  ;;  %v105_v52 = vmul.f32 %v103_v39, %v3367_v22 }
  0xc7   :  { %236 = vrot.lane.b32.xlu0 %v231_v44, %s3326_s29  ;;  %222 = vrot.lane.b32.xlu1 %v217_v45, %s3324_s25  ;;  %v104_v44 = vmul.f32 %v103_v39, %v3360_v18  ;;  %v583_v39 = vstv %s3522_s11  ;;  %s3675_s11 = sld [smem:[#allocation3 + $0x3a]] }
  0xc8   :  { %208 = vrot.lane.b32.xlu2 %v203_v46, %s3325_s26 }
  0xcf   :  { %262 = vrot.lane.b32.xlu0 %v258_v49, %s3327_s3  ;;  %248 = vrot.lane.b32.xlu1 %v244_v50, %s3328_s4  ;;  %v3481_v49 = vld [vmem:[#allocation2 + $0x4] sm:$0xff]  ;;  %v491_v50 = vstv %s3469_s28  ;;  %s3624_s28 = sld [smem:[#allocation3 + $0x33]] }
  0xd0   :  { %234 = vrot.lane.b32.xlu2 %v230_v51, %s3326_s29  ;;  %v477_v51 = vstv %s3471_s30  ;;  %v492_v18 = vmul.f32 %v491_v50, %v3481_v49  ;;  %v493_v6 = vmul.f32 %v491_v50, %v3498_v0  ;;  %s3627_s30 = sld [smem:[#allocation3 + $0x32]] }
  0xd7   :  { %278 = vrot.lane.b32.xlu0 %v273_v53, %s3329_s7  ;;  %264 = vrot.lane.b32.xlu1 %v259_v54, %s3327_s3  ;;  %v478_v54 = vmul.f32 %v477_v51, %v3481_v49 }
  0xd8   :  { %250 = vrot.lane.b32.xlu2 %v245_v55, %s3328_s4 }
  0xdf   :  { %312 = vrot.lane.b32.xlu0 %v308_v59, %s3324_s25  ;;  %298 = vrot.lane.b32.xlu1 %v294_v60, %s3325_s26 }
  0xe0   :  { %276 = vrot.lane.b32.xlu2 %v272_v61, %s3329_s7 }
  0xe7   :  { %328 = vrot.lane.b32.xlu0 %v323_v1, %s3326_s29  ;;  %314 = vrot.lane.b32.xlu1 %v309_v2, %s3324_s25  ;;  %v505_v1 = vstv %s3485_s5  ;;  %v195_v2 = vstv %s3487_s6  ;;  %s3639_s5 = sld [smem:[#allocation3 + $0x34]] }
  0xe8   :  { %300 = vrot.lane.b32.xlu2 %v295_v3, %s3325_s26  ;;  %v507_v5 = vmul.f32 %v505_v1, %v3498_v0  ;;  %s3641_s6 = sld [smem:[#allocation3 + $0x1c]] }
  0xef   :  { %354 = vrot.lane.b32.xlu0 %v350_v7, %s3327_s3  ;;  %340 = vrot.lane.b32.xlu1 %v336_v8, %s3328_s4  ;;  %v196_v7 = vmul.f32 %v195_v2, %v3387_v36  ;;  %v197_v36 = vmul.f32 %v195_v2, %v3395_v42 }
  0xf0   :  { %326 = vrot.lane.b32.xlu2 %v322_v9, %s3326_s29  ;;  %v479_v9 = vmul.f32 %v477_v51, %v3498_v0 }
  0xf7   :  { %370 = vrot.lane.b32.xlu0 %v365_v11, %s3329_s7  ;;  %356 = vrot.lane.b32.xlu1 %v351_v12, %s3327_s3 }
  0xf8   :  { %342 = vrot.lane.b32.xlu2 %v337_v13, %s3328_s4 }
  0xf9   :  { %v115_v14 = vpop.permute.xlu2 %114 }
  0xfa   :  { %v120_v47 = vadd.f32 %v115_v14, %v104_v44 }
  0xff   :  { %404 = vrot.lane.b32.xlu0 %v400_v19, %s3324_s25  ;;  %390 = vrot.lane.b32.xlu1 %v386_v20, %s3325_s26  ;;  %v519_v19 = vstv %s3501_s9  ;;  %s3654_s9 = sld [smem:[#allocation3 + $0x35]] }
 0x100   :  { %368 = vrot.lane.b32.xlu2 %v364_v21, %s3329_s7  ;;  %v534_v21 = vmul.f32 %v533_v17, %v3481_v49 }
 0x102   :  { %v117_v24 = vpop.permute.xlu2 %116 }
 0x103   :  { %v121_v55 = vadd.f32 %v117_v24, %v105_v52  ;;  %v520_v24 = vmul.f32 %v519_v19, %v3481_v49 }
 0x107   :  { %420 = vrot.lane.b32.xlu0 %v415_v26, %s3326_s29  ;;  %406 = vrot.lane.b32.xlu1 %v401_v27, %s3324_s25  ;;  %v506_v26 = vmul.f32 %v505_v1, %v3481_v49 }
 0x108   :  { %392 = vrot.lane.b32.xlu2 %v387_v28, %s3325_s26 }
 0x10a   :  { %v143_v29 = vpop.permute.xlu2 %142 }
 0x10f   :  { %446 = vrot.lane.b32.xlu0 %v442_v32, %s3327_s3  ;;  %432 = vrot.lane.b32.xlu1 %v428_v33, %s3328_s4  ;;  %v521_v32 = vmul.f32 %v519_v19, %v3498_v0 }
 0x110   :  { %418 = vrot.lane.b32.xlu2 %v414_v34, %s3326_s29 }
 0x111   :  { %v129_v35 = vpop.permute.xlu0 %128 }
 0x112   :  { %v159_v37 = vpop.permute.xlu2 %158  ;;  %v134_v53 = vadd.f32 %v129_v35, %v120_v47 }
 0x114   :  { %v148_v58 = vadd.f32 %v143_v29, %v134_v53  ;;  %v547_v29 = vstv %s3513_s10  ;;  %s3666_s10 = sld [smem:[#allocation3 + $0x37]] }
 0x115   :  { %v549_v30 = vmul.f32 %v547_v29, %v3498_v0 }
 0x117   :  { %462 = vrot.lane.b32.xlu0 %v457_v40, %s3329_s7  ;;  %448 = vrot.lane.b32.xlu1 %v443_v41, %s3327_s3  ;;  %v569_v40 = vstv %s3525_s12  ;;  %s3678_s12 = sld [smem:[#allocation3 + $0x39]] }
 0x118   :  { %434 = vrot.lane.b32.xlu2 %v429_v43, %s3328_s4  ;;  %v584_v43 = vmul.f32 %v583_v39, %v3533_v38  ;;  %v570_v44 = vmul.f32 %v569_v40, %v3533_v38 }
 0x119   :  { %v131_v45 = vpop.permute.xlu1 %130  ;;  %v145_v46 = vpop.permute.xlu0 %144 }
 0x11a   :  { %v185_v48 = vpop.permute.xlu2 %184  ;;  %v135_v59 = vadd.f32 %v131_v45, %v121_v55  ;;  %v287_v55 = vstv %s3539_s14  ;;  %s3692_s14 = sld [smem:[#allocation3 + $0x23]] }
 0x11c   :  { %v149_v3 = vadd.f32 %v145_v46, %v135_v59  ;;  %v548_v46 = vmul.f32 %v547_v29, %v3481_v49 }
 0x11e   :  { %v163_v10 = vadd.f32 %v159_v37, %v149_v3 }
 0x11f   :  { %496 = vrot.lane.b32.xlu0 %v492_v18, %s3324_s25  ;;  %482 = vrot.lane.b32.xlu1 %v478_v54, %s3325_s26  ;;  %v3549_v18 = vld [vmem:[#allocation2 + $0xd] sm:$0xff]  ;;  %v597_v54 = vstv %s3537_s13  ;;  %s3690_s13 = sld [smem:[#allocation3 + $0x3b]] }
 0x120   :  { %460 = vrot.lane.b32.xlu2 %v456_v57, %s3329_s7  ;;  %v599_v59 = vmul.f32 %v597_v54, %v3549_v18 }
 0x121   :  { %v157_v60 = vpop.permute.xlu1 %156  ;;  %v171_v22 = vpop.permute.xlu0 %170 }
 0x122   :  { %v162_v61 = vadd.f32 %v157_v60, %v148_v58  ;;  %v209_v62 = vpop.permute.xlu2 %208  ;;  %v585_v60 = vmul.f32 %v583_v39, %v3549_v18 }
 0x124   :  { %v176_v4 = vadd.f32 %v171_v22, %v162_v61  ;;  %v288_v22 = vmul.f32 %v287_v55, %v3415_v56  ;;  %v289_v56 = vmul.f32 %v287_v55, %v3424_v63 }
 0x126   :  { %v190_v8 = vadd.f32 %v185_v48, %v176_v4 }
 0x127   :  { %512 = vrot.lane.b32.xlu0 %v507_v5, %s3326_s29  ;;  %498 = vrot.lane.b32.xlu1 %v493_v6, %s3324_s25 }
 0x128   :  { %v198_v11 = vadd.f32 %v196_v7, %v190_v8  ;;  %484 = vrot.lane.b32.xlu2 %v479_v9, %s3325_s26  ;;  %v625_v7 = vstv %s3547_s15  ;;  %v611_v8 = vstv %s3552_s16  ;;  %s3700_s15 = sld [smem:[#allocation3 + $0x3d]] }
 0x129   :  { %v173_v12 = vpop.permute.xlu1 %172  ;;  %v187_v13 = vpop.permute.xlu0 %186  ;;  %s3705_s16 = sld [smem:[#allocation3 + $0x3c]] }
 0x12a   :  { %v177_v14 = vadd.f32 %v173_v12, %v163_v10  ;;  %v235_v16 = vpop.permute.xlu2 %234  ;;  %v626_v10 = vmul.f32 %v625_v7, %v3533_v38 }
 0x12c   :  { %v191_v20 = vadd.f32 %v187_v13, %v177_v14  ;;  %v598_v13 = vmul.f32 %v597_v54, %v3533_v38 }
 0x12e   :  { %v199_v25 = vadd.f32 %v197_v36, %v191_v20  ;;  %v639_v36 = vstv %s3564_s17  ;;  %s3717_s17 = sld [smem:[#allocation3 + $0x3e]] }
 0x12f   :  { %538 = vrot.lane.b32.xlu0 %v534_v21, %s3327_s3  ;;  %524 = vrot.lane.b32.xlu1 %v520_v24, %s3328_s4  ;;  %v641_v21 = vmul.f32 %v639_v36, %v3549_v18  ;;  %v627_v24 = vmul.f32 %v625_v7, %v3549_v18  ;;  %v640_v39 = vmul.f32 %v639_v36, %v3533_v38  ;;  %v767_v36 = vstv %s3624_s28  ;;  %s3777_s28 = sld [smem:[#allocation3 + $0x48]] }
 0x130   :  { %510 = vrot.lane.b32.xlu2 %v506_v26, %s3326_s29  ;;  %v213_v45 = vadd.f32 %v209_v62, %v199_v25  ;;  %v571_v62 = vmul.f32 %v569_v40, %v3549_v18  ;;  %v613_v26 = vmul.f32 %v611_v8, %v3549_v18 }
 0x131   :  { %v207_v27 = vpop.permute.xlu1 %206  ;;  %v221_v28 = vpop.permute.xlu0 %220 }
 0x132   :  { %v251_v42 = vpop.permute.xlu2 %250  ;;  %v212_v33 = vadd.f32 %v207_v27, %v198_v11  ;;  %v612_v11 = vmul.f32 %v611_v8, %v3533_v38 }
 0x134   :  { %v226_v41 = vadd.f32 %v221_v28, %v212_v33 }
 0x136   :  { %v240_v47 = vadd.f32 %v235_v16, %v226_v41 }
 0x137   :  { %554 = vrot.lane.b32.xlu0 %v549_v30, %s3329_s7  ;;  %540 = vrot.lane.b32.xlu1 %v535_v31, %s3327_s3  ;;  %v3584_v30 = vld [vmem:[#allocation2 + $0x6] sm:$0xff]  ;;  %v675_v31 = vstv %s3573_s0  ;;  %s3726_s0 = sld [smem:[#allocation3 + $0x41]] }
 0x138   :  { %526 = vrot.lane.b32.xlu2 %v521_v32, %s3328_s4  ;;  %v661_v32 = vstv %s3576_s1  ;;  %s3729_s1 = sld [smem:[#allocation3 + $0x40]] }
 0x139   :  { %v223_v34 = vpop.permute.xlu1 %222  ;;  %v237_v35 = vpop.permute.xlu0 %236 }
 0x13a   :  { %v277_v37 = vpop.permute.xlu2 %276  ;;  %v227_v48 = vadd.f32 %v223_v34, %v213_v45  ;;  %v676_v34 = vmul.f32 %v675_v31, %v3584_v30  ;;  %v3600_v45 = vld [vmem:[#allocation2 + $0xe] sm:$0xff] }
 0x13b   :  { %v663_v54 = vmul.f32 %v661_v32, %v3600_v45 }
 0x13c   :  { %v241_v57 = vadd.f32 %v237_v35, %v227_v48  ;;  %v662_v35 = vmul.f32 %v661_v32, %v3584_v30  ;;  %v3651_v32 = vld [vmem:[#allocation2 + $0x20] sm:$0xff] }
 0x13e   :  { %v255_v1 = vadd.f32 %v251_v42, %v241_v57 }
 0x13f   :  { %588 = vrot.lane.b32.xlu0 %v584_v43, %s3324_s25  ;;  %574 = vrot.lane.b32.xlu1 %v570_v44, %s3325_s26 }
 0x140   :  { %552 = vrot.lane.b32.xlu2 %v548_v46, %s3329_s7  ;;  %v689_v46 = vstv %s3588_s20  ;;  %s3741_s20 = sld [smem:[#allocation3 + $0x42]] }
 0x141   :  { %v249_v50 = vpop.permute.xlu1 %248  ;;  %v263_v51 = vpop.permute.xlu0 %262 }
 0x142   :  { %v254_v52 = vadd.f32 %v249_v50, %v240_v47  ;;  %v301_v53 = vpop.permute.xlu2 %300  ;;  %v379_v47 = vstv %s3590_s22  ;;  %v691_v50 = vmul.f32 %v689_v46, %v3600_v45  ;;  %s3743_s22 = sld [smem:[#allocation3 + $0x2a]] }
 0x144   :  { %v268_v58 = vadd.f32 %v263_v51, %v254_v52  ;;  %v677_v51 = vmul.f32 %v675_v31, %v3600_v45  ;;  %v380_v52 = vmul.f32 %v379_v47, %v3445_v15  ;;  %v381_v15 = vmul.f32 %v379_v47, %v3453_v23 }
 0x146   :  { %v282_v61 = vadd.f32 %v277_v37, %v268_v58 }
 0x147   :  { %604 = vrot.lane.b32.xlu0 %v599_v59, %s3326_s29  ;;  %590 = vrot.lane.b32.xlu1 %v585_v60, %s3324_s25 }
 0x148   :  { %v290_v2 = vadd.f32 %v288_v22, %v282_v61  ;;  %576 = vrot.lane.b32.xlu2 %v571_v62, %s3325_s26  ;;  %v717_v22 = vstv %s3598_s23  ;;  %v703_v61 = vstv %s3603_s24  ;;  %s3751_s23 = sld [smem:[#allocation3 + $0x44]] }
 0x149   :  { %v265_v3 = vpop.permute.xlu1 %264  ;;  %v279_v4 = vpop.permute.xlu0 %278  ;;  %s3756_s24 = sld [smem:[#allocation3 + $0x43]] }
 0x14a   :  { %v269_v5 = vadd.f32 %v265_v3, %v255_v1  ;;  %v327_v6 = vpop.permute.xlu2 %326  ;;  %v718_v1 = vmul.f32 %v717_v22, %v3584_v30 }
 0x14c   :  { %v283_v9 = vadd.f32 %v279_v4, %v269_v5  ;;  %v690_v4 = vmul.f32 %v689_v46, %v3584_v30 }
 0x14e   :  { %v291_v12 = vadd.f32 %v289_v56, %v283_v9  ;;  %v731_v56 = vstv %s3615_s27  ;;  %s3768_s27 = sld [smem:[#allocation3 + $0x45]] }
 0x14f   :  { %630 = vrot.lane.b32.xlu0 %v626_v10, %s3327_s3  ;;  %616 = vrot.lane.b32.xlu1 %v612_v11, %s3328_s4  ;;  %v733_v10 = vmul.f32 %v731_v56, %v3600_v45  ;;  %v719_v11 = vmul.f32 %v717_v22, %v3600_v45 }
 0x150   :  { %v305_v14 = vadd.f32 %v301_v53, %v291_v12  ;;  %602 = vrot.lane.b32.xlu2 %v598_v13, %s3326_s29  ;;  %v705_v13 = vmul.f32 %v703_v61, %v3600_v45 }
 0x151   :  { %v299_v16 = vpop.permute.xlu1 %298  ;;  %v313_v17 = vpop.permute.xlu0 %312 }
 0x152   :  { %v304_v63 = vadd.f32 %v299_v16, %v290_v2  ;;  %v343_v19 = vpop.permute.xlu2 %342  ;;  %v704_v2 = vmul.f32 %v703_v61, %v3584_v30 }
 0x154   :  { %v318_v20 = vadd.f32 %v313_v17, %v304_v63 }
 0x156   :  { %v332_v25 = vadd.f32 %v327_v6, %v318_v20  ;;  %v753_v20 = vstv %s3627_s30  ;;  %s3780_s30 = sld [smem:[#allocation3 + $0x47]] }
 0x157   :  { %646 = vrot.lane.b32.xlu0 %v641_v21, %s3329_s7  ;;  %632 = vrot.lane.b32.xlu1 %v627_v24, %s3327_s3 }
 0x158   :  { %618 = vrot.lane.b32.xlu2 %v613_v26, %s3328_s4 }
 0x159   :  { %v315_v27 = vpop.permute.xlu1 %314  ;;  %v329_v28 = vpop.permute.xlu0 %328 }
 0x15a   :  { %v319_v42 = vadd.f32 %v315_v27, %v305_v14  ;;  %v369_v29 = vpop.permute.xlu2 %368  ;;  %v732_v27 = vmul.f32 %v731_v56, %v3584_v30  ;;  %v859_v56 = vstv %s3675_s11  ;;  %s3828_s11 = sld [smem:[#allocation3 + $0x4f]] }
 0x15c   :  { %v333_v33 = vadd.f32 %v329_v28, %v319_v42 }
 0x15e   :  { %v347_v37 = vadd.f32 %v343_v19, %v333_v33  ;;  %v3635_v19 = vld [vmem:[#allocation2 + $0x18] sm:$0xff]  ;;  %v781_v33 = vstv %s3639_s5  ;;  %s3792_s5 = sld [smem:[#allocation3 + $0x31]] }
 0x15f   :  { %680 = vrot.lane.b32.xlu0 %v676_v34, %s3324_s25  ;;  %666 = vrot.lane.b32.xlu1 %v662_v35, %s3325_s26  ;;  %v768_v24 = vmul.f32 %v767_v36, %v3635_v19  ;;  %v471_v34 = vstv %s3641_s6  ;;  %s3794_s6 = sld [smem:[#allocation3 + $0x49]] }
 0x160   :  { %644 = vrot.lane.b32.xlu2 %v640_v39, %s3329_s7  ;;  %v769_v39 = vmul.f32 %v767_v36, %v3651_v32 }
 0x161   :  { %v341_v40 = vpop.permute.xlu1 %340  ;;  %v355_v41 = vpop.permute.xlu0 %354 }
 0x162   :  { %v346_v43 = vadd.f32 %v341_v40, %v332_v25  ;;  %v393_v44 = vpop.permute.xlu2 %392  ;;  %v754_v25 = vmul.f32 %v753_v20, %v3635_v19  ;;  %v472_v40 = vmul.f32 %v471_v34, %v3481_v49  ;;  %v473_v49 = vmul.f32 %v471_v34, %v3498_v0 }
 0x164   :  { %v360_v48 = vadd.f32 %v355_v41, %v346_v43  ;;  %v755_v43 = vmul.f32 %v753_v20, %v3651_v32  ;;  %v3702_v20 = vld [vmem:[#allocation2 + $0x21] sm:$0xff] }
 0x166   :  { %v374_v53 = vadd.f32 %v369_v29, %v360_v48 }
 0x167   :  { %696 = vrot.lane.b32.xlu0 %v691_v50, %s3326_s29  ;;  %682 = vrot.lane.b32.xlu1 %v677_v51, %s3324_s25  ;;  %v809_v51 = vstv %s3649_s8  ;;  %s3802_s8 = sld [smem:[#allocation3 + $0x4b]] }
 0x168   :  { %v382_v55 = vadd.f32 %v380_v52, %v374_v53  ;;  %668 = vrot.lane.b32.xlu2 %v663_v54, %s3325_s26  ;;  %v795_v52 = vstv %s3654_s9  ;;  %v810_v54 = vmul.f32 %v809_v51, %v3635_v19  ;;  %s3806_s9 = sld [smem:[#allocation3 + $0x4a]] }
 0x169   :  { %v357_v57 = vpop.permute.xlu1 %356  ;;  %v371_v58 = vpop.permute.xlu0 %370 }
 0x16a   :  { %v361_v59 = vadd.f32 %v357_v57, %v347_v37  ;;  %v419_v60 = vpop.permute.xlu2 %418  ;;  %v783_v37 = vmul.f32 %v781_v33, %v3651_v32 }
 0x16c   :  { %v375_v62 = vadd.f32 %v371_v58, %v361_v59  ;;  %v782_v58 = vmul.f32 %v781_v33, %v3635_v19 }
 0x16e   :  { %v383_v3 = vadd.f32 %v381_v15, %v375_v62  ;;  %v823_v15 = vstv %s3666_s10  ;;  %s3820_s10 = sld [smem:[#allocation3 + $0x4c]] }
 0x16f   :  { %722 = vrot.lane.b32.xlu0 %v718_v1, %s3327_s3  ;;  %708 = vrot.lane.b32.xlu1 %v704_v2, %s3328_s4  ;;  %v825_v1 = vmul.f32 %v823_v15, %v3651_v32  ;;  %v811_v2 = vmul.f32 %v809_v51, %v3651_v32 }
 0x170   :  { %v397_v5 = vadd.f32 %v393_v44, %v383_v3  ;;  %694 = vrot.lane.b32.xlu2 %v690_v4, %s3326_s29  ;;  %v797_v4 = vmul.f32 %v795_v52, %v3651_v32 }
 0x171   :  { %v391_v6 = vpop.permute.xlu1 %390  ;;  %v405_v7 = vpop.permute.xlu0 %404 }
 0x172   :  { %v396_v23 = vadd.f32 %v391_v6, %v382_v55  ;;  %v435_v8 = vpop.permute.xlu2 %434  ;;  %v796_v55 = vmul.f32 %v795_v52, %v3635_v19 }
 0x174   :  { %v410_v9 = vadd.f32 %v405_v7, %v396_v23 }
 0x176   :  { %v424_v12 = vadd.f32 %v419_v60, %v410_v9  ;;  %v845_v9 = vstv %s3678_s12  ;;  %s3830_s12 = sld [smem:[#allocation3 + $0x4e]] }
 0x177   :  { %738 = vrot.lane.b32.xlu0 %v733_v10, %s3329_s7  ;;  %724 = vrot.lane.b32.xlu1 %v719_v11, %s3327_s3 }
 0x178   :  { %710 = vrot.lane.b32.xlu2 %v705_v13, %s3328_s4 }
 0x179   :  { %v407_v14 = vpop.permute.xlu1 %406  ;;  %v421_v16 = vpop.permute.xlu0 %420 }
 0x17a   :  { %v411_v17 = vadd.f32 %v407_v14, %v397_v5  ;;  %v461_v63 = vpop.permute.xlu2 %460  ;;  %v824_v14 = vmul.f32 %v823_v15, %v3635_v19  ;;  %v951_v15 = vstv %s3726_s0  ;;  %s3879_s0 = sld [smem:[#allocation3 + $0x56]] }
 0x17c   :  { %v425_v21 = vadd.f32 %v421_v16, %v411_v17 }
 0x17e   :  { %v439_v26 = vadd.f32 %v435_v8, %v425_v21  ;;  %v3686_v8 = vld [vmem:[#allocation2 + $0x19] sm:$0xff]  ;;  %v873_v21 = vstv %s3690_s13  ;;  %s3843_s13 = sld [smem:[#allocation3 + $0x38]] }
 0x17f   :  { %772 = vrot.lane.b32.xlu0 %v768_v24, %s3324_s25  ;;  %758 = vrot.lane.b32.xlu1 %v754_v25, %s3325_s26  ;;  %v860_v11 = vmul.f32 %v859_v56, %v3686_v8  ;;  %v563_v24 = vstv %s3692_s14  ;;  %s3845_s14 = sld [smem:[#allocation3 + $0x50]] }
 0x180   :  { %736 = vrot.lane.b32.xlu2 %v732_v27, %s3329_s7  ;;  %v861_v27 = vmul.f32 %v859_v56, %v3702_v20 }
 0x181   :  { %v433_v28 = vpop.permute.xlu1 %432  ;;  %v447_v42 = vpop.permute.xlu0 %446 }
 0x182   :  { %v438_v29 = vadd.f32 %v433_v28, %v424_v12  ;;  %v485_v31 = vpop.permute.xlu2 %484  ;;  %v846_v12 = vmul.f32 %v845_v9, %v3686_v8  ;;  %v564_v28 = vmul.f32 %v563_v24, %v3533_v38  ;;  %v565_v38 = vmul.f32 %v563_v24, %v3549_v18 }
 0x184   :  { %v452_v35 = vadd.f32 %v447_v42, %v438_v29  ;;  %v847_v29 = vmul.f32 %v845_v9, %v3702_v20  ;;  %v3753_v9 = vld [vmem:[#allocation2 + $0x22] sm:$0xff] }
 0x186   :  { %v466_v41 = vadd.f32 %v461_v63, %v452_v35 }
 0x187   :  { %788 = vrot.lane.b32.xlu0 %v783_v37, %s3326_s29  ;;  %774 = vrot.lane.b32.xlu1 %v769_v39, %s3324_s25  ;;  %v901_v39 = vstv %s3700_s15  ;;  %s3853_s15 = sld [smem:[#allocation3 + $0x52]] }
 0x188   :  { %v474_v44 = vadd.f32 %v472_v40, %v466_v41  ;;  %760 = vrot.lane.b32.xlu2 %v755_v43, %s3325_s26  ;;  %v887_v40 = vstv %s3705_s16  ;;  %v902_v43 = vmul.f32 %v901_v39, %v3686_v8  ;;  %s3857_s16 = sld [smem:[#allocation3 + $0x51]] }
 0x189   :  { %v449_v46 = vpop.permute.xlu1 %448  ;;  %v463_v47 = vpop.permute.xlu0 %462 }
 0x18a   :  { %v453_v48 = vadd.f32 %v449_v46, %v439_v26  ;;  %v511_v50 = vpop.permute.xlu2 %510  ;;  %v875_v26 = vmul.f32 %v873_v21, %v3702_v20 }
 0x18c   :  { %v467_v53 = vadd.f32 %v463_v47, %v453_v48  ;;  %v874_v47 = vmul.f32 %v873_v21, %v3686_v8 }
 0x18e   :  { %v475_v57 = vadd.f32 %v473_v49, %v467_v53  ;;  %v915_v49 = vstv %s3717_s17  ;;  %s3871_s17 = sld [smem:[#allocation3 + $0x53]] }
 0x18f   :  { %814 = vrot.lane.b32.xlu0 %v810_v54, %s3327_s3  ;;  %800 = vrot.lane.b32.xlu1 %v796_v55, %s3328_s4  ;;  %v917_v54 = vmul.f32 %v915_v49, %v3702_v20  ;;  %v903_v55 = vmul.f32 %v901_v39, %v3702_v20 }
 0x190   :  { %v489_v59 = vadd.f32 %v485_v31, %v475_v57  ;;  %786 = vrot.lane.b32.xlu2 %v782_v58, %s3326_s29  ;;  %v889_v58 = vmul.f32 %v887_v40, %v3702_v20 }
 0x191   :  { %v483_v60 = vpop.permute.xlu1 %482  ;;  %v497_v22 = vpop.permute.xlu0 %496 }
 0x192   :  { %v488_v0 = vadd.f32 %v483_v60, %v474_v44  ;;  %v527_v61 = vpop.permute.xlu2 %526  ;;  %v888_v44 = vmul.f32 %v887_v40, %v3686_v8 }
 0x194   :  { %v502_v62 = vadd.f32 %v497_v22, %v488_v0 }
 0x196   :  { %v516_v3 = vadd.f32 %v511_v50, %v502_v62  ;;  %v937_v62 = vstv %s3729_s1  ;;  %s3881_s1 = sld [smem:[#allocation3 + $0x55]] }
 0x197   :  { %830 = vrot.lane.b32.xlu0 %v825_v1, %s3329_s7  ;;  %816 = vrot.lane.b32.xlu1 %v811_v2, %s3327_s3 }
 0x198   :  { %802 = vrot.lane.b32.xlu2 %v797_v4, %s3328_s4 }
 0x199   :  { %v499_v5 = vpop.permute.xlu1 %498  ;;  %v513_v6 = vpop.permute.xlu0 %512 }
 0x19a   :  { %v503_v7 = vadd.f32 %v499_v5, %v489_v59  ;;  %v553_v23 = vpop.permute.xlu2 %552  ;;  %v916_v5 = vmul.f32 %v915_v49, %v3686_v8  ;;  %v1043_v49 = vstv %s3777_s28  ;;  %s3930_s28 = sld [smem:[#allocation3 + $0x5c]] }
 0x19c   :  { %v517_v10 = vadd.f32 %v513_v6, %v503_v7 }
 0x19e   :  { %v531_v13 = vadd.f32 %v527_v61, %v517_v10  ;;  %v3737_v61 = vld [vmem:[#allocation2 + $0x1a] sm:$0xff]  ;;  %v965_v10 = vstv %s3741_s20  ;;  %s3894_s20 = sld [smem:[#allocation3 + $0x3f]] }
 0x19f   :  { %864 = vrot.lane.b32.xlu0 %v860_v11, %s3324_s25  ;;  %850 = vrot.lane.b32.xlu1 %v846_v12, %s3325_s26  ;;  %v952_v2 = vmul.f32 %v951_v15, %v3737_v61  ;;  %v655_v11 = vstv %s3743_s22  ;;  %s3896_s22 = sld [smem:[#allocation3 + $0x57]] }
 0x1a0   :  { %828 = vrot.lane.b32.xlu2 %v824_v14, %s3329_s7  ;;  %v953_v14 = vmul.f32 %v951_v15, %v3753_v9 }
 0x1a1   :  { %v525_v16 = vpop.permute.xlu1 %524  ;;  %v539_v17 = vpop.permute.xlu0 %538 }
 0x1a2   :  { %v530_v63 = vadd.f32 %v525_v16, %v516_v3  ;;  %v577_v36 = vpop.permute.xlu2 %576  ;;  %v938_v3 = vmul.f32 %v937_v62, %v3737_v61  ;;  %v656_v16 = vmul.f32 %v655_v11, %v3584_v30  ;;  %v657_v30 = vmul.f32 %v655_v11, %v3600_v45 }
 0x1a4   :  { %v544_v25 = vadd.f32 %v539_v17, %v530_v63  ;;  %v939_v63 = vmul.f32 %v937_v62, %v3753_v9  ;;  %v3804_v62 = vld [vmem:[#allocation2 + $0x23] sm:$0xff] }
 0x1a6   :  { %v558_v42 = vadd.f32 %v553_v23, %v544_v25 }
 0x1a7   :  { %880 = vrot.lane.b32.xlu0 %v875_v26, %s3326_s29  ;;  %866 = vrot.lane.b32.xlu1 %v861_v27, %s3324_s25  ;;  %v993_v27 = vstv %s3751_s23  ;;  %s3904_s23 = sld [smem:[#allocation3 + $0x58]] }
 0x1a8   :  { %v566_v31 = vadd.f32 %v564_v28, %v558_v42  ;;  %852 = vrot.lane.b32.xlu2 %v847_v29, %s3325_s26  ;;  %v979_v28 = vstv %s3756_s24  ;;  %v994_v29 = vmul.f32 %v993_v27, %v3737_v61  ;;  %s3908_s24 = sld [smem:[#allocation3 + $0x59]] }
 0x1a9   :  { %v541_v33 = vpop.permute.xlu1 %540  ;;  %v555_v34 = vpop.permute.xlu0 %554 }
 0x1aa   :  { %v545_v35 = vadd.f32 %v541_v33, %v531_v13  ;;  %v603_v37 = vpop.permute.xlu2 %602  ;;  %v967_v13 = vmul.f32 %v965_v10, %v3753_v9 }
 0x1ac   :  { %v559_v41 = vadd.f32 %v555_v34, %v545_v35  ;;  %v966_v34 = vmul.f32 %v965_v10, %v3737_v61 }
 0x1ae   :  { %v567_v46 = vadd.f32 %v565_v38, %v559_v41  ;;  %v1007_v38 = vstv %s3768_s27  ;;  %s3922_s27 = sld [smem:[#allocation3 + $0x5a]] }
 0x1af   :  { %906 = vrot.lane.b32.xlu0 %v902_v43, %s3327_s3  ;;  %892 = vrot.lane.b32.xlu1 %v888_v44, %s3328_s4  ;;  %v1009_v43 = vmul.f32 %v1007_v38, %v3753_v9  ;;  %v995_v44 = vmul.f32 %v993_v27, %v3753_v9 }
 0x1b0   :  { %v581_v48 = vadd.f32 %v577_v36, %v567_v46  ;;  %878 = vrot.lane.b32.xlu2 %v874_v47, %s3326_s29  ;;  %v981_v46 = vmul.f32 %v979_v28, %v3753_v9 }
 0x1b1   :  { %v575_v50 = vpop.permute.xlu1 %574  ;;  %v589_v51 = vpop.permute.xlu0 %588 }
 0x1b2   :  { %v580_v18 = vadd.f32 %v575_v50, %v566_v31  ;;  %v619_v52 = vpop.permute.xlu2 %618  ;;  %v980_v31 = vmul.f32 %v979_v28, %v3737_v61 }
 0x1b4   :  { %v594_v53 = vadd.f32 %v589_v51, %v580_v18 }
 0x1b6   :  { %v608_v57 = vadd.f32 %v603_v37, %v594_v53  ;;  %v1029_v53 = vstv %s3780_s30  ;;  %s3932_s30 = sld [smem:[#allocation3 + $0x5d]] }
 0x1b7   :  { %922 = vrot.lane.b32.xlu0 %v917_v54, %s3329_s7  ;;  %908 = vrot.lane.b32.xlu1 %v903_v55, %s3327_s3 }
 0x1b8   :  { %894 = vrot.lane.b32.xlu2 %v889_v58, %s3328_s4  ;;  %v1008_v58 = vmul.f32 %v1007_v38, %v3737_v61  ;;  %v1135_v38 = vstv %s3828_s11  ;;  %s2938_s11 = sld [smem:[#allocation3 + $0x4d]] }
 0x1b9   :  { %v591_v59 = vpop.permute.xlu1 %590  ;;  %v605_v60 = vpop.permute.xlu0 %604 }
 0x1ba   :  { %v595_v22 = vadd.f32 %v591_v59, %v581_v48  ;;  %v645_v0 = vpop.permute.xlu2 %644 }
 0x1bc   :  { %v609_v1 = vadd.f32 %v605_v60, %v595_v22 }
 0x1be   :  { %v623_v4 = vadd.f32 %v619_v52, %v609_v1  ;;  %v3788_v52 = vld [vmem:[#allocation2 + $0x1b] sm:$0xff]  ;;  %v747_v1 = vstv %s3792_s5  ;;  %s3945_s5 = sld [smem:[#allocation3 + $0x46]] }
 0x1bf   :  { %956 = vrot.lane.b32.xlu0 %v952_v2, %s3324_s25  ;;  %942 = vrot.lane.b32.xlu1 %v938_v3, %s3325_s26  ;;  %v1044_v55 = vmul.f32 %v1043_v49, %v3788_v52  ;;  %v1057_v3 = vstv %s3794_s6  ;;  %s3947_s6 = sld [smem:[#allocation3 + $0x5e]] }
 0x1c0   :  { %920 = vrot.lane.b32.xlu2 %v916_v5, %s3329_s7  ;;  %v1045_v5 = vmul.f32 %v1043_v49, %v3804_v62 }
 0x1c1   :  { %v617_v6 = vpop.permute.xlu1 %616  ;;  %v631_v7 = vpop.permute.xlu0 %630 }
 0x1c2   :  { %v622_v23 = vadd.f32 %v617_v6, %v608_v57  ;;  %v669_v56 = vpop.permute.xlu2 %668  ;;  %v1030_v57 = vmul.f32 %v1029_v53, %v3788_v52 }
 0x1c4   :  { %v636_v12 = vadd.f32 %v631_v7, %v622_v23  ;;  %v1031_v7 = vmul.f32 %v1029_v53, %v3804_v62  ;;  %v748_v23 = vmul.f32 %v747_v1, %v3635_v19  ;;  %v3855_v53 = vld [vmem:[#allocation2 + $0x24] sm:$0xff] }
 0x1c6   :  { %v650_v17 = vadd.f32 %v645_v0, %v636_v12 }
 0x1c7   :  { %972 = vrot.lane.b32.xlu0 %v967_v13, %s3326_s29  ;;  %958 = vrot.lane.b32.xlu1 %v953_v14, %s3324_s25  ;;  %v1085_v14 = vstv %s3802_s8  ;;  %s3955_s8 = sld [smem:[#allocation3 + $0x5f]] }
 0x1c8   :  { %v658_v36 = vadd.f32 %v656_v16, %v650_v17  ;;  %944 = vrot.lane.b32.xlu2 %v939_v63, %s3325_s26  ;;  %v1071_v16 = vstv %s3806_s9  ;;  %v749_v17 = vmul.f32 %v747_v1, %v3651_v32  ;;  %v1086_v19 = vmul.f32 %v1085_v14, %v3788_v52  ;;  %s3959_s9 = sld [smem:[#allocation3 + $0x60]] }
 0x1c9   :  { %v633_v21 = vpop.permute.xlu1 %632  ;;  %v647_v24 = vpop.permute.xlu0 %646 }
 0x1ca   :  { %v637_v25 = vadd.f32 %v633_v21, %v623_v4  ;;  %v695_v26 = vpop.permute.xlu2 %694  ;;  %v1059_v4 = vmul.f32 %v1057_v3, %v3804_v62 }
 0x1cc   :  { %v651_v42 = vadd.f32 %v647_v24, %v637_v25  ;;  %v1058_v24 = vmul.f32 %v1057_v3, %v3788_v52 }
 0x1ce   :  { %v659_v33 = vadd.f32 %v657_v30, %v651_v42  ;;  %v1099_v42 = vstv %s3820_s10  ;;  %s2958_s10 = sld [smem:[#allocation3 + $0x61]] }
 0x1cf   :  { %998 = vrot.lane.b32.xlu0 %v994_v29, %s3327_s3  ;;  %984 = vrot.lane.b32.xlu1 %v980_v31, %s3328_s4  ;;  %v1101_v29 = vmul.f32 %v1099_v42, %v3804_v62  ;;  %v1087_v31 = vmul.f32 %v1085_v14, %v3804_v62 }
 0x1d0   :  { %v673_v35 = vadd.f32 %v669_v56, %v659_v33  ;;  %970 = vrot.lane.b32.xlu2 %v966_v34, %s3326_s29  ;;  %v1073_v33 = vmul.f32 %v1071_v16, %v3804_v62 }
 0x1d1   :  { %v667_v37 = vpop.permute.xlu1 %666  ;;  %v681_v39 = vpop.permute.xlu0 %680 }
 0x1d2   :  { %v672_v45 = vadd.f32 %v667_v37, %v658_v36  ;;  %v711_v40 = vpop.permute.xlu2 %710  ;;  %v1072_v36 = vmul.f32 %v1071_v16, %v3788_v52 }
 0x1d4   :  { %v686_v41 = vadd.f32 %v681_v39, %v672_v45 }
 0x1d6   :  { %v700_v47 = vadd.f32 %v695_v26, %v686_v41  ;;  %v1121_v41 = vstv %s3830_s12  ;;  %s2945_s12 = sld [smem:[#allocation3 + $0x54]] }
 0x1d7   :  { %1014 = vrot.lane.b32.xlu0 %v1009_v43, %s3329_s7  ;;  %1000 = vrot.lane.b32.xlu1 %v995_v44, %s3327_s3 }
 0x1d8   :  { %986 = vrot.lane.b32.xlu2 %v981_v46, %s3328_s4 }
 0x1d9   :  { %v683_v48 = vpop.permute.xlu1 %682  ;;  %v697_v50 = vpop.permute.xlu0 %696 }
 0x1da   :  { %v687_v51 = vadd.f32 %v683_v48, %v673_v35  ;;  %v737_v18 = vpop.permute.xlu2 %736 }
 0x1dc   :  { %v701_v54 = vadd.f32 %v697_v50, %v687_v51 }
 0x1de   :  { %v715_v59 = vadd.f32 %v711_v40, %v701_v54  ;;  %v3839_v40 = vld [vmem:[#allocation2 + $0x1c] sm:$0xff]  ;;  %v839_v54 = vstv %s3843_s13  ;;  %s2952_s13 = sld [smem:[#allocation3 + $0x5b]] }
 0x1df   :  { %1048 = vrot.lane.b32.xlu0 %v1044_v55, %s3324_s25  ;;  %1034 = vrot.lane.b32.xlu1 %v1030_v57, %s3325_s26  ;;  %v1136_v44 = vmul.f32 %v1135_v38, %v3839_v40  ;;  %v1122_v46 = vmul.f32 %v1121_v41, %v3839_v40  ;;  %v1149_v57 = vstv %s3845_s14  ;;  %s3314_s14 = smov 1  }
 0x1e0   :  { %1012 = vrot.lane.b32.xlu2 %v1008_v58, %s3329_s7  ;;  %v1151_v58 = vmul.f32 %v1149_v57, %v3855_v53 }
 0x1e1   :  { %v709_v60 = vpop.permute.xlu1 %708  ;;  %v723_v22 = vpop.permute.xlu0 %722 }
 0x1e2   :  { %v714_v0 = vadd.f32 %v709_v60, %v700_v47  ;;  %v761_v15 = vpop.permute.xlu2 %760  ;;  %v1100_v47 = vmul.f32 %v1099_v42, %v3788_v52  ;;  %v1213_v42 = vstv %s3881_s1 }
 0x1e4   :  { %v728_v2 = vadd.f32 %v723_v22, %v714_v0  ;;  %v1123_v22 = vmul.f32 %v1121_v41, %v3855_v53  ;;  %v840_v0 = vmul.f32 %v839_v54, %v3686_v8  ;;  %v3906_v41 = vld [vmem:[#allocation2 + $0x25] sm:$0xff] }
 0x1e6   :  { %v742_v6 = vadd.f32 %v737_v18, %v728_v2 }
 0x1e7   :  { %1064 = vrot.lane.b32.xlu0 %v1059_v4, %s3326_s29  ;;  %1050 = vrot.lane.b32.xlu1 %v1045_v5, %s3324_s25  ;;  %v1177_v5 = vstv %s3853_s15 }
 0x1e8   :  { %1036 = vrot.lane.b32.xlu2 %v1031_v7, %s3325_s26  ;;  %v750_v56 = vadd.f32 %v748_v23, %v742_v6  ;;  %v1163_v6 = vstv %s3857_s16  ;;  %v841_v7 = vmul.f32 %v839_v54, %v3702_v20  ;;  %v1178_v8 = vmul.f32 %v1177_v5, %v3839_v40 }
 0x1e9   :  { %v725_v10 = vpop.permute.xlu1 %724  ;;  %v739_v11 = vpop.permute.xlu0 %738 }
 0x1ea   :  { %v729_v12 = vadd.f32 %v725_v10, %v715_v59  ;;  %v787_v13 = vpop.permute.xlu2 %786  ;;  %v1137_v59 = vmul.f32 %v1135_v38, %v3855_v53 }
 0x1ec   :  { %v743_v63 = vadd.f32 %v739_v11, %v729_v12  ;;  %v1150_v11 = vmul.f32 %v1149_v57, %v3839_v40 }
 0x1ee   :  { %v751_v21 = vadd.f32 %v749_v17, %v743_v63  ;;  %v1191_v63 = vstv %s3871_s17 }
 0x1ef   :  { %1090 = vrot.lane.b32.xlu0 %v1086_v19, %s3327_s3  ;;  %1076 = vrot.lane.b32.xlu1 %v1072_v36, %s3328_s4  ;;  %v1193_v19 = vmul.f32 %v1191_v63, %v3855_v53  ;;  %v1179_v36 = vmul.f32 %v1177_v5, %v3855_v53 }
 0x1f0   :  { %1062 = vrot.lane.b32.xlu2 %v1058_v24, %s3326_s29  ;;  %v765_v25 = vadd.f32 %v761_v15, %v751_v21  ;;  %v1165_v21 = vmul.f32 %v1163_v6, %v3855_v53 }
 0x1f1   :  { %v759_v26 = vpop.permute.xlu1 %758  ;;  %v773_v32 = vpop.permute.xlu0 %772 }
 0x1f2   :  { %v764_v27 = vadd.f32 %v759_v26, %v750_v56  ;;  %v803_v28 = vpop.permute.xlu2 %802  ;;  %v1164_v56 = vmul.f32 %v1163_v6, %v3839_v40 }
 0x1f4   :  { %v778_v30 = vadd.f32 %v773_v32, %v764_v27 }
 0x1f6   :  { %v792_v34 = vadd.f32 %v787_v13, %v778_v30  ;;  %v1227_v30 = vstv %s3879_s0 }
 0x1f7   :  { %1106 = vrot.lane.b32.xlu0 %v1101_v29, %s3329_s7  ;;  %1092 = vrot.lane.b32.xlu1 %v1087_v31, %s3327_s3 }
 0x1f8   :  { %1078 = vrot.lane.b32.xlu2 %v1073_v33, %s3328_s4 }
 0x1f9   :  { %v775_v35 = vpop.permute.xlu1 %774  ;;  %v789_v37 = vpop.permute.xlu0 %788 }
 0x1fa   :  { %v779_v39 = vadd.f32 %v775_v35, %v765_v25  ;;  %v829_v45 = vpop.permute.xlu2 %828 }
 0x1fc   :  { %v793_v43 = vadd.f32 %v789_v37, %v779_v39 }
 0x1fe   :  { %v807_v48 = vadd.f32 %v803_v28, %v793_v43  ;;  %v3890_v28 = vld [vmem:[#allocation2 + $0x1d] sm:$0xff]  ;;  %v931_v43 = vstv %s3894_s20 }
 0x1ff   :  { %1140 = vrot.lane.b32.xlu0 %v1136_v44, %s3324_s25  ;;  %1126 = vrot.lane.b32.xlu1 %v1122_v46, %s3325_s26  ;;  %v1228_v31 = vmul.f32 %v1227_v30, %v3890_v28  ;;  %v1214_v33 = vmul.f32 %v1213_v42, %v3890_v28  ;;  %v1241_v46 = vstv %s3896_s22 }
 0x200   :  { %1104 = vrot.lane.b32.xlu2 %v1100_v47, %s3329_s7  ;;  %v1229_v47 = vmul.f32 %v1227_v30, %v3906_v41 }
 0x201   :  { %v801_v50 = vpop.permute.xlu1 %800  ;;  %v815_v51 = vpop.permute.xlu0 %814 }
 0x202   :  { %v806_v18 = vadd.f32 %v801_v50, %v792_v34  ;;  %v853_v49 = vpop.permute.xlu2 %852  ;;  %v1192_v34 = vmul.f32 %v1191_v63, %v3839_v40  ;;  %v1319_v63 = vstv %s3932_s30 }
 0x204   :  { %v820_v55 = vadd.f32 %v815_v51, %v806_v18  ;;  %v1215_v51 = vmul.f32 %v1213_v42, %v3906_v41  ;;  %v932_v18 = vmul.f32 %v931_v43, %v3737_v61  ;;  %v3957_v42 = vld [vmem:[#allocation2 + $0x26] sm:$0xff] }
 0x206   :  { %v834_v60 = vadd.f32 %v829_v45, %v820_v55 }
 0x207   :  { %1156 = vrot.lane.b32.xlu0 %v1151_v58, %s3326_s29  ;;  %1142 = vrot.lane.b32.xlu1 %v1137_v59, %s3324_s25  ;;  %v1255_v59 = vstv %s3904_s23 }
 0x208   :  { %1128 = vrot.lane.b32.xlu2 %v1123_v22, %s3325_s26  ;;  %v842_v15 = vadd.f32 %v840_v0, %v834_v60  ;;  %v1269_v60 = vstv %s3908_s24  ;;  %v933_v22 = vmul.f32 %v931_v43, %v3753_v9  ;;  %v1256_v61 = vmul.f32 %v1255_v59, %v3890_v28 }
 0x209   :  { %v817_v1 = vpop.permute.xlu1 %816  ;;  %v831_v2 = vpop.permute.xlu0 %830 }
 0x20a   :  { %v821_v3 = vadd.f32 %v817_v1, %v807_v48  ;;  %v879_v4 = vpop.permute.xlu2 %878  ;;  %v1243_v48 = vmul.f32 %v1241_v46, %v3906_v41 }
 0x20c   :  { %v835_v23 = vadd.f32 %v831_v2, %v821_v3  ;;  %v1242_v2 = vmul.f32 %v1241_v46, %v3890_v28 }
 0x20e   :  { %v843_v10 = vadd.f32 %v841_v7, %v835_v23  ;;  %v1283_v23 = vstv %s3922_s27 }
 0x20f   :  { %1182 = vrot.lane.b32.xlu0 %v1178_v8, %s3327_s3  ;;  %1168 = vrot.lane.b32.xlu1 %v1164_v56, %s3328_s4  ;;  %v1271_v8 = vmul.f32 %v1269_v60, %v3906_v41  ;;  %v1285_v56 = vmul.f32 %v1283_v23, %v3906_v41 }
 0x210   :  { %1154 = vrot.lane.b32.xlu2 %v1150_v11, %s3326_s29  ;;  %v857_v12 = vadd.f32 %v853_v49, %v843_v10  ;;  %v1257_v10 = vmul.f32 %v1255_v59, %v3906_v41 }
 0x211   :  { %v851_v13 = vpop.permute.xlu1 %850  ;;  %v865_v20 = vpop.permute.xlu0 %864 }
 0x212   :  { %v856_v14 = vadd.f32 %v851_v13, %v842_v15  ;;  %v895_v16 = vpop.permute.xlu2 %894  ;;  %v1270_v15 = vmul.f32 %v1269_v60, %v3890_v28 }
 0x214   :  { %v870_v17 = vadd.f32 %v865_v20, %v856_v14 }
 0x216   :  { %v884_v24 = vadd.f32 %v879_v4, %v870_v17  ;;  %v1305_v17 = vstv %s3930_s28 }
 0x217   :  { %1198 = vrot.lane.b32.xlu0 %v1193_v19, %s3329_s7  ;;  %1184 = vrot.lane.b32.xlu1 %v1179_v36, %s3327_s3 }
 0x218   :  { %1170 = vrot.lane.b32.xlu2 %v1165_v21, %s3328_s4 }
 0x219   :  { %v867_v25 = vpop.permute.xlu1 %866  ;;  %v881_v26 = vpop.permute.xlu0 %880 }
 0x21a   :  { %v871_v32 = vadd.f32 %v867_v25, %v857_v12  ;;  %v921_v27 = vpop.permute.xlu2 %920 }
 0x21c   :  { %v885_v29 = vadd.f32 %v881_v26, %v871_v32 }
 0x21e   :  { %v899_v35 = vadd.f32 %v895_v16, %v885_v29  ;;  %v3941_v16 = vld [vmem:[#allocation2 + $0x1e] sm:$0xff]  ;;  %v1023_v29 = vstv %s3945_s5 }
 0x21f   :  { %1232 = vrot.lane.b32.xlu0 %v1228_v31, %s3324_s25  ;;  %1218 = vrot.lane.b32.xlu1 %v1214_v33, %s3325_s26  ;;  %v1306_v36 = vmul.f32 %v1305_v17, %v3941_v16  ;;  %v1320_v21 = vmul.f32 %v1319_v63, %v3941_v16  ;;  %v1333_v33 = vstv %s3947_s6 }
 0x220   :  { %1196 = vrot.lane.b32.xlu2 %v1192_v34, %s3329_s7  ;;  %v1321_v34 = vmul.f32 %v1319_v63, %v3957_v42 }
 0x221   :  { %v893_v37 = vpop.permute.xlu1 %892  ;;  %v907_v39 = vpop.permute.xlu0 %906 }
 0x222   :  { %v898_v45 = vadd.f32 %v893_v37, %v884_v24  ;;  %v945_v38 = vpop.permute.xlu2 %944  ;;  %v1284_v24 = vmul.f32 %v1283_v23, %v3890_v28 }
 0x224   :  { %v912_v44 = vadd.f32 %v907_v39, %v898_v45  ;;  %v1307_v39 = vmul.f32 %v1305_v17, %v3957_v42  ;;  %v1024_v45 = vmul.f32 %v1023_v29, %v3788_v52 }
 0x226   :  { %v926_v50 = vadd.f32 %v921_v27, %v912_v44 }
 0x227   :  { %1234 = vrot.lane.b32.xlu1 %v1229_v47, %s3324_s25  ;;  %1248 = vrot.lane.b32.xlu0 %v1243_v48, %s3326_s29  ;;  %v1347_v48 = vstv %s3955_s8 }
 0x228   :  { %1220 = vrot.lane.b32.xlu2 %v1215_v51, %s3325_s26  ;;  %v934_v49 = vadd.f32 %v932_v18, %v926_v50  ;;  %v1361_v50 = vstv %s3959_s9  ;;  %v1025_v51 = vmul.f32 %v1023_v29, %v3804_v62 }
 0x229   :  { %v909_v54 = vpop.permute.xlu1 %908  ;;  %v923_v55 = vpop.permute.xlu0 %922  ;;  %v1362_v52 = vmul.f32 %v1361_v50, %v3941_v16 }
 0x22a   :  { %v913_v57 = vadd.f32 %v909_v54, %v899_v35  ;;  %v971_v58 = vpop.permute.xlu2 %970  ;;  %v1335_v35 = vmul.f32 %v1333_v33, %v3957_v42 }
 0x22c   :  { %v927_v0 = vadd.f32 %v923_v55, %v913_v57  ;;  %v1334_v55 = vmul.f32 %v1333_v33, %v3941_v16 }
 0x22e   :  { %v935_v1 = vadd.f32 %v933_v22, %v927_v0  ;;  %v1375_v0 = vstv %s2958_s10 }
 0x22f   :  { %1260 = vrot.lane.b32.xlu1 %v1256_v61, %s3328_s4  ;;  %1274 = vrot.lane.b32.xlu0 %v1270_v15, %s3327_s3  ;;  %v1363_v61 = vmul.f32 %v1361_v50, %v3957_v42  ;;  %v1377_v15 = vmul.f32 %v1375_v0, %v3957_v42 }
 0x230   :  { %1246 = vrot.lane.b32.xlu2 %v1242_v2, %s3326_s29  ;;  %v949_v3 = vadd.f32 %v945_v38, %v935_v1  ;;  %v1349_v1 = vmul.f32 %v1347_v48, %v3957_v42 }
 0x231   :  { %v943_v4 = vpop.permute.xlu1 %942  ;;  %v957_v9 = vpop.permute.xlu0 %956 }
 0x232   :  { %v948_v5 = vadd.f32 %v943_v4, %v934_v49  ;;  %v987_v6 = vpop.permute.xlu2 %986  ;;  %v1348_v49 = vmul.f32 %v1347_v48, %v3941_v16 }
 0x234   :  { %v962_v7 = vadd.f32 %v957_v9, %v948_v5 }
 0x236   :  { %v976_v11 = vadd.f32 %v971_v58, %v962_v7  ;;  %v1376_v7 = vmul.f32 %v1375_v0, %v3941_v16 }
 0x237   :  { %1276 = vrot.lane.b32.xlu1 %v1271_v8, %s3327_s3  ;;  %1290 = vrot.lane.b32.xlu0 %v1285_v56, %s3329_s7 }
 0x238   :  { %1262 = vrot.lane.b32.xlu2 %v1257_v10, %s3328_s4 }
 0x239   :  { %v959_v12 = vpop.permute.xlu1 %958  ;;  %v973_v13 = vpop.permute.xlu0 %972 }
 0x23a   :  { %v963_v20 = vadd.f32 %v959_v12, %v949_v3  ;;  %v1013_v14 = vpop.permute.xlu2 %1012  ;;  %v1115_v12 = vstv %s2938_s11 }
 0x23c   :  { %v977_v19 = vadd.f32 %v973_v13, %v963_v20 }
 0x23e   :  { %v991_v25 = vadd.f32 %v987_v6, %v977_v19 }
 0x23f   :  { %1310 = vrot.lane.b32.xlu1 %v1306_v36, %s3325_s26  ;;  %1324 = vrot.lane.b32.xlu0 %v1320_v21, %s3324_s25 }
 0x240   :  { %1288 = vrot.lane.b32.xlu2 %v1284_v24, %s3329_s7  ;;  %v1117_v24 = vmul.f32 %v1115_v12, %v3855_v53 }
 0x241   :  { %v985_v26 = vpop.permute.xlu1 %984  ;;  %v999_v32 = vpop.permute.xlu0 %998 }
 0x242   :  { %v990_v27 = vadd.f32 %v985_v26, %v976_v11  ;;  %v1037_v30 = vpop.permute.xlu2 %1036 }
 0x244   :  { %v1004_v31 = vadd.f32 %v999_v32, %v990_v27 }
 0x246   :  { %v1018_v37 = vadd.f32 %v1013_v14, %v1004_v31  ;;  %v1116_v14 = vmul.f32 %v1115_v12, %v3839_v40 }
 0x247   :  { %1326 = vrot.lane.b32.xlu1 %v1321_v34, %s3324_s25  ;;  %1340 = vrot.lane.b32.xlu0 %v1335_v35, %s3326_s29 }
 0x248   :  { %1312 = vrot.lane.b32.xlu2 %v1307_v39, %s3325_s26  ;;  %v1026_v38 = vadd.f32 %v1024_v45, %v1018_v37 }
 0x249   :  { %v1001_v43 = vpop.permute.xlu1 %1000  ;;  %v1015_v44 = vpop.permute.xlu0 %1014 }
 0x24a   :  { %v1005_v46 = vadd.f32 %v1001_v43, %v991_v25  ;;  %v1063_v47 = vpop.permute.xlu2 %1062 }
 0x24c   :  { %v1019_v18 = vadd.f32 %v1015_v44, %v1005_v46  ;;  %v1207_v46 = vstv %s2945_s12 }
 0x24d   :  { %v1208_v50 = vmul.f32 %v1207_v46, %v3890_v28 }
 0x24e   :  { %v1027_v54 = vadd.f32 %v1025_v51, %v1019_v18 }
 0x24f   :  { %1352 = vrot.lane.b32.xlu1 %v1348_v49, %s3328_s4  ;;  %1366 = vrot.lane.b32.xlu0 %v1362_v52, %s3327_s3 }
 0x250   :  { %1338 = vrot.lane.b32.xlu2 %v1334_v55, %s3326_s29  ;;  %v1041_v57 = vadd.f32 %v1037_v30, %v1027_v54 }
 0x251   :  { %v1035_v58 = vpop.permute.xlu1 %1034  ;;  %v1049_v59 = vpop.permute.xlu0 %1048 }
 0x252   :  { %v1040_v60 = vadd.f32 %v1035_v58, %v1026_v38  ;;  %v1079_v62 = vpop.permute.xlu2 %1078 }
 0x254   :  { %v1054_v22 = vadd.f32 %v1049_v59, %v1040_v60 }
 0x256   :  { %v1068_v2 = vadd.f32 %v1063_v47, %v1054_v22 }
 0x257   :  { %1368 = vrot.lane.b32.xlu1 %v1363_v61, %s3327_s3  ;;  %1382 = vrot.lane.b32.xlu0 %v1377_v15, %s3329_s7 }
 0x258   :  { %1354 = vrot.lane.b32.xlu2 %v1349_v1, %s3328_s4 }
 0x259   :  { %v1051_v3 = vpop.permute.xlu1 %1050  ;;  %v1065_v4 = vpop.permute.xlu0 %1064 }
 0x25a   :  { %v1055_v9 = vadd.f32 %v1051_v3, %v1041_v57  ;;  %v1105_v5 = vpop.permute.xlu2 %1104  ;;  %v1209_v57 = vmul.f32 %v1207_v46, %v3906_v41  ;;  %v1430_v46 = vld [vmem:[#allocation7 + $0x40] sm:$0xff]  }
 0x25c   :  { %v1069_v6 = vadd.f32 %v1065_v4, %v1055_v9 }
 0x25e   :  { %v1083_v23 = vadd.f32 %v1079_v62, %v1069_v6 }
 0x260   :  { %1380 = vrot.lane.b32.xlu2 %v1376_v7, %s3329_s7  ;;  %v1299_v7 = vstv %s2952_s13 }
 0x261   :  { %v1077_v8 = vpop.permute.xlu1 %1076  ;;  %v1091_v56 = vpop.permute.xlu0 %1090 }
 0x262   :  { %v1082_v10 = vadd.f32 %v1077_v8, %v1068_v2  ;;  %v1129_v11 = vpop.permute.xlu2 %1128 }
 0x264   :  { %v1096_v13 = vadd.f32 %v1091_v56, %v1082_v10  ;;  %v1300_v10 = vmul.f32 %v1299_v7, %v3941_v16 }
 0x266   :  { %v1110_v20 = vadd.f32 %v1105_v5, %v1096_v13 }
 0x268   :  { %v1118_v17 = vadd.f32 %v1116_v14, %v1110_v20 }
 0x269   :  { %v1093_v63 = vpop.permute.xlu1 %1092  ;;  %v1107_v19 = vpop.permute.xlu0 %1106 }
 0x26a   :  { %v1097_v36 = vadd.f32 %v1093_v63, %v1083_v23  ;;  %v1155_v21 = vpop.permute.xlu2 %1154 }
 0x26c   :  { %v1111_v25 = vadd.f32 %v1107_v19, %v1097_v36 }
 0x26e   :  { %v1119_v26 = vadd.f32 %v1117_v24, %v1111_v25 }
 0x270   :  { %v1133_v37 = vadd.f32 %v1129_v11, %v1119_v26 }
 0x271   :  { %v1127_v32 = vpop.permute.xlu1 %1126  ;;  %v1141_v27 = vpop.permute.xlu0 %1140 }
 0x272   :  { %v1171_v30 = vpop.permute.xlu2 %1170  ;;  %v1132_v29 = vadd.f32 %v1127_v32, %v1118_v17  ;;  %v1301_v17 = vmul.f32 %v1299_v7, %v3957_v42 }
 0x274   :  { %v1146_v35 = vadd.f32 %v1141_v27, %v1132_v29 }
 0x276   :  { %v1160_v39 = vadd.f32 %v1155_v21, %v1146_v35 }
 0x279   :  { %v1143_v31 = vpop.permute.xlu1 %1142  ;;  %v1157_v33 = vpop.permute.xlu0 %1156 }
 0x27a   :  { %v1197_v34 = vpop.permute.xlu2 %1196  ;;  %v1147_v40 = vadd.f32 %v1143_v31, %v1133_v37 }
 0x27c   :  { %v1161_v53 = vadd.f32 %v1157_v33, %v1147_v40 }
 0x27e   :  { %v1175_v51 = vadd.f32 %v1171_v30, %v1161_v53  ;;  %v1431_v53 = vld [vmem:[#allocation7 + $0x48] sm:$0xff]  }
 0x281   :  { %v1169_v45 = vpop.permute.xlu1 %1168  ;;  %v1183_v38 = vpop.permute.xlu0 %1182 }
 0x282   :  { %v1174_v43 = vadd.f32 %v1169_v45, %v1160_v39  ;;  %v1221_v44 = vpop.permute.xlu2 %1220 }
 0x284   :  { %v1188_v47 = vadd.f32 %v1183_v38, %v1174_v43 }
 0x286   :  { %v1202_v48 = vadd.f32 %v1197_v34, %v1188_v47 }
 0x288   :  { %v1210_v18 = vadd.f32 %v1208_v50, %v1202_v48 }
 0x289   :  { %v1185_v49 = vpop.permute.xlu1 %1184  ;;  %v1199_v52 = vpop.permute.xlu0 %1198 }
 0x28a   :  { %v1189_v54 = vadd.f32 %v1185_v49, %v1175_v51  ;;  %v1247_v55 = vpop.permute.xlu2 %1246 }
 0x28c   :  { %v1203_v58 = vadd.f32 %v1199_v52, %v1189_v54 }
 0x28e   :  { %v1211_v59 = vadd.f32 %v1209_v57, %v1203_v58 }
 0x290   :  { %v1225_v28 = vadd.f32 %v1221_v44, %v1211_v59 }
 0x291   :  { %v1219_v60 = vpop.permute.xlu1 %1218  ;;  %v1233_v62 = vpop.permute.xlu0 %1232 }
 0x292   :  { %v1263_v22 = vpop.permute.xlu2 %1262  ;;  %v1224_v0 = vadd.f32 %v1219_v60, %v1210_v18 }
 0x294   :  { %v1238_v1 = vadd.f32 %v1233_v62, %v1224_v0 }
 0x296   :  { %v1252_v4 = vadd.f32 %v1247_v55, %v1238_v1 }
 0x299   :  { %v1235_v61 = vpop.permute.xlu1 %1234  ;;  %v1249_v15 = vpop.permute.xlu0 %1248 }
 0x29a   :  { %v1289_v2 = vpop.permute.xlu2 %1288  ;;  %v1239_v3 = vadd.f32 %v1235_v61, %v1225_v28 }
 0x29c   :  { %v1253_v23 = vadd.f32 %v1249_v15, %v1239_v3 }
 0x29e   :  { %v1267_v11 = vadd.f32 %v1263_v22, %v1253_v23  ;;  %v3298_v23 = vmov %v1431_v53  }
 0x2a1   :  { %v1261_v9 = vpop.permute.xlu1 %1260  ;;  %v1275_v5 = vpop.permute.xlu0 %1274 }
 0x2a2   :  { %v1266_v6 = vadd.f32 %v1261_v9, %v1252_v4  ;;  %v1313_v8 = vpop.permute.xlu2 %1312 }
 0x2a4   :  { %v1280_v41 = vadd.f32 %v1275_v5, %v1266_v6 }
 0x2a6   :  { %v1294_v56 = vadd.f32 %v1289_v2, %v1280_v41  ;;  %v3302_v41 = vmov %v1430_v46  }
 0x2a8   :  { %v1302_v12 = vadd.f32 %v1300_v10, %v1294_v56  ;;  %v3310_v56 = vmov %v1430_v46  }
 0x2a9   :  { %v1277_v13 = vpop.permute.xlu1 %1276  ;;  %v1291_v20 = vpop.permute.xlu0 %1290 }
 0x2aa   :  { %v1281_v14 = vadd.f32 %v1277_v13, %v1267_v11  ;;  %v1339_v36 = vpop.permute.xlu2 %1338 }
 0x2ac   :  { %v1295_v63 = vadd.f32 %v1291_v20, %v1281_v14 }
 0x2ae   :  { %v1303_v19 = vadd.f32 %v1301_v17, %v1295_v63 }
 0x2b0   :  { %v1317_v29 = vadd.f32 %v1313_v8, %v1303_v19  ;;  %v3306_v8 = vmov %v1431_v53  }
 0x2b1   :  { %v1311_v21 = vpop.permute.xlu1 %1310  ;;  %v1325_v24 = vpop.permute.xlu0 %1324 }
 0x2b2   :  { %v1316_v25 = vadd.f32 %v1311_v21, %v1302_v12  ;;  %v1355_v27 = vpop.permute.xlu2 %1354 }
 0x2b4   :  { %v1330_v30 = vadd.f32 %v1325_v24, %v1316_v25 }
 0x2b6   :  { %v1344_v16 = vadd.f32 %v1339_v36, %v1330_v30 }
 0x2b9   :  { %v1327_v26 = vpop.permute.xlu1 %1326  ;;  %v1341_v32 = vpop.permute.xlu0 %1340 }
 0x2ba   :  { %v1331_v31 = vadd.f32 %v1327_v26, %v1317_v29  ;;  %v1381_v39 = vpop.permute.xlu2 %1380 }
 0x2bc   :  { %v1345_v37 = vadd.f32 %v1341_v32, %v1331_v31 }
 0x2be   :  { %v1359_v38 = vadd.f32 %v1355_v27, %v1345_v37 }
 0x2c1   :  { %v1353_v33 = vpop.permute.xlu1 %1352  ;;  %v1367_v34 = vpop.permute.xlu0 %1366 }
 0x2c2   :  { %v1358_v35 = vadd.f32 %v1353_v33, %v1344_v16 }
 0x2c4   :  { %v1372_v40 = vadd.f32 %v1367_v34, %v1358_v35 }
 0x2c6   :  { %v1386_v42 = vadd.f32 %v1381_v39, %v1372_v40 }
 0x2c8   :  { %v2959_v45 = vmul.f32 -1.442695, %v1386_v42 }
 0x2c9   :  { %v1369_v43 = vpop.permute.xlu1 %1368  ;;  %v1383_v47 = vpop.permute.xlu0 %1382 }
 0x2ca   :  { %3156 = vpow2.f32 %v2959_v45  ;;  %v1373_v44 = vadd.f32 %v1369_v43, %v1359_v38 }
 0x2cc   :  { %v1387_v48 = vadd.f32 %v1383_v47, %v1373_v44 }
 0x2ce   :  { %v2960_v50 = vmul.f32 -1.442695, %v1387_v48 }
 0x2d0   :  { %v3157_v51 = vpop.eup %3156  ;;  %3158 = vpow2.f32 %v2960_v50 }
 0x2d1   :  { %v1394_v18 = vadd.f32 1.0, %v3157_v51 }
 0x2d3   :  { %3160 = vrcp.f32 %v1394_v18  ;;  %v1407_v58 = vand.u32 2147483648, %v1394_v18  ;;  %v1405_v60 = vand.u32 2147483647, %v1394_v18  ;;  %vm1401_vm5 = vweird.f32 %v1394_v18 }
 0x2d5   :  { %v1408_v61 = vor.u32 1.1754944e-38, %v1407_v58  ;;  %vm1406_vm8 = vcmp.eq.f32.partialorder %v1405_v60, 8.507059e+37 }
 0x2d6   :  { %v3159_v49 = vpop.eup %3158 }
 0x2d7   :  { %v1395_v52 = vadd.f32 1.0, %v3159_v49 }
 0x2d9   :  { %v3161_v54 = vpop.eup %3160  ;;  %3162 = vrcp.f32 %v1395_v52  ;;  %v1422_v28 = vand.u32 2147483648, %v1395_v52  ;;  %v1420_v4 = vand.u32 2147483647, %v1395_v52  ;;  %vm1416_vm10 = vweird.f32 %v1395_v52 }
 0x2da   :  { %v1397_v55 = vmul.f32 %v3161_v54, %v1394_v18  ;;  %vm1402_vm4 = vweird.f32 %v3161_v54 }
 0x2db   :  { %vm1403_vm6 = vmor %vm1401_vm5, %vm1402_vm4  ;;  %v1423_v5 = vor.u32 1.1754944e-38, %v1422_v28  ;;  %vm1421_vm12 = vcmp.eq.f32.partialorder %v1420_v4, 8.507059e+37 }
 0x2dc   :  { %v1398_v57 = vsub.f32 1.0, %v1397_v55 }
 0x2de   :  { %v1399_v59 = vmul.f32 %v3161_v54, %v1398_v57 }
 0x2df   :  { %v3163_v62 = vpop.eup %3162 }
 0x2e0   :  { %v1400_v22 = vadd.f32 %v3161_v54, %v1399_v59  ;;  %v1412_v0 = vmul.f32 %v3163_v62, %v1395_v52  ;;  %vm1417_vm9 = vweird.f32 %v3163_v62 }
 0x2e1   :  { %vm1418_vm11 = vmor %vm1416_vm10, %vm1417_vm9 }
 0x2e2   :  { %v1404_v15 = vsel %vm1403_vm6, %v3161_v54, %v1400_v22  ;;  %v1413_v1 = vsub.f32 1.0, %v1412_v0 }
 0x2e3   :  { %v1409_v2 = vsel %vm1406_vm8, %v1408_v61, %v1404_v15 }
 0x2e4   :  { %1427 = vst.msk [vmem:[#allocation8] sm:$0xff] %vm1426_vm7, %v1409_v2  ;;  %v1414_v3 = vmul.f32 %v3163_v62, %v1413_v1 }
 0x2e6   :  { %v1415_v9 = vadd.f32 %v3163_v62, %v1414_v3 }
 0x2e8   :  { %v1419_v6 = vsel %vm1418_vm11, %v3163_v62, %v1415_v9 }
 0x2e9   :  { %v1424_v7 = vsel %vm1421_vm12, %v1423_v5, %v1419_v6 }
 0x2ea   :  { %1428 = vst.msk [vmem:[#allocation8 + $0x8] sm:$0xff] %vm1426_vm7, %v1424_v7 }
 0x2eb LB: > { %s2961_s15 = sshll.u32 %s3316_s14, 4  ;;  %s1437_s14 = sadd.s32 1, %s3316_s14   ;;  %s3316_s14 = sphi %s3314_s14, %s1437_s14   ;;  %v3312_v56 = vphi %v3310_v56, %v3311_v56   ;;  %v3308_v8 = vphi %v3306_v8, %v3307_v8   ;;  %v3304_v41 = vphi %v3302_v41, %v3303_v41   ;;  %v3300_v23 = vphi %v3298_v23, %v3299_v23  }
 0x2ec   : > { %s2825_s16 = scalar_lea.vmem [#allocation7], %s2961_s15  ;;  %p1434_p1 = scmp.ge.s32.totalorder %s1437_s14, 4  }
 0x2ed   : > { %v2962_v10 = vld [vmem:[%s2825_s16 + $0x40] sm:$0xff]  ;;  %v2963_v11 = vld [vmem:[%s2825_s16 + $0x48] sm:$0xff]  ;;  %s2965_s17 = sld [smem:[#allocation3 + $0x2]] (%p1434_p1) }
 0x2ee   : > { %v1447_v12 = vadd.f32 %v3312_v56, %v2962_v10   ;;  %v1448_v13 = vadd.f32 %v3308_v8, %v2963_v11   ;;  %v1449_v20 = vmax.f32 %v3304_v41, %v2962_v10   ;;  %v1450_v14 = vmax.f32 %v3300_v23, %v2963_v11   ;;  %1436 = sbr.rel (!%p1434_p1) target bundleno = 747 (0x2eb), region = 66  ;;  %s2964_s0 = sld [smem:[#allocation3 + $0x1]] (%p1434_p1) }
 0x2ef   :  { %s2966_s1 = sld [smem:[#allocation3 + $0x3]] (%p1434_p1) }
 0x2f0   : > { %v3299_v23 = vmov %v1450_v14   ;;  %v3303_v41 = vmov %v1449_v20   ;;  %v3307_v8 = vmov %v1448_v13   ;;  %v3311_v56 = vmov %v1447_v12   ;;  %1465 = vrot.lane.b32.xlu1 (%p1434_p1), %v1449_v20, %s3323_s21  ;;  %s2967_s20 = sld [smem:[#allocation3 + $0x4]] (%p1434_p1) }
 0x2f1   :  { %v1451_v17 = vmul.f32 (%p1434_p1), 0.25, %v1447_v12  ;;  %v1452_v63 = vmul.f32 (%p1434_p1), 0.25, %v1448_v13  ;;  %s2969_s22 = sld [smem:[#allocation3 + $0x6]] (%p1434_p1) }
 0x2f2   :  { %s2972_s23 = sld [smem:[#allocation3 + $0x9]] (%p1434_p1) }
 0x2f3   :  { %1455 = vrot.lane.b32.xlu0 %v1451_v17, %s3323_s21  ;;  %v1496_v36 = vstv %s2965_s17  ;;  %s2971_s24 = sld [smem:[#allocation3 + $0x8]] }
 0x2f4   :  { %v1482_v21 = vstv %s2964_s0  ;;  %s2973_s27 = sld [smem:[#allocation3 + $0xa]] }
 0x2f5   :  { %v1510_v30 = vstv %s2966_s1  ;;  %s2975_s28 = sld [smem:[#allocation3 + $0xc]] }
 0x2f6   :  { %v1524_v34 = vstv %s2967_s20  ;;  %s2974_s30 = sld [smem:[#allocation3 + $0xb]] }
 0x2f7   :  { %v1552_v39 = vstv %s2969_s22  ;;  %s2976_s5 = sld [smem:[#allocation3 + $0xd]] }
 0x2f8   :  { %1467 = vrot.lane.b32.xlu1 %v1450_v14, %s3323_s21  ;;  %v1588_v44 = vstv %s2972_s23  ;;  %s2979_s6 = sld [smem:[#allocation3 + $0x10]] }
 0x2f9   :  { %v1574_v46 = vstv %s2971_s24  ;;  %s2978_s8 = sld [smem:[#allocation3 + $0xf]] }
 0x2fa   :  { %v1602_v51 = vstv %s2973_s27  ;;  %s2980_s9 = sld [smem:[#allocation3 + $0x11]] }
 0x2fb   :  { %1457 = vrot.lane.b32.xlu0 %v1452_v63, %s3323_s21  ;;  %s2968_s21 = sld [smem:[#allocation3 + $0x5]]  ;;  %v1630_v54 = vstv %s2975_s28 }
 0x2fc   :  { %v1616_v55 = vstv %s2974_s30  ;;  %s2982_s10 = sld [smem:[#allocation3 + $0x13]] }
 0x2fd   :  { %v1644_v60 = vstv %s2976_s5  ;;  %s2981_s11 = sld [smem:[#allocation3 + $0x12]] }
 0x2fe   :  { %v1680_v15 = vstv %s2979_s6  ;;  %s2983_s12 = sld [smem:[#allocation3 + $0x14]] }
 0x2ff   :  { %v1666_v1 = vstv %s2978_s8  ;;  %s2986_s13 = sld [smem:[#allocation3 + $0x17]] }
 0x300   :  { %v1694_v5 = vstv %s2980_s9  ;;  %s2985_s14 = sld [smem:[#allocation3 + $0x16]] }
 0x301   :  { %v1538_v33 = vstv %s2968_s21  ;;  %s2987_s15 = sld [smem:[#allocation3 + $0x18]] }
 0x302   :  { %v1722_v8 = vstv %s2982_s10  ;;  %s2989_s16 = sld [smem:[#allocation3 + $0x1a]] }
 0x303   :  { %v1708_v56 = vstv %s2981_s11  ;;  %s2988_s17 = sld [smem:[#allocation3 + $0x19]] }
 0x304   :  { %v1736_v13 = vstv %s2983_s12  ;;  %s4101_s0 = sld [smem:[#allocation3 + $0x1b]] }
 0x305   :  { %s1475_s1 = sld [smem:[#allocation3]] }
 0x306   :  { %s4109_s21 = sld [smem:[#allocation3 + $0x1e]] }
 0x307   :  { %s4111_s20 = sld [smem:[#allocation3 + $0x1d]] }
 0x308   :  { %s4124_s22 = sld [smem:[#allocation3 + $0x1f]] }
 0x309   :  { %s4127_s23 = sld [smem:[#allocation3 + $0x7]] }
 0x30a   :  { %s4139_s24 = sld [smem:[#allocation3 + $0x21]] }
 0x30b   :  { %s4141_s27 = sld [smem:[#allocation3 + $0x20]] }
 0x30c   :  { %s4152_s28 = sld [smem:[#allocation3 + $0x22]] }
 0x30d   :  { %s4163_s30 = sld [smem:[#allocation3 + $0x25]] }
 0x30e   :  { %s4165_s5 = sld [smem:[#allocation3 + $0x24]] }
 0x30f   :  { %s4176_s6 = sld [smem:[#allocation3 + $0x26]] }
 0x310   :  { %s4179_s8 = sld [smem:[#allocation3 + $0xe]] }
 0x311   :  { %s4190_s9 = sld [smem:[#allocation3 + $0x28]] }
 0x312   :  { %s4192_s10 = sld [smem:[#allocation3 + $0x27]] }
 0x313   :  { %s4203_s11 = sld [smem:[#allocation3 + $0x29]] }
 0x314   :  { %s4214_s12 = sld [smem:[#allocation3 + $0x2c]] }
 0x362   :  { %v1466_v4 = vpop.permute.xlu1 %1465 }
 0x363   :  { %1471 = vst.msk [vmem:[#allocation2 + $0x1b] sm:$0xff] %vm86_vm3, %v1466_v4 }
 0x365   :  { %v1456_v19 = vpop.permute.xlu0 %1455 }
 0x366   :  { %1461 = vst.msk [vmem:[#allocation2 + $0x3] sm:$0xff] %vm86_vm3, %v1456_v19 }
 0x36a   :  { %v1468_v41 = vpop.permute.xlu1 %1467 }
 0x36b   :  { %1472 = vst.msk [vmem:[#allocation2 + $0x23] sm:$0xff] %vm86_vm3, %v1468_v41 }
 0x36d   :  { %v4000_v24 = vld [vmem:[#allocation2] sm:$0xff]  ;;  %v1458_v25 = vpop.permute.xlu0 %1457 }
 0x36e   :  { %1462 = vst.msk [vmem:[#allocation2 + $0xb] sm:$0xff] %vm86_vm3, %v1458_v25  ;;  %v1497_v26 = vmul.f32 %v1496_v36, %v4000_v24  ;;  %v1483_v32 = vmul.f32 %v1482_v21, %v4000_v24  ;;  %v1539_v35 = vmul.f32 %v1538_v33, %v4000_v24  ;;  %v1525_v37 = vmul.f32 %v1524_v34, %v4000_v24  ;;  %v4027_v43 = vld [vmem:[#allocation2 + $0x1] sm:$0xff] }
 0x36f   :  { %v1511_v40 = vmul.f32 %v1510_v30, %v4000_v24  ;;  %v1589_v53 = vmul.f32 %v1588_v44, %v4027_v43  ;;  %v1575_v47 = vmul.f32 %v1574_v46, %v4027_v43  ;;  %v1553_v48 = vmul.f32 %v1552_v39, %v4000_v24  ;;  %v4055_v61 = vld [vmem:[#allocation2 + $0x2] sm:$0xff] }
 0x370   :  { %1501 = vrot.lane.b32.xlu0 %v1497_v26, %s3324_s25  ;;  %1487 = vrot.lane.b32.xlu2 %v1483_v32, %s3325_s26  ;;  %v1631_v57 = vmul.f32 %v1630_v54, %v4027_v43  ;;  %v1617_v58 = vmul.f32 %v1616_v55, %v4027_v43  ;;  %v1603_v59 = vmul.f32 %v1602_v51, %v4027_v43  ;;  %v4085_v63 = vld [vmem:[#allocation2 + $0x3] sm:$0xff] }
 0x371   :  { %v1681_v2 = vmul.f32 %v1680_v15, %v4055_v61  ;;  %v1667_v28 = vmul.f32 %v1666_v1, %v4055_v61  ;;  %v1645_v3 = vmul.f32 %v1644_v60, %v4027_v43  ;;  %v1723_v10 = vmul.f32 %v1722_v8, %v4055_v61 }
 0x372   :  { %v1709_v11 = vmul.f32 %v1708_v56, %v4055_v61  ;;  %v1695_v12 = vmul.f32 %v1694_v5, %v4055_v61  ;;  %v1737_v32 = vmul.f32 %v1736_v13, %v4055_v61 }
 0x375   :  { %v4007_v27 = vld [vmem:[#allocation2 + $0x8] sm:$0xff] }
 0x376   :  { %v1512_v29 = vmul.f32 %v1510_v30, %v4007_v27  ;;  %v1498_v31 = vmul.f32 %v1496_v36, %v4007_v27  ;;  %v1484_v16 = vmul.f32 %v1482_v21, %v4007_v27  ;;  %v1554_v42 = vmul.f32 %v1552_v39, %v4007_v27  ;;  %v4035_v50 = vld [vmem:[#allocation2 + $0x9] sm:$0xff] }
 0x377   :  { %v1540_v45 = vmul.f32 %v1538_v33, %v4007_v27  ;;  %v1526_v38 = vmul.f32 %v1524_v34, %v4007_v27  ;;  %v1604_v18 = vmul.f32 %v1602_v51, %v4035_v50  ;;  %v1590_v49 = vmul.f32 %v1588_v44, %v4035_v50  ;;  %v4064_v9 = vld [vmem:[#allocation2 + $0xa] sm:$0xff] }
 0x378   :  { %1517 = vrot.lane.b32.xlu0 %v1512_v29, %s3326_s29  ;;  %1503 = vrot.lane.b32.xlu1 %v1498_v31, %s3324_s25  ;;  %v1576_v52 = vmul.f32 %v1574_v46, %v4035_v50  ;;  %v1646_v62 = vmul.f32 %v1644_v60, %v4035_v50  ;;  %v1632_v22 = vmul.f32 %v1630_v54, %v4035_v50  ;;  %v1772_v36 = vstv %s2986_s13  ;;  %v4093_v30 = vld [vmem:[#allocation2 + $0xb] sm:$0xff]  ;;  %s4216_s13 = sld [smem:[#allocation3 + $0x2b]] }
 0x379   :  { %1489 = vrot.lane.b32.xlu2 %v1484_v16, %s3325_s26  ;;  %v1618_v0 = vmul.f32 %v1616_v55, %v4035_v50  ;;  %v1696_v6 = vmul.f32 %v1694_v5, %v4064_v9  ;;  %v1682_v7 = vmul.f32 %v1680_v15, %v4064_v9  ;;  %v1668_v23 = vmul.f32 %v1666_v1, %v4064_v9  ;;  %v4121_v55 = vld [vmem:[#allocation2 + $0x4] sm:$0xff]  ;;  %v4136_v4 = vld [vmem:[#allocation2 + $0xc] sm:$0xff] }
 0x37a   :  { %v1738_v20 = vmul.f32 %v1736_v13, %v4064_v9  ;;  %v1724_v14 = vmul.f32 %v1722_v8, %v4064_v9  ;;  %v1710_v17 = vmul.f32 %v1708_v56, %v4064_v9  ;;  %v1758_v21 = vstv %s2985_s14  ;;  %s4227_s14 = sld [smem:[#allocation3 + $0x2d]] }
 0x37b   :  { %v1773_v25 = vmul.f32 %v1772_v36, %v4085_v63  ;;  %v1759_v26 = vmul.f32 %v1758_v21, %v4085_v63  ;;  %v1786_v31 = vstv %s2987_s15  ;;  %v1774_v33 = vmul.f32 %v1772_v36, %v4093_v30  ;;  %s4230_s15 = sld [smem:[#allocation3 + $0x15]] }
 0x37c   :  { %v1788_v16 = vmul.f32 %v1786_v31, %v4093_v30  ;;  %v1760_v34 = vmul.f32 %v1758_v21, %v4093_v30  ;;  %v1828_v46 = vstv %s4101_s0  ;;  %v1878_v5 = vstv %s4124_s22  ;;  %s4254_s0 = sld [smem:[#allocation3 + $0x30]] }
 0x37d   :  { %v1880_v8 = vmul.f32 %v1878_v5, %v4136_v4  ;;  %v1906_v36 = vstv %s4139_s24  ;;  %s4281_s22 = sld [smem:[#allocation3 + $0x1c]] }
 0x37e   :  { %s4294_s24 = sld [smem:[#allocation3 + $0x35]] }
 0x380   :  { %1543 = vrot.lane.b32.xlu0 %v1539_v35, %s3327_s3  ;;  %1529 = vrot.lane.b32.xlu1 %v1525_v37, %s3328_s4  ;;  %v1814_v37 = vstv %s2989_s16  ;;  %s4241_s16 = sld [smem:[#allocation3 + $0x2f]] }
 0x381   :  { %1515 = vrot.lane.b32.xlu2 %v1511_v40, %s3326_s29  ;;  %v1800_v40 = vstv %s2988_s17  ;;  %v1815_v39 = vmul.f32 %v1814_v37, %v4085_v63  ;;  %s4243_s17 = sld [smem:[#allocation3 + $0x2e]] }
 0x382   :  { %v1802_v51 = vmul.f32 %v1800_v40, %v4093_v30 }
 0x388   :  { %1559 = vrot.lane.b32.xlu0 %v1554_v42, %s3329_s7  ;;  %1545 = vrot.lane.b32.xlu1 %v1540_v45, %s3327_s3  ;;  %v1801_v42 = vmul.f32 %v1800_v40, %v4085_v63  ;;  %v1787_v45 = vmul.f32 %v1786_v31, %v4085_v63  ;;  %v1879_v31 = vmul.f32 %v1878_v5, %v4121_v55 }
 0x389   :  { %1531 = vrot.lane.b32.xlu2 %v1526_v38, %s3328_s4  ;;  %v1908_v40 = vmul.f32 %v1906_v36, %v4136_v4 }
 0x390   :  { %1593 = vrot.lane.b32.xlu0 %v1589_v53, %s3324_s25  ;;  %1579 = vrot.lane.b32.xlu1 %v1575_v47, %s3325_s26  ;;  %v1830_v53 = vmul.f32 %v1828_v46, %v4093_v30  ;;  %v1476_v47 = vstv %s1475_s1  ;;  %s4265_s1 = sld [smem:[#allocation3 + $0x33]] }
 0x391   :  { %1557 = vrot.lane.b32.xlu2 %v1553_v48, %s3329_s7  ;;  %v1816_v48 = vmul.f32 %v1814_v37, %v4093_v30  ;;  %v1478_v60 = vmul.f32 %v1476_v47, %v4007_v27  ;;  %v1920_v37 = vstv %s4152_s28  ;;  %s4316_s28 = sld [smem:[#allocation3 + $0x3a]] }
 0x398   :  { %1609 = vrot.lane.b32.xlu0 %v1604_v18, %s3326_s29  ;;  %1595 = vrot.lane.b32.xlu1 %v1590_v49, %s3324_s25  ;;  %v1477_v18 = vmul.f32 %v1476_v47, %v4000_v24  ;;  %v1942_v47 = vstv %s4165_s5  ;;  %s4329_s5 = sld [smem:[#allocation3 + $0x3b]] }
 0x399   :  { %1581 = vrot.lane.b32.xlu2 %v1576_v52, %s3325_s26 }
 0x3a0   :  { %1635 = vrot.lane.b32.xlu0 %v1631_v57, %s3327_s3  ;;  %1621 = vrot.lane.b32.xlu1 %v1617_v58, %s3328_s4  ;;  %v1864_v57 = vstv %s4109_s21  ;;  %s4267_s21 = sld [smem:[#allocation3 + $0x32]] }
 0x3a1   :  { %1607 = vrot.lane.b32.xlu2 %v1603_v59, %s3326_s29  ;;  %v1850_v59 = vstv %s4111_s20  ;;  %v1866_v56 = vmul.f32 %v1864_v57, %v4136_v4  ;;  %s4278_s20 = sld [smem:[#allocation3 + $0x34]] }
 0x3a2   :  { %v1851_v24 = vmul.f32 %v1850_v59, %v4121_v55 }
 0x3a8   :  { %1651 = vrot.lane.b32.xlu0 %v1646_v62, %s3329_s7  ;;  %1637 = vrot.lane.b32.xlu1 %v1632_v22, %s3327_s3  ;;  %v1865_v22 = vmul.f32 %v1864_v57, %v4121_v55 }
 0x3a9   :  { %1623 = vrot.lane.b32.xlu2 %v1618_v0, %s3328_s4  ;;  %v1829_v0 = vmul.f32 %v1828_v46, %v4085_v63  ;;  %v4173_v46 = vld [vmem:[#allocation2 + $0x5] sm:$0xff] }
 0x3b0   :  { %1685 = vrot.lane.b32.xlu0 %v1681_v2, %s3324_s25  ;;  %1671 = vrot.lane.b32.xlu1 %v1667_v28, %s3325_s26 }
 0x3b1   :  { %1649 = vrot.lane.b32.xlu2 %v1645_v3, %s3329_s7 }
 0x3b8   :  { %1701 = vrot.lane.b32.xlu0 %v1696_v6, %s3326_s29  ;;  %1687 = vrot.lane.b32.xlu1 %v1682_v7, %s3324_s25  ;;  %v1568_v7 = vstv %s4127_s23  ;;  %s4292_s23 = sld [smem:[#allocation3 + $0x36]] }
 0x3b9   :  { %1673 = vrot.lane.b32.xlu2 %v1668_v23, %s3325_s26 }
 0x3c0   :  { %1727 = vrot.lane.b32.xlu0 %v1723_v10, %s3327_s3  ;;  %1713 = vrot.lane.b32.xlu1 %v1709_v11, %s3328_s4  ;;  %v1852_v10 = vmul.f32 %v1850_v59, %v4136_v4  ;;  %v1569_v11 = vmul.f32 %v1568_v7, %v4027_v43  ;;  %v1570_v43 = vmul.f32 %v1568_v7, %v4035_v50 }
 0x3c1   :  { %1699 = vrot.lane.b32.xlu2 %v1695_v12, %s3326_s29  ;;  %v1922_v50 = vmul.f32 %v1920_v37, %v4136_v4 }
 0x3c8   :  { %1743 = vrot.lane.b32.xlu0 %v1738_v20, %s3329_s7  ;;  %1729 = vrot.lane.b32.xlu1 %v1724_v14, %s3327_s3 }
 0x3c9   :  { %1715 = vrot.lane.b32.xlu2 %v1710_v17, %s3328_s4 }
 0x3ca   :  { %v1488_v19 = vpop.permute.xlu2 %1487 }
 0x3cb   :  { %v1493_v58 = vadd.f32 %v1488_v19, %v1477_v18  ;;  %v1943_v18 = vmul.f32 %v1942_v47, %v4173_v46 }
 0x3d0   :  { %1777 = vrot.lane.b32.xlu0 %v1773_v25, %s3324_s25  ;;  %1763 = vrot.lane.b32.xlu1 %v1759_v26, %s3325_s26  ;;  %v1892_v25 = vstv %s4141_s27  ;;  %s4305_s27 = sld [smem:[#allocation3 + $0x37]] }
 0x3d1   :  { %1741 = vrot.lane.b32.xlu2 %v1737_v32, %s3329_s7  ;;  %v1907_v32 = vmul.f32 %v1906_v36, %v4121_v55 }
 0x3d3   :  { %v1490_v29 = vpop.permute.xlu2 %1489 }
 0x3d4   :  { %v1494_v15 = vadd.f32 %v1490_v29, %v1478_v60  ;;  %v1893_v29 = vmul.f32 %v1892_v25, %v4121_v55 }
 0x3d8   :  { %1793 = vrot.lane.b32.xlu0 %v1788_v16, %s3326_s29  ;;  %1779 = vrot.lane.b32.xlu1 %v1774_v33, %s3324_s25 }
 0x3d9   :  { %1765 = vrot.lane.b32.xlu2 %v1760_v34, %s3325_s26 }
 0x3db   :  { %v1516_v35 = vpop.permute.xlu2 %1515 }
 0x3e0   :  { %1819 = vrot.lane.b32.xlu0 %v1815_v39, %s3327_s3  ;;  %1805 = vrot.lane.b32.xlu1 %v1801_v42, %s3328_s4  ;;  %v1894_v39 = vmul.f32 %v1892_v25, %v4136_v4 }
 0x3e1   :  { %1791 = vrot.lane.b32.xlu2 %v1787_v45, %s3326_s29 }
 0x3e2   :  { %v1502_v38 = vpop.permute.xlu0 %1501 }
 0x3e3   :  { %v1532_v44 = vpop.permute.xlu2 %1531  ;;  %v1507_v62 = vadd.f32 %v1502_v38, %v1493_v58 }
 0x3e5   :  { %v1521_v1 = vadd.f32 %v1516_v35, %v1507_v62  ;;  %v4187_v62 = vld [vmem:[#allocation2 + $0xd] sm:$0xff] }
 0x3e8   :  { %1835 = vrot.lane.b32.xlu0 %v1830_v53, %s3329_s7  ;;  %1821 = vrot.lane.b32.xlu1 %v1816_v48, %s3327_s3  ;;  %v1956_v53 = vstv %s4163_s30  ;;  %s4318_s30 = sld [smem:[#allocation3 + $0x39]] }
 0x3e9   :  { %1807 = vrot.lane.b32.xlu2 %v1802_v51, %s3328_s4  ;;  %v1957_v51 = vmul.f32 %v1956_v53, %v4173_v46 }
 0x3ea   :  { %v1518_v49 = vpop.permute.xlu0 %1517  ;;  %v1504_v52 = vpop.permute.xlu1 %1503 }
 0x3eb   :  { %v1558_v54 = vpop.permute.xlu2 %1557  ;;  %v1508_v2 = vadd.f32 %v1504_v52, %v1494_v15 }
 0x3ed   :  { %v1522_v23 = vadd.f32 %v1518_v49, %v1508_v2  ;;  %v1921_v49 = vmul.f32 %v1920_v37, %v4121_v55  ;;  %v4224_v37 = vld [vmem:[#allocation2 + $0x6] sm:$0xff] }
 0x3ef   :  { %v1536_v13 = vadd.f32 %v1532_v44, %v1522_v23 }
 0x3f0   :  { %1869 = vrot.lane.b32.xlu0 %v1865_v22, %s3324_s25  ;;  %1855 = vrot.lane.b32.xlu1 %v1851_v24, %s3325_s26  ;;  %v1970_v22 = vstv %s4176_s6  ;;  %s4332_s6 = sld [smem:[#allocation3 + $0x23]] }
 0x3f1   :  { %1833 = vrot.lane.b32.xlu2 %v1829_v0, %s3329_s7  ;;  %v1660_v0 = vstv %s4179_s8  ;;  %v1972_v2 = vmul.f32 %v1970_v22, %v4187_v62  ;;  %s4343_s8 = sld [smem:[#allocation3 + $0x3d]] }
 0x3f2   :  { %v1544_v28 = vpop.permute.xlu0 %1543  ;;  %v1530_v3 = vpop.permute.xlu1 %1529 }
 0x3f3   :  { %v1582_v27 = vpop.permute.xlu2 %1581  ;;  %v1535_v6 = vadd.f32 %v1530_v3, %v1521_v1  ;;  %v1944_v3 = vmul.f32 %v1942_v47, %v4187_v62 }
 0x3f5   :  { %v1549_v41 = vadd.f32 %v1544_v28, %v1535_v6  ;;  %v1958_v28 = vmul.f32 %v1956_v53, %v4187_v62 }
 0x3f7   :  { %v1563_v12 = vadd.f32 %v1558_v54, %v1549_v41 }
 0x3f8   :  { %1885 = vrot.lane.b32.xlu0 %v1880_v8, %s3326_s29  ;;  %1871 = vrot.lane.b32.xlu1 %v1866_v56, %s3324_s25  ;;  %v1998_v56 = vstv %s4190_s9  ;;  %s4345_s9 = sld [smem:[#allocation3 + $0x3c]] }
 0x3f9   :  { %1857 = vrot.lane.b32.xlu2 %v1852_v10, %s3325_s26  ;;  %v1571_v20 = vadd.f32 %v1569_v11, %v1563_v12  ;;  %v1984_v11 = vstv %s4192_s10  ;;  %s4356_s10 = sld [smem:[#allocation3 + $0x3e]] }
 0x3fa   :  { %v1560_v14 = vpop.permute.xlu0 %1559  ;;  %v1546_v17 = vpop.permute.xlu1 %1545 }
 0x3fb   :  { %v1608_v19 = vpop.permute.xlu2 %1607  ;;  %v1550_v21 = vadd.f32 %v1546_v17, %v1536_v13  ;;  %v1999_v13 = vmul.f32 %v1998_v56, %v4173_v46 }
 0x3fd   :  { %v1564_v26 = vadd.f32 %v1560_v14, %v1550_v21  ;;  %v1971_v14 = vmul.f32 %v1970_v22, %v4173_v46 }
 0x3ff   :  { %v1572_v16 = vadd.f32 %v1570_v43, %v1564_v26  ;;  %v2012_v43 = vstv %s4203_s11  ;;  %s4367_s11 = sld [smem:[#allocation3 + $0x41]] }
 0x400   :  { %1911 = vrot.lane.b32.xlu0 %v1907_v32, %s3327_s3  ;;  %1897 = vrot.lane.b32.xlu1 %v1893_v29, %s3328_s4  ;;  %v2014_v32 = vmul.f32 %v2012_v43, %v4187_v62  ;;  %v2000_v29 = vmul.f32 %v1998_v56, %v4187_v62 }
 0x401   :  { %1883 = vrot.lane.b32.xlu2 %v1879_v31, %s3326_s29  ;;  %v1586_v52 = vadd.f32 %v1582_v27, %v1572_v16  ;;  %v1661_v27 = vmul.f32 %v1660_v0, %v4055_v61  ;;  %v1662_v61 = vmul.f32 %v1660_v0, %v4064_v9  ;;  %v1986_v31 = vmul.f32 %v1984_v11, %v4187_v62 }
 0x402   :  { %v1594_v33 = vpop.permute.xlu0 %1593  ;;  %v1580_v34 = vpop.permute.xlu1 %1579 }
 0x403   :  { %v1624_v35 = vpop.permute.xlu2 %1623  ;;  %v1585_v42 = vadd.f32 %v1580_v34, %v1571_v20  ;;  %v1985_v20 = vmul.f32 %v1984_v11, %v4173_v46 }
 0x405   :  { %v1599_v48 = vadd.f32 %v1594_v33, %v1585_v42 }
 0x407   :  { %v1613_v54 = vadd.f32 %v1608_v19, %v1599_v48 }
 0x408   :  { %1927 = vrot.lane.b32.xlu0 %v1922_v50, %s3329_s7  ;;  %1913 = vrot.lane.b32.xlu1 %v1908_v40, %s3327_s3  ;;  %v2048_v50 = vstv %s4214_s12  ;;  %s4369_s12 = sld [smem:[#allocation3 + $0x40]] }
 0x409   :  { %1899 = vrot.lane.b32.xlu2 %v1894_v39, %s3328_s4  ;;  %v2034_v39 = vstv %s4216_s13  ;;  %s4380_s13 = sld [smem:[#allocation3 + $0x42]] }
 0x40a   :  { %v1610_v45 = vpop.permute.xlu0 %1609  ;;  %v1596_v38 = vpop.permute.xlu1 %1595 }
 0x40b   :  { %v1650_v44 = vpop.permute.xlu2 %1649  ;;  %v1600_v57 = vadd.f32 %v1596_v38, %v1586_v52  ;;  %v2035_v38 = vmul.f32 %v2034_v39, %v4224_v37 }
 0x40d   :  { %v1614_v15 = vadd.f32 %v1610_v45, %v1600_v57  ;;  %v2049_v45 = vmul.f32 %v2048_v50, %v4224_v37 }
 0x40f   :  { %v1628_v6 = vadd.f32 %v1624_v35, %v1614_v15 }
 0x410   :  { %1961 = vrot.lane.b32.xlu0 %v1957_v51, %s3324_s25  ;;  %1947 = vrot.lane.b32.xlu1 %v1943_v18, %s3325_s26  ;;  %v4238_v18 = vld [vmem:[#allocation2 + $0xe] sm:$0xff] }
 0x411   :  { %1925 = vrot.lane.b32.xlu2 %v1921_v49, %s3329_s7  ;;  %v2062_v49 = vstv %s4227_s14  ;;  %s4383_s14 = sld [smem:[#allocation3 + $0x2a]] }
 0x412   :  { %v1636_v58 = vpop.permute.xlu0 %1635  ;;  %v1622_v59 = vpop.permute.xlu1 %1621 }
 0x413   :  { %v1674_v60 = vpop.permute.xlu2 %1673  ;;  %v1627_v24 = vadd.f32 %v1622_v59, %v1613_v54  ;;  %v1752_v54 = vstv %s4230_s15  ;;  %v2050_v59 = vmul.f32 %v2048_v50, %v4238_v18  ;;  %s4394_s15 = sld [smem:[#allocation3 + $0x44]] }
 0x414   :  { %v1753_v22 = vmul.f32 %v1752_v54, %v4085_v63 }
 0x415   :  { %v1641_v1 = vadd.f32 %v1636_v58, %v1627_v24  ;;  %v2064_v58 = vmul.f32 %v2062_v49, %v4238_v18 }
 0x417   :  { %v1655_v5 = vadd.f32 %v1650_v44, %v1641_v1  ;;  %v2013_v44 = vmul.f32 %v2012_v43, %v4173_v46  ;;  %v2140_v43 = vstv %s4265_s1  ;;  %s4420_s1 = sld [smem:[#allocation3 + $0x47]] }
 0x418   :  { %1977 = vrot.lane.b32.xlu0 %v1972_v2, %s3326_s29  ;;  %1963 = vrot.lane.b32.xlu1 %v1958_v28, %s3324_s25  ;;  %v2090_v28 = vstv %s4241_s16  ;;  %s4396_s16 = sld [smem:[#allocation3 + $0x43]] }
 0x419   :  { %1949 = vrot.lane.b32.xlu2 %v1944_v3, %s3325_s26  ;;  %v1663_v7 = vadd.f32 %v1661_v27, %v1655_v5  ;;  %v2076_v27 = vstv %s4243_s17  ;;  %v1754_v5 = vmul.f32 %v1752_v54, %v4093_v30  ;;  %s4407_s17 = sld [smem:[#allocation3 + $0x45]] }
 0x41a   :  { %v1652_v23 = vpop.permute.xlu0 %1651  ;;  %v1638_v41 = vpop.permute.xlu1 %1637 }
 0x41b   :  { %v1700_v8 = vpop.permute.xlu2 %1699  ;;  %v1642_v10 = vadd.f32 %v1638_v41, %v1628_v6  ;;  %v2091_v6 = vmul.f32 %v2090_v28, %v4224_v37 }
 0x41d   :  { %v1656_v12 = vadd.f32 %v1652_v23, %v1642_v10  ;;  %v2063_v23 = vmul.f32 %v2062_v49, %v4224_v37 }
 0x41f   :  { %v1664_v17 = vadd.f32 %v1662_v61, %v1656_v12  ;;  %v2104_v61 = vstv %s4254_s0  ;;  %s4418_s0 = sld [smem:[#allocation3 + $0x48]] }
 0x420   :  { %2003 = vrot.lane.b32.xlu0 %v1999_v13, %s3327_s3  ;;  %1989 = vrot.lane.b32.xlu1 %v1985_v20, %s3328_s4  ;;  %v2106_v13 = vmul.f32 %v2104_v61, %v4238_v18  ;;  %v2092_v20 = vmul.f32 %v2090_v28, %v4238_v18 }
 0x421   :  { %1975 = vrot.lane.b32.xlu2 %v1971_v14, %s3326_s29  ;;  %v1678_v19 = vadd.f32 %v1674_v60, %v1664_v17  ;;  %v2036_v60 = vmul.f32 %v2034_v39, %v4238_v18  ;;  %v2078_v14 = vmul.f32 %v2076_v27, %v4238_v18  ;;  %v2154_v39 = vstv %s4278_s20  ;;  %s4434_s20 = sld [smem:[#allocation3 + $0x31]] }
 0x422   :  { %v1686_v36 = vpop.permute.xlu0 %1685  ;;  %v1672_v21 = vpop.permute.xlu1 %1671 }
 0x423   :  { %v1716_v25 = vpop.permute.xlu2 %1715  ;;  %v1677_v9 = vadd.f32 %v1672_v21, %v1663_v7  ;;  %v2077_v7 = vmul.f32 %v2076_v27, %v4224_v37 }
 0x425   :  { %v1691_v26 = vadd.f32 %v1686_v36, %v1677_v9 }
 0x427   :  { %v1705_v16 = vadd.f32 %v1700_v8, %v1691_v26  ;;  %v2126_v26 = vstv %s4267_s21  ;;  %s4432_s21 = sld [smem:[#allocation3 + $0x49]] }
 0x428   :  { %2019 = vrot.lane.b32.xlu0 %v2014_v32, %s3329_s7  ;;  %2005 = vrot.lane.b32.xlu1 %v2000_v29, %s3327_s3 }
 0x429   :  { %1991 = vrot.lane.b32.xlu2 %v1986_v31, %s3328_s4 }
 0x42a   :  { %v1702_v33 = vpop.permute.xlu0 %1701  ;;  %v1688_v34 = vpop.permute.xlu1 %1687 }
 0x42b   :  { %v1742_v35 = vpop.permute.xlu2 %1741  ;;  %v1692_v40 = vadd.f32 %v1688_v34, %v1678_v19 }
 0x42d   :  { %v1706_v42 = vadd.f32 %v1702_v33, %v1692_v40  ;;  %v4289_v40 = vld [vmem:[#allocation2 + $0x20] sm:$0xff] }
 0x42f   :  { %v1720_v53 = vadd.f32 %v1716_v25, %v1706_v42  ;;  %v4275_v25 = vld [vmem:[#allocation2 + $0x18] sm:$0xff] }
 0x430   :  { %2053 = vrot.lane.b32.xlu0 %v2049_v45, %s3324_s25  ;;  %2039 = vrot.lane.b32.xlu1 %v2035_v38, %s3325_s26  ;;  %v2141_v29 = vmul.f32 %v2140_v43, %v4275_v25  ;;  %v2127_v31 = vmul.f32 %v2126_v26, %v4275_v25  ;;  %v1844_v45 = vstv %s4281_s22  ;;  %s4444_s22 = sld [smem:[#allocation3 + $0x4b]] }
 0x431   :  { %2017 = vrot.lane.b32.xlu2 %v2013_v44, %s3329_s7  ;;  %v2156_v44 = vmul.f32 %v2154_v39, %v4289_v40 }
 0x432   :  { %v1728_v47 = vpop.permute.xlu0 %1727  ;;  %v1714_v48 = vpop.permute.xlu1 %1713 }
 0x433   :  { %v1766_v51 = vpop.permute.xlu2 %1765  ;;  %v1719_v52 = vadd.f32 %v1714_v48, %v1705_v16  ;;  %v2105_v16 = vmul.f32 %v2104_v61, %v4224_v37  ;;  %v1845_v48 = vmul.f32 %v1844_v45, %v4121_v55  ;;  %v2232_v61 = vstv %s4316_s28  ;;  %s4470_s28 = sld [smem:[#allocation3 + $0x4e]] }
 0x435   :  { %v1733_v57 = vadd.f32 %v1728_v47, %v1719_v52  ;;  %v2128_v47 = vmul.f32 %v2126_v26, %v4289_v40  ;;  %v2246_v26 = vstv %s4329_s5  ;;  %s4485_s5 = sld [smem:[#allocation3 + $0x38]] }
 0x437   :  { %v1747_v24 = vadd.f32 %v1742_v35, %v1733_v57 }
 0x438   :  { %2069 = vrot.lane.b32.xlu0 %v2064_v58, %s3326_s29  ;;  %2055 = vrot.lane.b32.xlu1 %v2050_v59, %s3324_s25  ;;  %v2182_v58 = vstv %s4292_s23  ;;  %s4446_s23 = sld [smem:[#allocation3 + $0x4a]] }
 0x439   :  { %2041 = vrot.lane.b32.xlu2 %v2036_v60, %s3325_s26  ;;  %v1755_v0 = vadd.f32 %v1753_v22, %v1747_v24  ;;  %v2168_v60 = vstv %s4294_s24  ;;  %v1846_v22 = vmul.f32 %v1844_v45, %v4136_v4  ;;  %v2183_v24 = vmul.f32 %v2182_v58, %v4275_v25  ;;  %s4459_s24 = sld [smem:[#allocation3 + $0x4c]] }
 0x43a   :  { %v1744_v15 = vpop.permute.xlu0 %1743  ;;  %v1730_v1 = vpop.permute.xlu1 %1729 }
 0x43b   :  { %v1792_v2 = vpop.permute.xlu2 %1791  ;;  %v1734_v3 = vadd.f32 %v1730_v1, %v1720_v53  ;;  %v2142_v53 = vmul.f32 %v2140_v43, %v4289_v40 }
 0x43d   :  { %v1748_v63 = vadd.f32 %v1744_v15, %v1734_v3  ;;  %v2155_v15 = vmul.f32 %v2154_v39, %v4275_v25 }
 0x43f   :  { %v1756_v41 = vadd.f32 %v1754_v5, %v1748_v63  ;;  %v2196_v5 = vstv %s4305_s27  ;;  %s4468_s27 = sld [smem:[#allocation3 + $0x4f]] }
 0x440   :  { %2095 = vrot.lane.b32.xlu0 %v2091_v6, %s3327_s3  ;;  %2081 = vrot.lane.b32.xlu1 %v2077_v7, %s3328_s4  ;;  %v2198_v6 = vmul.f32 %v2196_v5, %v4289_v40  ;;  %v2184_v7 = vmul.f32 %v2182_v58, %v4289_v40 }
 0x441   :  { %2067 = vrot.lane.b32.xlu2 %v2063_v23, %s3326_s29  ;;  %v1770_v8 = vadd.f32 %v1766_v51, %v1756_v41  ;;  %v2170_v23 = vmul.f32 %v2168_v60, %v4289_v40 }
 0x442   :  { %v1778_v56 = vpop.permute.xlu0 %1777  ;;  %v1764_v10 = vpop.permute.xlu1 %1763 }
 0x443   :  { %v1808_v11 = vpop.permute.xlu2 %1807  ;;  %v1769_v30 = vadd.f32 %v1764_v10, %v1755_v0  ;;  %v2169_v0 = vmul.f32 %v2168_v60, %v4275_v25 }
 0x445   :  { %v1783_v12 = vadd.f32 %v1778_v56, %v1769_v30 }
 0x447   :  { %v1797_v17 = vadd.f32 %v1792_v2, %v1783_v12  ;;  %v2218_v12 = vstv %s4318_s30  ;;  %s4483_s30 = sld [smem:[#allocation3 + $0x50]] }
 0x448   :  { %2111 = vrot.lane.b32.xlu0 %v2106_v13, %s3329_s7  ;;  %2097 = vrot.lane.b32.xlu1 %v2092_v20, %s3327_s3 }
 0x449   :  { %2083 = vrot.lane.b32.xlu2 %v2078_v14, %s3328_s4 }
 0x44a   :  { %v1794_v19 = vpop.permute.xlu0 %1793  ;;  %v1780_v36 = vpop.permute.xlu1 %1779 }
 0x44b   :  { %v1834_v21 = vpop.permute.xlu2 %1833  ;;  %v1784_v9 = vadd.f32 %v1780_v36, %v1770_v8 }
 0x44d   :  { %v1798_v32 = vadd.f32 %v1794_v19, %v1784_v9  ;;  %v4340_v9 = vld [vmem:[#allocation2 + $0x21] sm:$0xff] }
 0x44f   :  { %v1812_v33 = vadd.f32 %v1808_v11, %v1798_v32  ;;  %v4326_v11 = vld [vmem:[#allocation2 + $0x19] sm:$0xff] }
 0x450   :  { %2145 = vrot.lane.b32.xlu0 %v2141_v29, %s3324_s25  ;;  %2131 = vrot.lane.b32.xlu1 %v2127_v31, %s3325_s26  ;;  %v2233_v20 = vmul.f32 %v2232_v61, %v4326_v11  ;;  %v2219_v14 = vmul.f32 %v2218_v12, %v4326_v11  ;;  %v1936_v29 = vstv %s4332_s6  ;;  %s4495_s6 = sld [smem:[#allocation3 + $0x52]] }
 0x451   :  { %2109 = vrot.lane.b32.xlu2 %v2105_v16, %s3329_s7  ;;  %v2248_v16 = vmul.f32 %v2246_v26, %v4340_v9 }
 0x452   :  { %v1820_v34 = vpop.permute.xlu0 %1819  ;;  %v1806_v35 = vpop.permute.xlu1 %1805 }
 0x453   :  { %v1858_v50 = vpop.permute.xlu2 %1857  ;;  %v1811_v42 = vadd.f32 %v1806_v35, %v1797_v17  ;;  %v2197_v17 = vmul.f32 %v2196_v5, %v4275_v25  ;;  %v1937_v35 = vmul.f32 %v1936_v29, %v4173_v46  ;;  %v2324_v5 = vstv %s4367_s11  ;;  %s4521_s11 = sld [smem:[#allocation3 + $0x55]] }
 0x455   :  { %v1825_v38 = vadd.f32 %v1820_v34, %v1811_v42  ;;  %v2220_v34 = vmul.f32 %v2218_v12, %v4340_v9  ;;  %v2338_v12 = vstv %s4380_s13  ;;  %s4536_s13 = sld [smem:[#allocation3 + $0x3f]] }
 0x457   :  { %v1839_v51 = vadd.f32 %v1834_v21, %v1825_v38 }
 0x458   :  { %2161 = vrot.lane.b32.xlu0 %v2156_v44, %s3326_s29  ;;  %2147 = vrot.lane.b32.xlu1 %v2142_v53, %s3324_s25  ;;  %v2274_v44 = vstv %s4343_s8  ;;  %s4497_s8 = sld [smem:[#allocation3 + $0x51]] }
 0x459   :  { %2133 = vrot.lane.b32.xlu2 %v2128_v47, %s3325_s26  ;;  %v1847_v49 = vadd.f32 %v1845_v48, %v1839_v51  ;;  %v2260_v47 = vstv %s4345_s9  ;;  %v1938_v48 = vmul.f32 %v1936_v29, %v4187_v62  ;;  %v2275_v51 = vmul.f32 %v2274_v44, %v4326_v11  ;;  %s4510_s9 = sld [smem:[#allocation3 + $0x53]] }
 0x45a   :  { %v1836_v52 = vpop.permute.xlu0 %1835  ;;  %v1822_v54 = vpop.permute.xlu1 %1821 }
 0x45b   :  { %v1884_v57 = vpop.permute.xlu2 %1883  ;;  %v1826_v59 = vadd.f32 %v1822_v54, %v1812_v33  ;;  %v2234_v33 = vmul.f32 %v2232_v61, %v4340_v9 }
 0x45d   :  { %v1840_v55 = vadd.f32 %v1836_v52, %v1826_v59  ;;  %v2247_v52 = vmul.f32 %v2246_v26, %v4326_v11 }
 0x45f   :  { %v1848_v1 = vadd.f32 %v1846_v22, %v1840_v55  ;;  %v2288_v22 = vstv %s4356_s10  ;;  %s4519_s10 = sld [smem:[#allocation3 + $0x56]] }
 0x460   :  { %2187 = vrot.lane.b32.xlu0 %v2183_v24, %s3327_s3  ;;  %2173 = vrot.lane.b32.xlu1 %v2169_v0, %s3328_s4  ;;  %v2290_v24 = vmul.f32 %v2288_v22, %v4340_v9  ;;  %v2276_v0 = vmul.f32 %v2274_v44, %v4340_v9 }
 0x461   :  { %2159 = vrot.lane.b32.xlu2 %v2155_v15, %s3326_s29  ;;  %v1862_v2 = vadd.f32 %v1858_v50, %v1848_v1  ;;  %v2262_v15 = vmul.f32 %v2260_v47, %v4340_v9 }
 0x462   :  { %v1870_v28 = vpop.permute.xlu0 %1869  ;;  %v1856_v3 = vpop.permute.xlu1 %1855 }
 0x463   :  { %v1900_v27 = vpop.permute.xlu2 %1899  ;;  %v1861_v4 = vadd.f32 %v1856_v3, %v1847_v49  ;;  %v2261_v49 = vmul.f32 %v2260_v47, %v4326_v11 }
 0x465   :  { %v1875_v63 = vadd.f32 %v1870_v28, %v1861_v4 }
 0x467   :  { %v1889_v41 = vadd.f32 %v1884_v57, %v1875_v63  ;;  %v2310_v63 = vstv %s4369_s12  ;;  %s4534_s12 = sld [smem:[#allocation3 + $0x57]] }
 0x468   :  { %2203 = vrot.lane.b32.xlu0 %v2198_v6, %s3329_s7  ;;  %2189 = vrot.lane.b32.xlu1 %v2184_v7, %s3327_s3 }
 0x469   :  { %2175 = vrot.lane.b32.xlu2 %v2170_v23, %s3328_s4 }
 0x46a   :  { %v1886_v8 = vpop.permute.xlu0 %1885  ;;  %v1872_v56 = vpop.permute.xlu1 %1871 }
 0x46b   :  { %v1926_v10 = vpop.permute.xlu2 %1925  ;;  %v1876_v30 = vadd.f32 %v1872_v56, %v1862_v2 }
 0x46d   :  { %v1890_v13 = vadd.f32 %v1886_v8, %v1876_v30  ;;  %v4391_v30 = vld [vmem:[#allocation2 + $0x22] sm:$0xff] }
 0x46f   :  { %v1904_v19 = vadd.f32 %v1900_v27, %v1890_v13  ;;  %v4377_v27 = vld [vmem:[#allocation2 + $0x1a] sm:$0xff] }
 0x470   :  { %2237 = vrot.lane.b32.xlu0 %v2233_v20, %s3324_s25  ;;  %2223 = vrot.lane.b32.xlu1 %v2219_v14, %s3325_s26  ;;  %v2325_v7 = vmul.f32 %v2324_v5, %v4377_v27  ;;  %v2311_v23 = vmul.f32 %v2310_v63, %v4377_v27  ;;  %v2028_v20 = vstv %s4383_s14  ;;  %s4546_s14 = sld [smem:[#allocation3 + $0x59]] }
 0x471   :  { %2201 = vrot.lane.b32.xlu2 %v2197_v17, %s3329_s7  ;;  %v2340_v17 = vmul.f32 %v2338_v12, %v4391_v30 }
 0x472   :  { %v1912_v36 = vpop.permute.xlu0 %1911  ;;  %v1898_v21 = vpop.permute.xlu1 %1897 }
 0x473   :  { %v1950_v43 = vpop.permute.xlu2 %1949  ;;  %v1903_v32 = vadd.f32 %v1898_v21, %v1889_v41  ;;  %v2289_v41 = vmul.f32 %v2288_v22, %v4326_v11  ;;  %v2029_v21 = vmul.f32 %v2028_v20, %v4224_v37  ;;  %v2416_v22 = vstv %s4418_s0  ;;  %s4572_s0 = sld [smem:[#allocation3 + $0x5c]] }
 0x475   :  { %v1917_v31 = vadd.f32 %v1912_v36, %v1903_v32  ;;  %v2312_v36 = vmul.f32 %v2310_v63, %v4391_v30 }
 0x477   :  { %v1931_v50 = vadd.f32 %v1926_v10, %v1917_v31 }
 0x478   :  { %2253 = vrot.lane.b32.xlu0 %v2248_v16, %s3326_s29  ;;  %2239 = vrot.lane.b32.xlu1 %v2234_v33, %s3324_s25  ;;  %v2366_v16 = vstv %s4394_s15  ;;  %s4548_s15 = sld [smem:[#allocation3 + $0x58]] }
 0x479   :  { %2225 = vrot.lane.b32.xlu2 %v2220_v34, %s3325_s26  ;;  %v1939_v39 = vadd.f32 %v1937_v35, %v1931_v50  ;;  %v2352_v34 = vstv %s4396_s16  ;;  %v2030_v35 = vmul.f32 %v2028_v20, %v4238_v18  ;;  %v2367_v50 = vmul.f32 %v2366_v16, %v4377_v27  ;;  %s4561_s16 = sld [smem:[#allocation3 + $0x5a]] }
 0x47a   :  { %v1928_v42 = vpop.permute.xlu0 %1927  ;;  %v1914_v45 = vpop.permute.xlu1 %1913 }
 0x47b   :  { %v1976_v38 = vpop.permute.xlu2 %1975  ;;  %v1918_v53 = vadd.f32 %v1914_v45, %v1904_v19  ;;  %v2326_v19 = vmul.f32 %v2324_v5, %v4391_v30 }
 0x47d   :  { %v1932_v46 = vadd.f32 %v1928_v42, %v1918_v53  ;;  %v2339_v42 = vmul.f32 %v2338_v12, %v4377_v27 }
 0x47f   :  { %v1940_v54 = vadd.f32 %v1938_v48, %v1932_v46  ;;  %v2380_v48 = vstv %s4407_s17  ;;  %s4570_s17 = sld [smem:[#allocation3 + $0x5d]] }
 0x480   :  { %2279 = vrot.lane.b32.xlu0 %v2275_v51, %s3327_s3  ;;  %2265 = vrot.lane.b32.xlu1 %v2261_v49, %s3328_s4  ;;  %v2382_v51 = vmul.f32 %v2380_v48, %v4391_v30  ;;  %v2368_v49 = vmul.f32 %v2366_v16, %v4391_v30 }
 0x481   :  { %2251 = vrot.lane.b32.xlu2 %v2247_v52, %s3326_s29  ;;  %v1954_v57 = vadd.f32 %v1950_v43, %v1940_v54  ;;  %v2354_v52 = vmul.f32 %v2352_v34, %v4391_v30 }
 0x482   :  { %v1962_v58 = vpop.permute.xlu0 %1961  ;;  %v1948_v59 = vpop.permute.xlu1 %1947 }
 0x483   :  { %v1992_v60 = vpop.permute.xlu2 %1991  ;;  %v1953_v62 = vadd.f32 %v1948_v59, %v1939_v39  ;;  %v2353_v39 = vmul.f32 %v2352_v34, %v4377_v27 }
 0x485   :  { %v1967_v55 = vadd.f32 %v1962_v58, %v1953_v62 }
 0x487   :  { %v1981_v1 = vadd.f32 %v1976_v38, %v1967_v55  ;;  %v2402_v55 = vstv %s4420_s1  ;;  %s4585_s1 = sld [smem:[#allocation3 + $0x5e]] }
 0x488   :  { %2295 = vrot.lane.b32.xlu0 %v2290_v24, %s3329_s7  ;;  %2281 = vrot.lane.b32.xlu1 %v2276_v0, %s3327_s3 }
 0x489   :  { %2267 = vrot.lane.b32.xlu2 %v2262_v15, %s3328_s4 }
 0x48a   :  { %v1978_v2 = vpop.permute.xlu0 %1977  ;;  %v1964_v28 = vpop.permute.xlu1 %1963 }
 0x48b   :  { %v2018_v3 = vpop.permute.xlu2 %2017  ;;  %v1968_v4 = vadd.f32 %v1964_v28, %v1954_v57 }
 0x48d   :  { %v1982_v6 = vadd.f32 %v1978_v2, %v1968_v4  ;;  %v4442_v4 = vld [vmem:[#allocation2 + $0x23] sm:$0xff] }
 0x48f   :  { %v1996_v8 = vadd.f32 %v1992_v60, %v1982_v6  ;;  %v4428_v60 = vld [vmem:[#allocation2 + $0x1b] sm:$0xff]  ;;  %v2430_v6 = vstv %s4432_s21  ;;  %s4587_s21 = sld [smem:[#allocation3 + $0x46]] }
 0x490   :  { %2329 = vrot.lane.b32.xlu0 %v2325_v7, %s3324_s25  ;;  %2315 = vrot.lane.b32.xlu1 %v2311_v23, %s3325_s26  ;;  %v2417_v0 = vmul.f32 %v2416_v22, %v4428_v60  ;;  %v2403_v15 = vmul.f32 %v2402_v55, %v4428_v60  ;;  %v2120_v7 = vstv %s4434_s20  ;;  %s4597_s20 = sld [smem:[#allocation3 + $0x60]] }
 0x491   :  { %2293 = vrot.lane.b32.xlu2 %v2289_v41, %s3329_s7  ;;  %v2432_v41 = vmul.f32 %v2430_v6, %v4442_v4 }
 0x492   :  { %v2004_v56 = vpop.permute.xlu0 %2003  ;;  %v1990_v10 = vpop.permute.xlu1 %1989 }
 0x493   :  { %v2042_v61 = vpop.permute.xlu2 %2041  ;;  %v1995_v13 = vadd.f32 %v1990_v10, %v1981_v1  ;;  %v2381_v1 = vmul.f32 %v2380_v48, %v4377_v27  ;;  %v2508_v48 = vstv %s4468_s27  ;;  %s2808_s27 = sshll.u32 %s4643_s2, 4  ;;  %s2809_s27 = int_to_ptr.hbm [resolvable:$true] %s2808_s27 }
 0x495   :  { %v2009_v14 = vadd.f32 %v2004_v56, %v1995_v13  ;;  %v2404_v56 = vmul.f32 %v2402_v55, %v4442_v4 }
 0x497   :  { %v2023_v43 = vadd.f32 %v2018_v3, %v2009_v14 }
 0x498   :  { %2345 = vrot.lane.b32.xlu0 %v2340_v17, %s3326_s29  ;;  %2331 = vrot.lane.b32.xlu1 %v2326_v19, %s3324_s25  ;;  %v2458_v17 = vstv %s4444_s22  ;;  %s4599_s22 = sld [smem:[#allocation3 + $0x5f]] }
 0x499   :  { %2317 = vrot.lane.b32.xlu2 %v2312_v36, %s3325_s26  ;;  %v2031_v26 = vadd.f32 %v2029_v21, %v2023_v43  ;;  %v2444_v36 = vstv %s4446_s23  ;;  %v2122_v21 = vmul.f32 %v2120_v7, %v4289_v40  ;;  %s3060_s23 = sld [smem:[#allocation3 + $0x61]] }
 0x49a   :  { %v2020_v32 = vpop.permute.xlu0 %2019  ;;  %v2006_v29 = vpop.permute.xlu1 %2005 }
 0x49b   :  { %v2068_v31 = vpop.permute.xlu2 %2067  ;;  %v2010_v33 = vadd.f32 %v2006_v29, %v1996_v8  ;;  %v2418_v8 = vmul.f32 %v2416_v22, %v4442_v4 }
 0x49d   :  { %v2024_v37 = vadd.f32 %v2020_v32, %v2010_v33  ;;  %v2431_v32 = vmul.f32 %v2430_v6, %v4428_v60 }
 0x49f   :  { %v2032_v45 = vadd.f32 %v2030_v35, %v2024_v37  ;;  %v2472_v35 = vstv %s4459_s24 }
 0x4a0   :  { %2371 = vrot.lane.b32.xlu0 %v2367_v50, %s3327_s3  ;;  %2357 = vrot.lane.b32.xlu1 %v2353_v39, %s3328_s4  ;;  %v2474_v50 = vmul.f32 %v2472_v35, %v4442_v4  ;;  %v2460_v39 = vmul.f32 %v2458_v17, %v4442_v4 }
 0x4a1   :  { %2343 = vrot.lane.b32.xlu2 %v2339_v42, %s3326_s29  ;;  %v2046_v38 = vadd.f32 %v2042_v61, %v2032_v45  ;;  %v2121_v61 = vmul.f32 %v2120_v7, %v4275_v25  ;;  %v2445_v25 = vmul.f32 %v2444_v36, %v4428_v60  ;;  %v2446_v42 = vmul.f32 %v2444_v36, %v4442_v4 }
 0x4a2   :  { %v2054_v44 = vpop.permute.xlu0 %2053  ;;  %v2040_v53 = vpop.permute.xlu1 %2039 }
 0x4a3   :  { %v2084_v47 = vpop.permute.xlu2 %2083  ;;  %v2045_v18 = vadd.f32 %v2040_v53, %v2031_v26  ;;  %v2459_v26 = vmul.f32 %v2458_v17, %v4428_v60 }
 0x4a5   :  { %v2059_v46 = vadd.f32 %v2054_v44, %v2045_v18 }
 0x4a7   :  { %v2073_v54 = vadd.f32 %v2068_v31, %v2059_v46  ;;  %v2494_v46 = vstv %s4470_s28 }
 0x4a8   :  { %2387 = vrot.lane.b32.xlu0 %v2382_v51, %s3329_s7  ;;  %2373 = vrot.lane.b32.xlu1 %v2368_v49, %s3327_s3 }
 0x4a9   :  { %2359 = vrot.lane.b32.xlu2 %v2354_v52, %s3328_s4 }
 0x4aa   :  { %v2070_v57 = vpop.permute.xlu0 %2069  ;;  %v2056_v58 = vpop.permute.xlu1 %2055 }
 0x4ab   :  { %v2110_v59 = vpop.permute.xlu2 %2109  ;;  %v2060_v62 = vadd.f32 %v2056_v58, %v2046_v38 }
 0x4ad   :  { %v2074_v24 = vadd.f32 %v2070_v57, %v2060_v62  ;;  %v4493_v62 = vld [vmem:[#allocation2 + $0x24] sm:$0xff] }
 0x4af   :  { %v2088_v2 = vadd.f32 %v2084_v47, %v2074_v24  ;;  %v4479_v47 = vld [vmem:[#allocation2 + $0x1c] sm:$0xff]  ;;  %v2522_v24 = vstv %s4483_s30 }
 0x4b0   :  { %2421 = vrot.lane.b32.xlu0 %v2417_v0, %s3324_s25  ;;  %2407 = vrot.lane.b32.xlu1 %v2403_v15, %s3325_s26  ;;  %v2509_v49 = vmul.f32 %v2508_v48, %v4479_v47  ;;  %v2495_v52 = vmul.f32 %v2494_v46, %v4479_v47  ;;  %v2212_v0 = vstv %s4485_s5 }
 0x4b1   :  { %2385 = vrot.lane.b32.xlu2 %v2381_v1, %s3329_s7  ;;  %v2524_v1 = vmul.f32 %v2522_v24, %v4493_v62 }
 0x4b2   :  { %v2096_v28 = vpop.permute.xlu0 %2095  ;;  %v2082_v3 = vpop.permute.xlu1 %2081 }
 0x4b3   :  { %v2134_v5 = vpop.permute.xlu2 %2133  ;;  %v2087_v63 = vadd.f32 %v2082_v3, %v2073_v54  ;;  %v2473_v54 = vmul.f32 %v2472_v35, %v4428_v60 }
 0x4b5   :  { %v2101_v23 = vadd.f32 %v2096_v28, %v2087_v63  ;;  %v2496_v28 = vmul.f32 %v2494_v46, %v4493_v62 }
 0x4b7   :  { %v2115_v10 = vadd.f32 %v2110_v59, %v2101_v23 }
 0x4b8   :  { %2437 = vrot.lane.b32.xlu0 %v2432_v41, %s3326_s29  ;;  %2423 = vrot.lane.b32.xlu1 %v2418_v8, %s3324_s25  ;;  %v2550_v41 = vstv %s4495_s6 }
 0x4b9   :  { %2409 = vrot.lane.b32.xlu2 %v2404_v56, %s3325_s26  ;;  %v2123_v13 = vadd.f32 %v2121_v61, %v2115_v10  ;;  %v2536_v56 = vstv %s4497_s8  ;;  %v2214_v10 = vmul.f32 %v2212_v0, %v4340_v9 }
 0x4ba   :  { %v2112_v12 = vpop.permute.xlu0 %2111  ;;  %v2098_v20 = vpop.permute.xlu1 %2097 }
 0x4bb   :  { %v2160_v14 = vpop.permute.xlu2 %2159  ;;  %v2102_v19 = vadd.f32 %v2098_v20, %v2088_v2  ;;  %v2510_v2 = vmul.f32 %v2508_v48, %v4493_v62 }
 0x4bd   :  { %v2116_v43 = vadd.f32 %v2112_v12, %v2102_v19  ;;  %v2551_v12 = vmul.f32 %v2550_v41, %v4479_v47 }
 0x4bf   :  { %v2124_v29 = vadd.f32 %v2122_v21, %v2116_v43  ;;  %v2564_v21 = vstv %s4510_s9 }
 0x4c0   :  { %2463 = vrot.lane.b32.xlu0 %v2459_v26, %s3327_s3  ;;  %2449 = vrot.lane.b32.xlu1 %v2445_v25, %s3328_s4  ;;  %v2566_v26 = vmul.f32 %v2564_v21, %v4493_v62  ;;  %v2552_v25 = vmul.f32 %v2550_v41, %v4493_v62 }
 0x4c1   :  { %2435 = vrot.lane.b32.xlu2 %v2431_v32, %s3326_s29  ;;  %v2138_v16 = vadd.f32 %v2134_v5, %v2124_v29  ;;  %v2213_v5 = vmul.f32 %v2212_v0, %v4326_v11  ;;  %v2537_v11 = vmul.f32 %v2536_v56, %v4479_v47  ;;  %v2538_v32 = vmul.f32 %v2536_v56, %v4493_v62 }
 0x4c2   :  { %v2146_v31 = vpop.permute.xlu0 %2145  ;;  %v2132_v33 = vpop.permute.xlu1 %2131 }
 0x4c3   :  { %v2176_v34 = vpop.permute.xlu2 %2175  ;;  %v2137_v40 = vadd.f32 %v2132_v33, %v2123_v13  ;;  %v2523_v13 = vmul.f32 %v2522_v24, %v4479_v47 }
 0x4c5   :  { %v2151_v37 = vadd.f32 %v2146_v31, %v2137_v40  ;;  %v2600_v40 = vstv %s4519_s10 }
 0x4c7   :  { %v2165_v45 = vadd.f32 %v2160_v14, %v2151_v37  ;;  %v2586_v37 = vstv %s4521_s11 }
 0x4c8   :  { %2479 = vrot.lane.b32.xlu0 %v2474_v50, %s3329_s7  ;;  %2465 = vrot.lane.b32.xlu1 %v2460_v39, %s3327_s3 }
 0x4c9   :  { %2451 = vrot.lane.b32.xlu2 %v2446_v42, %s3328_s4 }
 0x4ca   :  { %v2162_v38 = vpop.permute.xlu0 %2161  ;;  %v2148_v44 = vpop.permute.xlu1 %2147 }
 0x4cb   :  { %v2202_v53 = vpop.permute.xlu2 %2201  ;;  %v2152_v18 = vadd.f32 %v2148_v44, %v2138_v16 }
 0x4cd   :  { %v2166_v51 = vadd.f32 %v2162_v38, %v2152_v18  ;;  %v4544_v18 = vld [vmem:[#allocation2 + $0x25] sm:$0xff] }
 0x4cf   :  { %v2180_v57 = vadd.f32 %v2176_v34, %v2166_v51  ;;  %v4530_v34 = vld [vmem:[#allocation2 + $0x1d] sm:$0xff]  ;;  %v2614_v51 = vstv %s4534_s12 }
 0x4d0   :  { %2513 = vrot.lane.b32.xlu0 %v2509_v49, %s3324_s25  ;;  %2499 = vrot.lane.b32.xlu1 %v2495_v52, %s3325_s26  ;;  %v2601_v39 = vmul.f32 %v2600_v40, %v4530_v34  ;;  %v2587_v42 = vmul.f32 %v2586_v37, %v4530_v34  ;;  %v2304_v49 = vstv %s4536_s13 }
 0x4d1   :  { %2477 = vrot.lane.b32.xlu2 %v2473_v54, %s3329_s7  ;;  %v2616_v54 = vmul.f32 %v2614_v51, %v4544_v18 }
 0x4d2   :  { %v2188_v58 = vpop.permute.xlu0 %2187  ;;  %v2174_v59 = vpop.permute.xlu1 %2173 }
 0x4d3   :  { %v2226_v22 = vpop.permute.xlu2 %2225  ;;  %v2179_v55 = vadd.f32 %v2174_v59, %v2165_v45  ;;  %v2565_v45 = vmul.f32 %v2564_v21, %v4479_v47 }
 0x4d5   :  { %v2193_v15 = vadd.f32 %v2188_v58, %v2179_v55  ;;  %v2588_v58 = vmul.f32 %v2586_v37, %v4544_v18 }
 0x4d7   :  { %v2207_v3 = vadd.f32 %v2202_v53, %v2193_v15 }
 0x4d8   :  { %2529 = vrot.lane.b32.xlu0 %v2524_v1, %s3326_s29  ;;  %2515 = vrot.lane.b32.xlu1 %v2510_v2, %s3324_s25  ;;  %v2642_v1 = vstv %s4546_s14 }
 0x4d9   :  { %2501 = vrot.lane.b32.xlu2 %v2496_v28, %s3325_s26  ;;  %v2215_v6 = vadd.f32 %v2213_v5, %v2207_v3  ;;  %v2628_v28 = vstv %s4548_s15  ;;  %v2306_v3 = vmul.f32 %v2304_v49, %v4391_v30 }
 0x4da   :  { %v2204_v63 = vpop.permute.xlu0 %2203  ;;  %v2190_v7 = vpop.permute.xlu1 %2189 }
 0x4db   :  { %v2252_v23 = vpop.permute.xlu2 %2251  ;;  %v2194_v8 = vadd.f32 %v2190_v7, %v2180_v57  ;;  %v2602_v57 = vmul.f32 %v2600_v40, %v4544_v18 }
 0x4dd   :  { %v2208_v61 = vadd.f32 %v2204_v63, %v2194_v8  ;;  %v2643_v63 = vmul.f32 %v2642_v1, %v4530_v34 }
 0x4df   :  { %v2216_v20 = vadd.f32 %v2214_v10, %v2208_v61  ;;  %v2656_v10 = vstv %s4561_s16 }
 0x4e0   :  { %2555 = vrot.lane.b32.xlu0 %v2551_v12, %s3327_s3  ;;  %2541 = vrot.lane.b32.xlu1 %v2537_v11, %s3328_s4  ;;  %v2658_v12 = vmul.f32 %v2656_v10, %v4544_v18  ;;  %v2644_v11 = vmul.f32 %v2642_v1, %v4544_v18 }
 0x4e1   :  { %2527 = vrot.lane.b32.xlu2 %v2523_v13, %s3326_s29  ;;  %v2230_v17 = vadd.f32 %v2226_v22, %v2216_v20  ;;  %v2305_v22 = vmul.f32 %v2304_v49, %v4377_v27  ;;  %v2629_v27 = vmul.f32 %v2628_v28, %v4530_v34  ;;  %v2630_v13 = vmul.f32 %v2628_v28, %v4544_v18 }
 0x4e2   :  { %v2238_v14 = vpop.permute.xlu0 %2237  ;;  %v2224_v19 = vpop.permute.xlu1 %2223 }
 0x4e3   :  { %v2268_v36 = vpop.permute.xlu2 %2267  ;;  %v2229_v9 = vadd.f32 %v2224_v19, %v2215_v6  ;;  %v2615_v6 = vmul.f32 %v2614_v51, %v4530_v34 }
 0x4e5   :  { %v2243_v43 = vadd.f32 %v2238_v14, %v2229_v9  ;;  %v2692_v9 = vstv %s4570_s17 }
 0x4e7   :  { %v2257_v29 = vadd.f32 %v2252_v23, %v2243_v43  ;;  %v2678_v43 = vstv %s4572_s0 }
 0x4e8   :  { %2571 = vrot.lane.b32.xlu0 %v2566_v26, %s3329_s7  ;;  %2557 = vrot.lane.b32.xlu1 %v2552_v25, %s3327_s3 }
 0x4e9   :  { %2543 = vrot.lane.b32.xlu2 %v2538_v32, %s3328_s4 }
 0x4ea   :  { %v2254_v31 = vpop.permute.xlu0 %2253  ;;  %v2240_v16 = vpop.permute.xlu1 %2239 }
 0x4eb   :  { %v2294_v33 = vpop.permute.xlu2 %2293  ;;  %v2244_v35 = vadd.f32 %v2240_v16, %v2230_v17 }
 0x4ed   :  { %v2258_v50 = vadd.f32 %v2254_v31, %v2244_v35  ;;  %v4595_v35 = vld [vmem:[#allocation2 + $0x26] sm:$0xff] }
 0x4ef   :  { %v2272_v38 = vadd.f32 %v2268_v36, %v2258_v50  ;;  %v4581_v36 = vld [vmem:[#allocation2 + $0x1e] sm:$0xff]  ;;  %v2706_v50 = vstv %s4585_s1 }
 0x4f0   :  { %2605 = vrot.lane.b32.xlu0 %v2601_v39, %s3324_s25  ;;  %2591 = vrot.lane.b32.xlu1 %v2587_v42, %s3325_s26  ;;  %v2693_v25 = vmul.f32 %v2692_v9, %v4581_v36  ;;  %v2679_v32 = vmul.f32 %v2678_v43, %v4581_v36  ;;  %v2396_v39 = vstv %s4587_s21 }
 0x4f1   :  { %2569 = vrot.lane.b32.xlu2 %v2565_v45, %s3329_s7  ;;  %v2708_v45 = vmul.f32 %v2706_v50, %v4595_v35 }
 0x4f2   :  { %v2280_v44 = vpop.permute.xlu0 %2279  ;;  %v2266_v53 = vpop.permute.xlu1 %2265 }
 0x4f3   :  { %v2318_v48 = vpop.permute.xlu2 %2317  ;;  %v2271_v46 = vadd.f32 %v2266_v53, %v2257_v29  ;;  %v2657_v29 = vmul.f32 %v2656_v10, %v4530_v34 }
 0x4f5   :  { %v2285_v52 = vadd.f32 %v2280_v44, %v2271_v46  ;;  %v2680_v44 = vmul.f32 %v2678_v43, %v4595_v35 }
 0x4f7   :  { %v2299_v59 = vadd.f32 %v2294_v33, %v2285_v52 }
 0x4f8   :  { %2621 = vrot.lane.b32.xlu0 %v2616_v54, %s3326_s29  ;;  %2607 = vrot.lane.b32.xlu1 %v2602_v57, %s3324_s25  ;;  %v2734_v54 = vstv %s4597_s20 }
 0x4f9   :  { %2593 = vrot.lane.b32.xlu2 %v2588_v58, %s3325_s26  ;;  %v2307_v24 = vadd.f32 %v2305_v22, %v2299_v59  ;;  %v2720_v58 = vstv %s4599_s22  ;;  %v2398_v59 = vmul.f32 %v2396_v39, %v4442_v4  ;;  %v2748_v4 = vstv %s3060_s23 }
 0x4fa   :  { %v2296_v55 = vpop.permute.xlu0 %2295  ;;  %v2282_v0 = vpop.permute.xlu1 %2281  ;;  %v2749_v10 = vmul.f32 %v2748_v4, %v4581_v36 }
 0x4fb   :  { %v2344_v15 = vpop.permute.xlu2 %2343  ;;  %v2286_v2 = vadd.f32 %v2282_v0, %v2272_v38  ;;  %v2694_v38 = vmul.f32 %v2692_v9, %v4595_v35 }
 0x4fd   :  { %v2300_v5 = vadd.f32 %v2296_v55, %v2286_v2  ;;  %v2735_v55 = vmul.f32 %v2734_v54, %v4581_v36 }
 0x4ff   :  { %v2308_v7 = vadd.f32 %v2306_v3, %v2300_v5 }
 0x500   :  { %2647 = vrot.lane.b32.xlu0 %v2643_v63, %s3327_s3  ;;  %2633 = vrot.lane.b32.xlu1 %v2629_v27, %s3328_s4  ;;  %v2750_v63 = vmul.f32 %v2748_v4, %v4595_v35  ;;  %v2736_v27 = vmul.f32 %v2734_v54, %v4595_v35 }
 0x501   :  { %2619 = vrot.lane.b32.xlu2 %v2615_v6, %s3326_s29  ;;  %v2322_v41 = vadd.f32 %v2318_v48, %v2308_v7  ;;  %v2397_v48 = vmul.f32 %v2396_v39, %v4428_v60  ;;  %v2707_v60 = vmul.f32 %v2706_v50, %v4581_v36  ;;  %v2722_v6 = vmul.f32 %v2720_v58, %v4595_v35 }
 0x502   :  { %v2330_v23 = vpop.permute.xlu0 %2329  ;;  %v2316_v8 = vpop.permute.xlu1 %2315 }
 0x503   :  { %v2360_v56 = vpop.permute.xlu2 %2359  ;;  %v2321_v30 = vadd.f32 %v2316_v8, %v2307_v24  ;;  %v2721_v24 = vmul.f32 %v2720_v58, %v4581_v36 }
 0x505   :  { %v2335_v61 = vadd.f32 %v2330_v23, %v2321_v30 }
 0x507   :  { %v2349_v20 = vadd.f32 %v2344_v15, %v2335_v61 }
 0x508   :  { %2663 = vrot.lane.b32.xlu0 %v2658_v12, %s3329_s7  ;;  %2649 = vrot.lane.b32.xlu1 %v2644_v11, %s3327_s3 }
 0x509   :  { %2635 = vrot.lane.b32.xlu2 %v2630_v13, %s3328_s4 }
 0x50a   :  { %v2346_v14 = vpop.permute.xlu0 %2345  ;;  %v2332_v17 = vpop.permute.xlu1 %2331 }
 0x50b   :  { %v2386_v19 = vpop.permute.xlu2 %2385  ;;  %v2336_v21 = vadd.f32 %v2332_v17, %v2322_v41 }
 0x50d   :  { %v2350_v26 = vadd.f32 %v2346_v14, %v2336_v21 }
 0x50f   :  { %v2364_v31 = vadd.f32 %v2360_v56, %v2350_v26 }
 0x510   :  { %2697 = vrot.lane.b32.xlu0 %v2693_v25, %s3324_s25  ;;  %2683 = vrot.lane.b32.xlu1 %v2679_v32, %s3325_s26 }
 0x511   :  { %2661 = vrot.lane.b32.xlu2 %v2657_v29, %s3329_s7 }
 0x512   :  { %v2372_v16 = vpop.permute.xlu0 %2371  ;;  %v2358_v33 = vpop.permute.xlu1 %2357 }
 0x513   :  { %v2410_v40 = vpop.permute.xlu2 %2409  ;;  %v2363_v37 = vadd.f32 %v2358_v33, %v2349_v20 }
 0x515   :  { %v2377_v42 = vadd.f32 %v2372_v16, %v2363_v37 }
 0x517   :  { %v2391_v53 = vadd.f32 %v2386_v19, %v2377_v42 }
 0x518   :  { %2713 = vrot.lane.b32.xlu0 %v2708_v45, %s3326_s29  ;;  %2699 = vrot.lane.b32.xlu1 %v2694_v38, %s3324_s25  ;;  %s3040_s25 = sld [smem:[#allocation3 + $0x4d]] }
 0x519   :  { %2685 = vrot.lane.b32.xlu2 %v2680_v44, %s3325_s26  ;;  %v2399_v51 = vadd.f32 %v2397_v48, %v2391_v53  ;;  %s3047_s26 = sld [smem:[#allocation3 + $0x54]] }
 0x51a   :  { %v2388_v46 = vpop.permute.xlu0 %2387  ;;  %v2374_v49 = vpop.permute.xlu1 %2373 }
 0x51b   :  { %v2436_v52 = vpop.permute.xlu2 %2435  ;;  %v2378_v57 = vadd.f32 %v2374_v49, %v2364_v31 }
 0x51d   :  { %v2392_v22 = vadd.f32 %v2388_v46, %v2378_v57 }
 0x51e   :  { %v2488_v14 = vstv %s3040_s25 }
 0x51f   :  { %v2400_v0 = vadd.f32 %v2398_v59, %v2392_v22  ;;  %v2489_v9 = vmul.f32 %v2488_v14, %v4479_v47  ;;  %v2490_v29 = vmul.f32 %v2488_v14, %v4493_v62 }
 0x520   :  { %2739 = vrot.lane.b32.xlu0 %v2735_v55, %s3327_s3  ;;  %2725 = vrot.lane.b32.xlu1 %v2721_v24, %s3328_s4 }
 0x521   :  { %2711 = vrot.lane.b32.xlu2 %v2707_v60, %s3326_s29  ;;  %v2414_v1 = vadd.f32 %v2410_v40, %v2400_v0  ;;  %s3054_s29 = sld [smem:[#allocation3 + $0x5b]] }
 0x522   :  { %v2422_v15 = vpop.permute.xlu0 %2421  ;;  %v2408_v2 = vpop.permute.xlu1 %2407 }
 0x523   :  { %v2452_v28 = vpop.permute.xlu2 %2451  ;;  %v2413_v3 = vadd.f32 %v2408_v2, %v2399_v51 }
 0x525   :  { %v2427_v5 = vadd.f32 %v2422_v15, %v2413_v3 }
 0x527   :  { %v2441_v7 = vadd.f32 %v2436_v52, %v2427_v5  ;;  %v2580_v52 = vstv %s3047_s26 }
 0x528   :  { %2755 = vrot.lane.b32.xlu0 %v2750_v63, %s3329_s7  ;;  %2741 = vrot.lane.b32.xlu1 %v2736_v27, %s3327_s3  ;;  %v2581_v58 = vmul.f32 %v2580_v52, %v4530_v34  ;;  %v2582_v15 = vmul.f32 %v2580_v52, %v4544_v18  ;;  %s3330_s3 = smov [#allocation8]  }
 0x529   :  { %2727 = vrot.lane.b32.xlu2 %v2722_v6, %s3328_s4  ;;  %s2806_s4 = sshll.u32 %s3330_s3, 4  ;;  %s2807_s4 = int_to_ptr.vmem [resolvable:$true] %s2806_s4 }
 0x52a   :  { %v2438_v23 = vpop.permute.xlu0 %2437  ;;  %v2424_v41 = vpop.permute.xlu1 %2423 }
 0x52b   :  { %v2478_v8 = vpop.permute.xlu2 %2477  ;;  %v2428_v56 = vadd.f32 %v2424_v41, %v2414_v1 }
 0x52d   :  { %v2442_v30 = vadd.f32 %v2438_v23, %v2428_v56 }
 0x52f   :  { %v2456_v61 = vadd.f32 %v2452_v28, %v2442_v30 }
 0x531   :  { %2753 = vrot.lane.b32.xlu2 %v2749_v10, %s3329_s7  ;;  %v2672_v10 = vstv %s3054_s29 }
 0x532   :  { %v2464_v12 = vpop.permute.xlu0 %2463  ;;  %v2450_v11 = vpop.permute.xlu1 %2449 }
 0x533   :  { %v2502_v13 = vpop.permute.xlu2 %2501  ;;  %v2455_v20 = vadd.f32 %v2450_v11, %v2441_v7  ;;  %v2673_v11 = vmul.f32 %v2672_v10, %v4581_v36 }
 0x535   :  { %v2469_v17 = vadd.f32 %v2464_v12, %v2455_v20 }
 0x537   :  { %v2483_v19 = vadd.f32 %v2478_v8, %v2469_v17 }
 0x539   :  { %v2491_v43 = vadd.f32 %v2489_v9, %v2483_v19 }
 0x53a   :  { %v2480_v21 = vpop.permute.xlu0 %2479  ;;  %v2466_v26 = vpop.permute.xlu1 %2465 }
 0x53b   :  { %v2528_v25 = vpop.permute.xlu2 %2527  ;;  %v2470_v32 = vadd.f32 %v2466_v26, %v2456_v61 }
 0x53d   :  { %v2484_v31 = vadd.f32 %v2480_v21, %v2470_v32  ;;  %v2674_v21 = vmul.f32 %v2672_v10, %v4595_v35 }
 0x53f   :  { %v2492_v16 = vadd.f32 %v2490_v29, %v2484_v31 }
 0x541   :  { %v2506_v44 = vadd.f32 %v2502_v13, %v2492_v16 }
 0x542   :  { %v2514_v33 = vpop.permute.xlu0 %2513  ;;  %v2500_v40 = vpop.permute.xlu1 %2499 }
 0x543   :  { %v2544_v37 = vpop.permute.xlu2 %2543  ;;  %v2505_v50 = vadd.f32 %v2500_v40, %v2491_v43 }
 0x545   :  { %v2519_v38 = vadd.f32 %v2514_v33, %v2505_v50 }
 0x547   :  { %v2533_v53 = vadd.f32 %v2528_v25, %v2519_v38 }
 0x54a   :  { %v2530_v39 = vpop.permute.xlu0 %2529  ;;  %v2516_v42 = vpop.permute.xlu1 %2515 }
 0x54b   :  { %v2570_v45 = vpop.permute.xlu2 %2569  ;;  %v2520_v47 = vadd.f32 %v2516_v42, %v2506_v44 }
 0x54d   :  { %v2534_v62 = vadd.f32 %v2530_v39, %v2520_v47 }
 0x54f   :  { %v2548_v59 = vadd.f32 %v2544_v37, %v2534_v62 }
 0x552   :  { %v2556_v48 = vpop.permute.xlu0 %2555  ;;  %v2542_v46 = vpop.permute.xlu1 %2541 }
 0x553   :  { %v2594_v51 = vpop.permute.xlu2 %2593  ;;  %v2547_v49 = vadd.f32 %v2542_v46, %v2533_v53 }
 0x555   :  { %v2561_v54 = vadd.f32 %v2556_v48, %v2547_v49 }
 0x557   :  { %v2575_v57 = vadd.f32 %v2570_v45, %v2561_v54 }
 0x559   :  { %v2583_v55 = vadd.f32 %v2581_v58, %v2575_v57 }
 0x55a   :  { %v2572_v22 = vpop.permute.xlu0 %2571  ;;  %v2558_v24 = vpop.permute.xlu1 %2557 }
 0x55b   :  { %v2620_v60 = vpop.permute.xlu2 %2619  ;;  %v2562_v0 = vadd.f32 %v2558_v24, %v2548_v59 }
 0x55d   :  { %v2576_v1 = vadd.f32 %v2572_v22, %v2562_v0 }
 0x55f   :  { %v2584_v2 = vadd.f32 %v2582_v15, %v2576_v1 }
 0x561   :  { %v2598_v34 = vadd.f32 %v2594_v51, %v2584_v2 }
 0x562   :  { %v2606_v28 = vpop.permute.xlu0 %2605  ;;  %v2592_v3 = vpop.permute.xlu1 %2591 }
 0x563   :  { %v2636_v4 = vpop.permute.xlu2 %2635  ;;  %v2597_v5 = vadd.f32 %v2592_v3, %v2583_v55 }
 0x565   :  { %v2611_v6 = vadd.f32 %v2606_v28, %v2597_v5 }
 0x567   :  { %v2625_v41 = vadd.f32 %v2620_v60, %v2611_v6 }
 0x56a   :  { %v2622_v63 = vpop.permute.xlu0 %2621  ;;  %v2608_v27 = vpop.permute.xlu1 %2607 }
 0x56b   :  { %v2662_v7 = vpop.permute.xlu2 %2661  ;;  %v2612_v23 = vadd.f32 %v2608_v27, %v2598_v34 }
 0x56d   :  { %v2626_v61 = vadd.f32 %v2622_v63, %v2612_v23 }
 0x56f   :  { %v2640_v20 = vadd.f32 %v2636_v4, %v2626_v61 }
 0x572   :  { %v2648_v8 = vpop.permute.xlu0 %2647  ;;  %v2634_v56 = vpop.permute.xlu1 %2633 }
 0x573   :  { %v2639_v30 = vadd.f32 %v2634_v56, %v2625_v41  ;;  %v2686_v13 = vpop.permute.xlu2 %2685 }
 0x575   :  { %v2653_v18 = vadd.f32 %v2648_v8, %v2639_v30 }
 0x577   :  { %v2667_v12 = vadd.f32 %v2662_v7, %v2653_v18 }
 0x579   :  { %v2675_v17 = vadd.f32 %v2673_v11, %v2667_v12 }
 0x57a   :  { %v2664_v14 = vpop.permute.xlu0 %2663  ;;  %v2650_v19 = vpop.permute.xlu1 %2649 }
 0x57b   :  { %v2654_v9 = vadd.f32 %v2650_v19, %v2640_v20  ;;  %v2712_v32 = vpop.permute.xlu2 %2711 }
 0x57d   :  { %v2668_v43 = vadd.f32 %v2664_v14, %v2654_v9 }
 0x57f   :  { %v2676_v26 = vadd.f32 %v2674_v21, %v2668_v43 }
 0x581   :  { %v2690_v50 = vadd.f32 %v2686_v13, %v2676_v26 }
 0x582   :  { %v2698_v25 = vpop.permute.xlu0 %2697  ;;  %v2684_v29 = vpop.permute.xlu1 %2683 }
 0x583   :  { %v2689_v31 = vadd.f32 %v2684_v29, %v2675_v17  ;;  %v2728_v40 = vpop.permute.xlu2 %2727 }
 0x585   :  { %v2703_v37 = vadd.f32 %v2698_v25, %v2689_v31 }
 0x587   :  { %v2717_v39 = vadd.f32 %v2712_v32, %v2703_v37 }
 0x58a   :  { %v2714_v16 = vpop.permute.xlu0 %2713  ;;  %v2700_v33 = vpop.permute.xlu1 %2699 }
 0x58b   :  { %v2704_v36 = vadd.f32 %v2700_v33, %v2690_v50  ;;  %v2754_v53 = vpop.permute.xlu2 %2753 }
 0x58d   :  { %v2718_v44 = vadd.f32 %v2714_v16, %v2704_v36 }
 0x58f   :  { %v2732_v46 = vadd.f32 %v2728_v40, %v2718_v44 }
 0x592   :  { %v2726_v42 = vpop.permute.xlu1 %2725  ;;  %v2740_v45 = vpop.permute.xlu0 %2739 }
 0x593   :  { %v2731_v38 = vadd.f32 %v2726_v42, %v2717_v39 }
 0x595   :  { %v2745_v47 = vadd.f32 %v2740_v45, %v2731_v38 }
 0x597   :  { %v2759_v35 = vadd.f32 %v2754_v53, %v2745_v47 }
 0x599   :  { %v3061_v48 = vmul.f32 -1.442695, %v2759_v35 }
 0x59a   :  { %v2742_v51 = vpop.permute.xlu1 %2741  ;;  %v2756_v52 = vpop.permute.xlu0 %2755 }
 0x59b   :  { %3164 = vpow2.f32 %v3061_v48  ;;  %v2746_v49 = vadd.f32 %v2742_v51, %v2732_v46 }
 0x59d   :  { %v2760_v62 = vadd.f32 %v2756_v52, %v2746_v49 }
 0x59f   :  { %v3062_v54 = vmul.f32 -1.442695, %v2760_v62 }
 0x5a1   :  { %v3165_v57 = vpop.eup %3164  ;;  %3166 = vpow2.f32 %v3062_v54 }
 0x5a2   :  { %v2767_v58 = vadd.f32 1.0, %v3165_v57 }
 0x5a4   :  { %3168 = vrcp.f32 %v2767_v58  ;;  %v2780_v0 = vand.u32 2147483648, %v2767_v58  ;;  %v2778_v1 = vand.u32 2147483647, %v2767_v58  ;;  %vm2774_vm14 = vweird.f32 %v2767_v58 }
 0x5a6   :  { %v2781_v4 = vor.u32 1.1754944e-38, %v2780_v0  ;;  %vm2779_vm0 = vcmp.eq.f32.partialorder %v2778_v1, 8.507059e+37 }
 0x5a7   :  { %v3167_v59 = vpop.eup %3166 }
 0x5a8   :  { %v2768_v22 = vadd.f32 1.0, %v3167_v59 }
 0x5aa   :  { %v3169_v55 = vpop.eup %3168  ;;  %3170 = vrcp.f32 %v2768_v22  ;;  %v2795_v6 = vand.u32 2147483648, %v2768_v22  ;;  %v2793_v34 = vand.u32 2147483647, %v2768_v22  ;;  %vm2789_vm2 = vweird.f32 %v2768_v22 }
 0x5ab   :  { %v2770_v24 = vmul.f32 %v3169_v55, %v2767_v58  ;;  %vm2775_vm13 = vweird.f32 %v3169_v55 }
 0x5ac   :  { %vm2776_vm15 = vmor %vm2774_vm14, %vm2775_vm13  ;;  %v2796_v41 = vor.u32 1.1754944e-38, %v2795_v6  ;;  %vm2794_vm4 = vcmp.eq.f32.partialorder %v2793_v34, 8.507059e+37 }
 0x5ad   :  { %v2771_v60 = vsub.f32 1.0, %v2770_v24 }
 0x5af   :  { %v2772_v15 = vmul.f32 %v3169_v55, %v2771_v60 }
 0x5b0   :  { %v3171_v2 = vpop.eup %3170 }
 0x5b1   :  { %v2773_v28 = vadd.f32 %v3169_v55, %v2772_v15  ;;  %v2785_v3 = vmul.f32 %v3171_v2, %v2768_v22  ;;  %vm2790_vm1 = vweird.f32 %v3171_v2 }
 0x5b2   :  { %vm2791_vm3 = vmor %vm2789_vm2, %vm2790_vm1 }
 0x5b3   :  { %v2777_v5 = vsel %vm2776_vm15, %v3169_v55, %v2773_v28  ;;  %v2786_v63 = vsub.f32 1.0, %v2785_v3 }
 0x5b4   :  { %v2782_v27 = vsel %vm2779_vm0, %v2781_v4, %v2777_v5 }
 0x5b5   :  { %v2787_v7 = vmul.f32 %v3171_v2, %v2786_v63  ;;  %2800 = vst.msk [vmem:[#allocation8 + $0x10] sm:$0xff] %vm1426_vm7, %v2782_v27 }
 0x5b7   :  { %v2788_v23 = vadd.f32 %v3171_v2, %v2787_v7 }
 0x5b9   :  { %v2792_v8 = vsel %vm2791_vm3, %v3171_v2, %v2788_v23 }
 0x5ba   :  { %v2797_v56 = vsel %vm2794_vm4, %v2796_v41, %v2792_v8 }
 0x5bb   :  { %2801 = vst.msk [vmem:[#allocation8 + $0x18] sm:$0xff] %vm1426_vm7, %v2797_v56 }
 0x5bc   :  { %2814 = dma.vmem_to_hbm [thread:$0]  %s2807_s4, 512, %s2809_s27, [#allocation5], %s3320_s18, %s3320_s18, %s3321_s19  }
 0x5bd   :  { %3276 = dma.done.wait [#allocation5], 512  }
 0x5be   :  { %3277 = vsyncadd [#allocation5], 4294966784 }
 0x5bf   :  { %2819 = vsyncpa [#allocation4], 1 }
 0x5c0   :  { %2820 = vsyncpa [#allocation5], 1 }
 0x5c1   :  { %2821 = vsyncpa [#allocation6], 1 }

</bundles_post_ra>
